<compile_context>
chip_gen: v7x
topology: tpu7x:2x2x1
jax: 0.10.0
libtpu: 0.0.40
codegen_flags: <defaults>
</compile_context>

<pallas_src>
import functools

import jax
import jax.numpy as jnp
from jax.experimental import pallas as pl
from jax.experimental.pallas import tpu as pltpu


def _round_up(x, m):
    return (x + m - 1) // m * m


# ----------------------------------------------------------------------------
# Pallas kernel: im2col-matmul with fused bias / ReLU / elementwise-product
# ----------------------------------------------------------------------------
_TILE_M = 512                     # rows per grid step (tiles stay tiny in VMEM)
_VMEM_LIMIT = 32 * 1024 * 1024    # raise v5e's 16 MiB scoped default; the per-step
                                  # buffers (<1 MiB) also fit v7x's 64 MiB VMEM.


def _mm_bias_kernel(x_ref, w_ref, b_ref, o_ref, *, relu):
    acc = jnp.dot(x_ref[...], w_ref[...], preferred_element_type=jnp.float32)
    acc = acc + b_ref[...]
    if relu:
        acc = jnp.maximum(acc, 0.0)
    o_ref[...] = acc.astype(o_ref.dtype)


def _mm_bias_mul_relu_kernel(x_ref, w_ref, b_ref, m_ref, o_ref):
    # Fused DSSD fusion epilogue: relu((x @ w + b) * m).  The multiply / max
    # ride in VPU slots while the MXU result drains.
    acc = jnp.dot(x_ref[...], w_ref[...], preferred_element_type=jnp.float32)
    acc = (acc + b_ref[...]) * m_ref[...]
    o_ref[...] = jnp.maximum(acc, 0.0).astype(o_ref.dtype)


def matmul_bias(x, w, b, relu=False, mul=None):
    """y = x @ w + b with fused epilogue.

    x   : (M, Kp) bf16 — K already zero-padded to a multiple of 128.
    w   : (Kp, N) bf16 — pre-padded once at init time.
    b   : (1, N)  f32.
    mul : optional (M, N) f32; if given, y = relu((x @ w + b) * mul).
    Returns (M, N) f32.  Grid is tiled over M ("parallel" -> megacore sharding
    on v7x); a ragged last tile is handled by Pallas' partial-block DMA clamp.
    """
    M, Kp = x.shape
    N = w.shape[1]
    tm = min(_TILE_M, _round_up(M, 16))
    grid = (pl.cdiv(M, tm),)
    in_specs = [
        pl.BlockSpec((tm, Kp), lambda i: (i, 0)),
        pl.BlockSpec((Kp, N), lambda i: (0, 0)),
        pl.BlockSpec((1, N), lambda i: (0, 0)),
    ]
    args = [x, w, b]
    if mul is None:
        kernel = functools.partial(_mm_bias_kernel, relu=relu)
    else:
        kernel = _mm_bias_mul_relu_kernel
        in_specs.append(pl.BlockSpec((tm, N), lambda i: (i, 0)))
        args.append(mul)
    return pl.pallas_call(
        kernel,
        out_shape=jax.ShapeDtypeStruct((M, N), jnp.float32),
        grid=grid,
        in_specs=in_specs,
        out_specs=pl.BlockSpec((tm, N), lambda i: (i, 0)),
        compiler_params=pltpu.CompilerParams(
            dimension_semantics=("parallel",),
            vmem_limit_bytes=_VMEM_LIMIT),
    )(*args)


# ----------------------------------------------------------------------------
# Conv / deconv built on the Pallas matmul kernel
# ----------------------------------------------------------------------------
def _im2col(x, kh, kw, stride, pad, kp):
    """Single-pass im2col in bf16, with the K-padding (to kp) fused into the
    same concatenate so the cols buffer is written to HBM exactly once.
    TODO(synk): replace with in-kernel shifted-window DMA accumulation to
    avoid materializing im2col in HBM at all."""
    B, H, W, C = x.shape
    if pad:
        x = jnp.pad(x, ((0, 0), (pad, pad), (pad, pad), (0, 0)))
    Ho = (H + 2 * pad - kh) // stride + 1
    Wo = (W + 2 * pad - kw) // stride + 1
    taps = []
    for di in range(kh):
        for dj in range(kw):
            taps.append(
                x[:, di:di + stride * (Ho - 1) + 1:stride,
                     dj:dj + stride * (Wo - 1) + 1:stride, :])
    k = kh * kw * C
    if kp > k:
        taps.append(jnp.zeros((B, Ho, Wo, kp - k), x.dtype))
    cols = jnp.concatenate(taps, axis=-1)           # (B,Ho,Wo,kp)
    return cols.reshape(B * Ho * Wo, kp), (B, Ho, Wo)


def conv2d(x, wp, bp, kh, kw, stride, pad, relu=False, mul=None):
    """x: (B,H,W,Cin) f32 NHWC.  wp: (Kp,N) bf16 prepared.  bp: (1,N) f32."""
    cols, (B, Ho, Wo) = _im2col(x.astype(jnp.bfloat16), kh, kw, stride, pad,
                                wp.shape[0])
    y = matmul_bias(cols, wp, bp, relu=relu, mul=mul)
    return y.reshape(B, Ho, Wo, bp.shape[1])


def deconv2x2(x, wp, bp):
    """Exact ConvTranspose2d(kernel=2, stride=2).
    x: (B,H,W,Cin) f32, wp: (Kp, 4*Cout) bf16 prepared, bp: (1, 4*Cout) f32."""
    B, H, W, cin = x.shape
    cout = bp.shape[1] // 4
    cols, _ = _im2col(x.astype(jnp.bfloat16), 1, 1, 1, 0, wp.shape[0])
    y = matmul_bias(cols, wp, bp, relu=False)       # (B*H*W, 4*cout)
    y = y.reshape(B, H, W, 2, 2, cout)
    # TODO(synk): fold this 2x2 spatial interleave into the kernel's store
    # path (out_spec index_map / lane swizzle) to drop one HBM copy.
    y = jnp.transpose(y, (0, 1, 3, 2, 4, 5)).reshape(B, 2 * H, 2 * W, cout)
    return y


# ----------------------------------------------------------------------------
# Deterministic synthetic parameters (stand-in for cfg-built sub-modules)
# ----------------------------------------------------------------------------
BBOX_NUM = 4          # boxes per location at every level (cfg['bbox_num'])
NUM_CLASSES = 1       # conf is reshaped to (B, -1, 1) in the reference

# backbone ("resnet" stand-in): (cin, cout, stride) for 7 conv3x3 layers;
# outputs of layers 5 and 6 are collected (as in the reference forward).
_BACKBONE_CFG = [(3, 8, 1), (8, 8, 1), (8, 8, 2), (8, 8, 1),
                 (8, 8, 1), (8, 8, 1), (8, 16, 2)]
# ssd extra layers: (ksize, cin, cout, stride, pad); odd indices collected.
_SSD_CFG = [(1, 16, 8, 1, 0), (3, 8, 16, 2, 1),
            (1, 16, 8, 1, 0), (3, 8, 16, 2, 1)]
# dssd fusion layers: skip-branch input channels (deep -> shallow order).
_DSSD_SKIP_CIN = [16, 16, 8]
_DSSD_C = 16
_NUM_LEVELS = 4


def init_params(key):
    """Builds parameters already in MXU-ready form: weights reshaped to
    (Kp, N) bf16 (K zero-padded to a multiple of 128) and biases (1, N) f32,
    so the forward pass never re-pads weights."""
    cnt = [0]

    def nrm(shape, scale=0.1):
        cnt[0] += 1
        k = jax.random.fold_in(key, cnt[0])
        return jax.random.normal(k, shape, jnp.float32) * scale

    def prep_conv(w, b):
        kh, kw, cin, cout = w.shape
        kk = kh * kw * cin
        kp = _round_up(kk, 128)
        wp = jnp.zeros((kp, cout), jnp.float32).at[:kk, :].set(
            w.reshape(kk, cout)).astype(jnp.bfloat16)
        return wp, b.reshape(1, cout).astype(jnp.float32)

    backbone = []
    for ci, co, _s in _BACKBONE_CFG:
        backbone.append(prep_conv(nrm((3, 3, ci, co)), nrm((co,), 0.01)))

    ssd = []
    for kk, ci, co, _s, _p in _SSD_CFG:
        ssd.append(prep_conv(nrm((kk, kk, ci, co)), nrm((co,), 0.01)))

    # TODO(synk): the original dssd_layers likely include BatchNorm + an extra
    # conv on the deconv path; their exact definition is not provided, so the
    # fusion here is relu(deconv(x) * conv3x3(skip)) (BN omitted).
    dssd = []
    kp_dec = _round_up(_DSSD_C, 128)
    for cskip in _DSSD_SKIP_CIN:
        dw = nrm((_DSSD_C, 2, 2, _DSSD_C))
        db = nrm((_DSSD_C,), 0.01)
        dwp = jnp.zeros((kp_dec, 4 * _DSSD_C), jnp.float32).at[:_DSSD_C, :].set(
            dw.reshape(_DSSD_C, 4 * _DSSD_C)).astype(jnp.bfloat16)
        dbp = jnp.tile(db, 4).reshape(1, 4 * _DSSD_C).astype(jnp.float32)
        swp, sbp = prep_conv(nrm((3, 3, cskip, _DSSD_C)), nrm((_DSSD_C,), 0.01))
        dssd.append((dwp, dbp, swp, sbp))

    # prediction heads: loc and conf weights are concatenated along N so each
    # level runs a single fused matmul (N = 4*BBOX_NUM + NUM_CLASSES*BBOX_NUM).
    predict = []
    for _ in range(_NUM_LEVELS):
        lw = nrm((3, 3, _DSSD_C, 4 * BBOX_NUM))
        lb = nrm((4 * BBOX_NUM,), 0.01)
        cw = nrm((3, 3, _DSSD_C, NUM_CLASSES * BBOX_NUM))
        cb = nrm((NUM_CLASSES * BBOX_NUM,), 0.01)
        predict.append(prep_conv(jnp.concatenate([lw, cw], axis=-1),
                                 jnp.concatenate([lb, cb], axis=0)))

    return dict(backbone=backbone, ssd=ssd, dssd=dssd, predict=predict)


# ----------------------------------------------------------------------------
# Forward pass (mirrors DeconvSSD.forward control flow)
# ----------------------------------------------------------------------------
def deconv_ssd_forward(params, x_nchw):
    B_in = x_nchw.shape[0]
    x = jnp.transpose(x_nchw, (0, 2, 3, 1)).astype(jnp.float32)  # NCHW->NHWC

    ssd_outputs = []
    # backbone ("resnet"): collect outputs at indices 5 and 6
    for k, ((wp, bp), (_ci, _co, stride)) in enumerate(
            zip(params['backbone'], _BACKBONE_CFG)):
        x = conv2d(x, wp, bp, 3, 3, stride, 1, relu=True)
        if k in (5, 6):
            ssd_outputs.append(x)

    # ssd extra layers: relu after each, collect odd indices
    for k, ((wp, bp), (ks, _ci, _co, stride, pad)) in enumerate(
            zip(params['ssd'], _SSD_CFG)):
        x = conv2d(x, wp, bp, ks, ks, stride, pad, relu=True)
        if k % 2 == 1:
            ssd_outputs.append(x)

    # dssd deconvolution / fusion path (deepest -> shallowest); the
    # elementwise product + ReLU is fused into the skip-conv matmul epilogue.
    dssd_outputs = []
    for i in range(len(ssd_outputs)):
        if i == 0:
            x = ssd_outputs[-(i + 1)]
            dssd_outputs.append(x)
        else:
            dwp, dbp, swp, sbp = params['dssd'][i - 1]
            skip = ssd_outputs[-(i + 1)]
            x_up = deconv2x2(x, dwp, dbp)
            B, H2, W2, C = x_up.shape
            x = conv2d(skip, swp, sbp, 3, 3, 1, 1, relu=False,
                       mul=x_up.reshape(B * H2 * W2, C))
            dssd_outputs.insert(0, x)

    # fused prediction heads; features are NHWC, so flattening matches the
    # reference's permute(0, 2, 3, 1).contiguous().view(B, -1)
    loc, conf = [], []
    nloc = 4 * BBOX_NUM
    for feat, (wp, bp) in zip(dssd_outputs, params['predict']):
        y = conv2d(feat, wp, bp, 3, 3, 1, 1, relu=False)   # (B,H,W,nloc+nconf)
        loc.append(y[..., :nloc].reshape(B_in, -1))
        conf.append(y[..., nloc:].reshape(B_in, -1))

    loc = jnp.concatenate(loc, axis=1).reshape(B_in, -1, 4)
    conf = jnp.concatenate(conf, axis=1).reshape(B_in, -1, 1)
    return loc, conf


# ----------------------------------------------------------------------------
if __name__ == "__main__":
    key = jax.random.PRNGKey(0)
    pkey, xkey = jax.random.split(key)
    params = init_params(pkey)

    # input matches the PyTorch module's NCHW convention
    x = jax.random.normal(xkey, (2, 3, 16, 16), jnp.float32)

    fwd = jax.jit(deconv_ssd_forward)
    loc, conf = fwd(params, x)
    jax.block_until_ready((loc, conf))

    assert loc.shape == (2, 340, 4), loc.shape
    assert conf.shape == (2, 340, 1), conf.shape
    assert bool(jnp.all(jnp.isfinite(loc))) and bool(jnp.all(jnp.isfinite(conf)))
    print("KERNEL_OK")
</pallas_src>

<mosaic_0001>
module attributes {stable_mosaic.version = 11 : i64} {
  func.func @_mm_bias_kernel(%arg0: i32, %arg1: memref<512x128xbf16, #tpu.memory_space<vmem>>, %arg2: memref<128x8xbf16, #tpu.memory_space<vmem>>, %arg3: memref<1x8xf32, #tpu.memory_space<vmem>>, %arg4: memref<512x8xf32, #tpu.memory_space<vmem>>) attributes {dimension_semantics = [#tpu.dimension_semantics<parallel>], iteration_bounds = array<i64: 1>, scalar_prefetch = 0 : i64, scratch_operands = 0 : i64, tpu.core_type = #tpu.core_type<tc>, window_params = [{transform_indices = @transform_0, window_bounds = array<i64: 512, 128>}, {pipeline_mode = #tpu.pipeline_mode<synchronous>, transform_indices = @transform_1, window_bounds = array<i64: 128, 8>}, {pipeline_mode = #tpu.pipeline_mode<synchronous>, transform_indices = @transform_2, window_bounds = array<i64: 1, 8>}, {transform_indices = @transform_3, window_bounds = array<i64: 512, 8>}]} {
    %c0 = arith.constant 0 : index
    %c0_0 = arith.constant 0 : index
    %0 = vector.load %arg1[%c0, %c0_0] : memref<512x128xbf16, #tpu.memory_space<vmem>>, vector<512x128xbf16>
    %c0_1 = arith.constant 0 : index
    %c0_2 = arith.constant 0 : index
    %1 = vector.load %arg2[%c0_1, %c0_2] : memref<128x8xbf16, #tpu.memory_space<vmem>>, vector<128x8xbf16>
    %cst = arith.constant dense<0.000000e+00> : vector<512x8xf32>
    %2 = tpu.matmul %0, %1, %cst {dimension_numbers = #tpu.dot_dimension_numbers<[1], [0], [0], [1], [0, 0, 1, 1], [], []>} : vector<512x128xbf16>, vector<128x8xbf16>, vector<512x8xf32> -> vector<512x8xf32>
    %c0_3 = arith.constant 0 : index
    %c0_4 = arith.constant 0 : index
    %3 = vector.load %arg3[%c0_3, %c0_4] : memref<1x8xf32, #tpu.memory_space<vmem>>, vector<1x8xf32>
    %4 = vector.broadcast %3 : vector<1x8xf32> to vector<512x8xf32>
    %5 = arith.addf %2, %4 : vector<512x8xf32>
    %cst_5 = arith.constant 0.000000e+00 : f32
    %6 = vector.broadcast %cst_5 : f32 to vector<512x8xf32>
    %7 = arith.maximumf %5, %6 : vector<512x8xf32>
    %c0_6 = arith.constant 0 : index
    %c0_7 = arith.constant 0 : index
    %8 = vector.load %arg4[%c0_6, %c0_7] : memref<512x8xf32, #tpu.memory_space<vmem>>, vector<512x8xf32>
    tpu.vector_store %arg4[%c0_6, %c0_7], %7 {strides = array<i32>} : memref<512x8xf32, #tpu.memory_space<vmem>>, vector<512x8xf32>,
    return
  }
  func.func @transform_0(%arg0: i32) -> (i32, i32) {
    %c0_i32 = arith.constant 0 : i32
    %c0_i32_0 = arith.constant 0 : i32
    return %arg0, %c0_i32 : i32, i32
  }
  func.func @transform_1(%arg0: i32) -> (i32, i32) {
    %c0_i32 = arith.constant 0 : i32
    %c0_i32_0 = arith.constant 0 : i32
    %c0_i32_1 = arith.constant 0 : i32
    return %c0_i32, %c0_i32_0 : i32, i32
  }
  func.func @transform_2(%arg0: i32) -> (i32, i32) {
    %c0_i32 = arith.constant 0 : i32
    %c0_i32_0 = arith.constant 0 : i32
    %c0_i32_1 = arith.constant 0 : i32
    return %c0_i32, %c0_i32_0 : i32, i32
  }
  func.func @transform_3(%arg0: i32) -> (i32, i32) {
    %c0_i32 = arith.constant 0 : i32
    %c0_i32_0 = arith.constant 0 : i32
    return %arg0, %c0_i32 : i32, i32
  }
}

module attributes {stable_mosaic.version = 11 : i64} {
  func.func @_mm_bias_kernel(%arg0: i32, %arg1: memref<128x128xbf16, #tpu.memory_space<vmem>>, %arg2: memref<128x8xbf16, #tpu.memory_space<vmem>>, %arg3: memref<1x8xf32, #tpu.memory_space<vmem>>, %arg4: memref<128x8xf32, #tpu.memory_space<vmem>>) attributes {dimension_semantics = [#tpu.dimension_semantics<parallel>], iteration_bounds = array<i64: 1>, scalar_prefetch = 0 : i64, scratch_operands = 0 : i64, tpu.core_type = #tpu.core_type<tc>, window_params = [{transform_indices = @transform_0, window_bounds = array<i64: 128, 128>}, {pipeline_mode = #tpu.pipeline_mode<synchronous>, transform_indices = @transform_1, window_bounds = array<i64: 128, 8>}, {pipeline_mode = #tpu.pipeline_mode<synchronous>, transform_indices = @transform_2, window_bounds = array<i64: 1, 8>}, {transform_indices = @transform_3, window_bounds = array<i64: 128, 8>}]} {
    %c0 = arith.constant 0 : index
    %c0_0 = arith.constant 0 : index
    %0 = vector.load %arg1[%c0, %c0_0] : memref<128x128xbf16, #tpu.memory_space<vmem>>, vector<128x128xbf16>
    %c0_1 = arith.constant 0 : index
    %c0_2 = arith.constant 0 : index
    %1 = vector.load %arg2[%c0_1, %c0_2] : memref<128x8xbf16, #tpu.memory_space<vmem>>, vector<128x8xbf16>
    %cst = arith.constant dense<0.000000e+00> : vector<128x8xf32>
    %2 = tpu.matmul %0, %1, %cst {dimension_numbers = #tpu.dot_dimension_numbers<[1], [0], [0], [1], [0, 0, 1, 1], [], []>} : vector<128x128xbf16>, vector<128x8xbf16>, vector<128x8xf32> -> vector<128x8xf32>
    %c0_3 = arith.constant 0 : index
    %c0_4 = arith.constant 0 : index
    %3 = vector.load %arg3[%c0_3, %c0_4] : memref<1x8xf32, #tpu.memory_space<vmem>>, vector<1x8xf32>
    %4 = vector.broadcast %3 : vector<1x8xf32> to vector<128x8xf32>
    %5 = arith.addf %2, %4 : vector<128x8xf32>
    %cst_5 = arith.constant 0.000000e+00 : f32
    %6 = vector.broadcast %cst_5 : f32 to vector<128x8xf32>
    %7 = arith.maximumf %5, %6 : vector<128x8xf32>
    %c0_6 = arith.constant 0 : index
    %c0_7 = arith.constant 0 : index
    %8 = vector.load %arg4[%c0_6, %c0_7] : memref<128x8xf32, #tpu.memory_space<vmem>>, vector<128x8xf32>
    tpu.vector_store %arg4[%c0_6, %c0_7], %7 {strides = array<i32>} : memref<128x8xf32, #tpu.memory_space<vmem>>, vector<128x8xf32>,
    return
  }
  func.func @transform_0(%arg0: i32) -> (i32, i32) {
    %c0_i32 = arith.constant 0 : i32
    %c0_i32_0 = arith.constant 0 : i32
    return %arg0, %c0_i32 : i32, i32
  }
  func.func @transform_1(%arg0: i32) -> (i32, i32) {
    %c0_i32 = arith.constant 0 : i32
    %c0_i32_0 = arith.constant 0 : i32
    %c0_i32_1 = arith.constant 0 : i32
    return %c0_i32, %c0_i32_0 : i32, i32
  }
  func.func @transform_2(%arg0: i32) -> (i32, i32) {
    %c0_i32 = arith.constant 0 : i32
    %c0_i32_0 = arith.constant 0 : i32
    %c0_i32_1 = arith.constant 0 : i32
    return %c0_i32, %c0_i32_0 : i32, i32
  }
  func.func @transform_3(%arg0: i32) -> (i32, i32) {
    %c0_i32 = arith.constant 0 : i32
    %c0_i32_0 = arith.constant 0 : i32
    return %arg0, %c0_i32 : i32, i32
  }
}

module attributes {stable_mosaic.version = 11 : i64} {
  func.func @_mm_bias_kernel(%arg0: i32, %arg1: memref<32x128xbf16, #tpu.memory_space<vmem>>, %arg2: memref<128x8xbf16, #tpu.memory_space<vmem>>, %arg3: memref<1x8xf32, #tpu.memory_space<vmem>>, %arg4: memref<32x8xf32, #tpu.memory_space<vmem>>) attributes {dimension_semantics = [#tpu.dimension_semantics<parallel>], iteration_bounds = array<i64: 1>, scalar_prefetch = 0 : i64, scratch_operands = 0 : i64, tpu.core_type = #tpu.core_type<tc>, window_params = [{transform_indices = @transform_0, window_bounds = array<i64: 32, 128>}, {pipeline_mode = #tpu.pipeline_mode<synchronous>, transform_indices = @transform_1, window_bounds = array<i64: 128, 8>}, {pipeline_mode = #tpu.pipeline_mode<synchronous>, transform_indices = @transform_2, window_bounds = array<i64: 1, 8>}, {transform_indices = @transform_3, window_bounds = array<i64: 32, 8>}]} {
    %c0 = arith.constant 0 : index
    %c0_0 = arith.constant 0 : index
    %0 = vector.load %arg1[%c0, %c0_0] : memref<32x128xbf16, #tpu.memory_space<vmem>>, vector<32x128xbf16>
    %c0_1 = arith.constant 0 : index
    %c0_2 = arith.constant 0 : index
    %1 = vector.load %arg2[%c0_1, %c0_2] : memref<128x8xbf16, #tpu.memory_space<vmem>>, vector<128x8xbf16>
    %cst = arith.constant dense<0.000000e+00> : vector<32x8xf32>
    %2 = tpu.matmul %0, %1, %cst {dimension_numbers = #tpu.dot_dimension_numbers<[1], [0], [0], [1], [0, 0, 1, 1], [], []>} : vector<32x128xbf16>, vector<128x8xbf16>, vector<32x8xf32> -> vector<32x8xf32>
    %c0_3 = arith.constant 0 : index
    %c0_4 = arith.constant 0 : index
    %3 = vector.load %arg3[%c0_3, %c0_4] : memref<1x8xf32, #tpu.memory_space<vmem>>, vector<1x8xf32>
    %4 = vector.broadcast %3 : vector<1x8xf32> to vector<32x8xf32>
    %5 = arith.addf %2, %4 : vector<32x8xf32>
    %cst_5 = arith.constant 0.000000e+00 : f32
    %6 = vector.broadcast %cst_5 : f32 to vector<32x8xf32>
    %7 = arith.maximumf %5, %6 : vector<32x8xf32>
    %c0_6 = arith.constant 0 : index
    %c0_7 = arith.constant 0 : index
    %8 = vector.load %arg4[%c0_6, %c0_7] : memref<32x8xf32, #tpu.memory_space<vmem>>, vector<32x8xf32>
    tpu.vector_store %arg4[%c0_6, %c0_7], %7 {strides = array<i32>} : memref<32x8xf32, #tpu.memory_space<vmem>>, vector<32x8xf32>,
    return
  }
  func.func @transform_0(%arg0: i32) -> (i32, i32) {
    %c0_i32 = arith.constant 0 : i32
    %c0_i32_0 = arith.constant 0 : i32
    return %arg0, %c0_i32 : i32, i32
  }
  func.func @transform_1(%arg0: i32) -> (i32, i32) {
    %c0_i32 = arith.constant 0 : i32
    %c0_i32_0 = arith.constant 0 : i32
    %c0_i32_1 = arith.constant 0 : i32
    return %c0_i32, %c0_i32_0 : i32, i32
  }
  func.func @transform_2(%arg0: i32) -> (i32, i32) {
    %c0_i32 = arith.constant 0 : i32
    %c0_i32_0 = arith.constant 0 : i32
    %c0_i32_1 = arith.constant 0 : i32
    return %c0_i32, %c0_i32_0 : i32, i32
  }
  func.func @transform_3(%arg0: i32) -> (i32, i32) {
    %c0_i32 = arith.constant 0 : i32
    %c0_i32_0 = arith.constant 0 : i32
    return %arg0, %c0_i32 : i32, i32
  }
}

module attributes {stable_mosaic.version = 11 : i64} {
  func.func @_mm_bias_kernel(%arg0: i32, %arg1: memref<32x128xbf16, #tpu.memory_space<vmem>>, %arg2: memref<128x16xbf16, #tpu.memory_space<vmem>>, %arg3: memref<1x16xf32, #tpu.memory_space<vmem>>, %arg4: memref<32x16xf32, #tpu.memory_space<vmem>>) attributes {dimension_semantics = [#tpu.dimension_semantics<parallel>], iteration_bounds = array<i64: 1>, scalar_prefetch = 0 : i64, scratch_operands = 0 : i64, tpu.core_type = #tpu.core_type<tc>, window_params = [{transform_indices = @transform_0, window_bounds = array<i64: 32, 128>}, {pipeline_mode = #tpu.pipeline_mode<synchronous>, transform_indices = @transform_1, window_bounds = array<i64: 128, 16>}, {pipeline_mode = #tpu.pipeline_mode<synchronous>, transform_indices = @transform_2, window_bounds = array<i64: 1, 16>}, {transform_indices = @transform_3, window_bounds = array<i64: 32, 16>}]} {
    %c0 = arith.constant 0 : index
    %c0_0 = arith.constant 0 : index
    %0 = vector.load %arg1[%c0, %c0_0] : memref<32x128xbf16, #tpu.memory_space<vmem>>, vector<32x128xbf16>
    %c0_1 = arith.constant 0 : index
    %c0_2 = arith.constant 0 : index
    %1 = vector.load %arg2[%c0_1, %c0_2] : memref<128x16xbf16, #tpu.memory_space<vmem>>, vector<128x16xbf16>
    %cst = arith.constant dense<0.000000e+00> : vector<32x16xf32>
    %2 = tpu.matmul %0, %1, %cst {dimension_numbers = #tpu.dot_dimension_numbers<[1], [0], [0], [1], [0, 0, 1, 1], [], []>} : vector<32x128xbf16>, vector<128x16xbf16>, vector<32x16xf32> -> vector<32x16xf32>
    %c0_3 = arith.constant 0 : index
    %c0_4 = arith.constant 0 : index
    %3 = vector.load %arg3[%c0_3, %c0_4] : memref<1x16xf32, #tpu.memory_space<vmem>>, vector<1x16xf32>
    %4 = vector.broadcast %3 : vector<1x16xf32> to vector<32x16xf32>
    %5 = arith.addf %2, %4 : vector<32x16xf32>
    %cst_5 = arith.constant 0.000000e+00 : f32
    %6 = vector.broadcast %cst_5 : f32 to vector<32x16xf32>
    %7 = arith.maximumf %5, %6 : vector<32x16xf32>
    %c0_6 = arith.constant 0 : index
    %c0_7 = arith.constant 0 : index
    %8 = vector.load %arg4[%c0_6, %c0_7] : memref<32x16xf32, #tpu.memory_space<vmem>>, vector<32x16xf32>
    tpu.vector_store %arg4[%c0_6, %c0_7], %7 {strides = array<i32>} : memref<32x16xf32, #tpu.memory_space<vmem>>, vector<32x16xf32>,
    return
  }
  func.func @transform_0(%arg0: i32) -> (i32, i32) {
    %c0_i32 = arith.constant 0 : i32
    %c0_i32_0 = arith.constant 0 : i32
    return %arg0, %c0_i32 : i32, i32
  }
  func.func @transform_1(%arg0: i32) -> (i32, i32) {
    %c0_i32 = arith.constant 0 : i32
    %c0_i32_0 = arith.constant 0 : i32
    %c0_i32_1 = arith.constant 0 : i32
    return %c0_i32, %c0_i32_0 : i32, i32
  }
  func.func @transform_2(%arg0: i32) -> (i32, i32) {
    %c0_i32 = arith.constant 0 : i32
    %c0_i32_0 = arith.constant 0 : i32
    %c0_i32_1 = arith.constant 0 : i32
    return %c0_i32, %c0_i32_0 : i32, i32
  }
  func.func @transform_3(%arg0: i32) -> (i32, i32) {
    %c0_i32 = arith.constant 0 : i32
    %c0_i32_0 = arith.constant 0 : i32
    return %arg0, %c0_i32 : i32, i32
  }
}

module attributes {stable_mosaic.version = 11 : i64} {
  func.func @_mm_bias_kernel(%arg0: i32, %arg1: memref<16x128xbf16, #tpu.memory_space<vmem>>, %arg2: memref<128x8xbf16, #tpu.memory_space<vmem>>, %arg3: memref<1x8xf32, #tpu.memory_space<vmem>>, %arg4: memref<16x8xf32, #tpu.memory_space<vmem>>) attributes {dimension_semantics = [#tpu.dimension_semantics<parallel>], iteration_bounds = array<i64: 1>, scalar_prefetch = 0 : i64, scratch_operands = 0 : i64, tpu.core_type = #tpu.core_type<tc>, window_params = [{transform_indices = @transform_0, window_bounds = array<i64: 16, 128>}, {pipeline_mode = #tpu.pipeline_mode<synchronous>, transform_indices = @transform_1, window_bounds = array<i64: 128, 8>}, {pipeline_mode = #tpu.pipeline_mode<synchronous>, transform_indices = @transform_2, window_bounds = array<i64: 1, 8>}, {transform_indices = @transform_3, window_bounds = array<i64: 16, 8>}]} {
    %c0 = arith.constant 0 : index
    %c0_0 = arith.constant 0 : index
    %0 = vector.load %arg1[%c0, %c0_0] : memref<16x128xbf16, #tpu.memory_space<vmem>>, vector<16x128xbf16>
    %c0_1 = arith.constant 0 : index
    %c0_2 = arith.constant 0 : index
    %1 = vector.load %arg2[%c0_1, %c0_2] : memref<128x8xbf16, #tpu.memory_space<vmem>>, vector<128x8xbf16>
    %cst = arith.constant dense<0.000000e+00> : vector<16x8xf32>
    %2 = tpu.matmul %0, %1, %cst {dimension_numbers = #tpu.dot_dimension_numbers<[1], [0], [0], [1], [0, 0, 1, 1], [], []>} : vector<16x128xbf16>, vector<128x8xbf16>, vector<16x8xf32> -> vector<16x8xf32>
    %c0_3 = arith.constant 0 : index
    %c0_4 = arith.constant 0 : index
    %3 = vector.load %arg3[%c0_3, %c0_4] : memref<1x8xf32, #tpu.memory_space<vmem>>, vector<1x8xf32>
    %4 = vector.broadcast %3 : vector<1x8xf32> to vector<16x8xf32>
    %5 = arith.addf %2, %4 : vector<16x8xf32>
    %cst_5 = arith.constant 0.000000e+00 : f32
    %6 = vector.broadcast %cst_5 : f32 to vector<16x8xf32>
    %7 = arith.maximumf %5, %6 : vector<16x8xf32>
    %c0_6 = arith.constant 0 : index
    %c0_7 = arith.constant 0 : index
    %8 = vector.load %arg4[%c0_6, %c0_7] : memref<16x8xf32, #tpu.memory_space<vmem>>, vector<16x8xf32>
    tpu.vector_store %arg4[%c0_6, %c0_7], %7 {strides = array<i32>} : memref<16x8xf32, #tpu.memory_space<vmem>>, vector<16x8xf32>,
    return
  }
  func.func @transform_0(%arg0: i32) -> (i32, i32) {
    %c0_i32 = arith.constant 0 : i32
    %c0_i32_0 = arith.constant 0 : i32
    return %arg0, %c0_i32 : i32, i32
  }
  func.func @transform_1(%arg0: i32) -> (i32, i32) {
    %c0_i32 = arith.constant 0 : i32
    %c0_i32_0 = arith.constant 0 : i32
    %c0_i32_1 = arith.constant 0 : i32
    return %c0_i32, %c0_i32_0 : i32, i32
  }
  func.func @transform_2(%arg0: i32) -> (i32, i32) {
    %c0_i32 = arith.constant 0 : i32
    %c0_i32_0 = arith.constant 0 : i32
    %c0_i32_1 = arith.constant 0 : i32
    return %c0_i32, %c0_i32_0 : i32, i32
  }
  func.func @transform_3(%arg0: i32) -> (i32, i32) {
    %c0_i32 = arith.constant 0 : i32
    %c0_i32_0 = arith.constant 0 : i32
    return %arg0, %c0_i32 : i32, i32
  }
}

module attributes {stable_mosaic.version = 11 : i64} {
  func.func @_mm_bias_kernel(%arg0: i32, %arg1: memref<16x128xbf16, #tpu.memory_space<vmem>>, %arg2: memref<128x16xbf16, #tpu.memory_space<vmem>>, %arg3: memref<1x16xf32, #tpu.memory_space<vmem>>, %arg4: memref<16x16xf32, #tpu.memory_space<vmem>>) attributes {dimension_semantics = [#tpu.dimension_semantics<parallel>], iteration_bounds = array<i64: 1>, scalar_prefetch = 0 : i64, scratch_operands = 0 : i64, tpu.core_type = #tpu.core_type<tc>, window_params = [{transform_indices = @transform_0, window_bounds = array<i64: 16, 128>}, {pipeline_mode = #tpu.pipeline_mode<synchronous>, transform_indices = @transform_1, window_bounds = array<i64: 128, 16>}, {pipeline_mode = #tpu.pipeline_mode<synchronous>, transform_indices = @transform_2, window_bounds = array<i64: 1, 16>}, {transform_indices = @transform_3, window_bounds = array<i64: 16, 16>}]} {
    %c0 = arith.constant 0 : index
    %c0_0 = arith.constant 0 : index
    %0 = vector.load %arg1[%c0, %c0_0] : memref<16x128xbf16, #tpu.memory_space<vmem>>, vector<16x128xbf16>
    %c0_1 = arith.constant 0 : index
    %c0_2 = arith.constant 0 : index
    %1 = vector.load %arg2[%c0_1, %c0_2] : memref<128x16xbf16, #tpu.memory_space<vmem>>, vector<128x16xbf16>
    %cst = arith.constant dense<0.000000e+00> : vector<16x16xf32>
    %2 = tpu.matmul %0, %1, %cst {dimension_numbers = #tpu.dot_dimension_numbers<[1], [0], [0], [1], [0, 0, 1, 1], [], []>} : vector<16x128xbf16>, vector<128x16xbf16>, vector<16x16xf32> -> vector<16x16xf32>
    %c0_3 = arith.constant 0 : index
    %c0_4 = arith.constant 0 : index
    %3 = vector.load %arg3[%c0_3, %c0_4] : memref<1x16xf32, #tpu.memory_space<vmem>>, vector<1x16xf32>
    %4 = vector.broadcast %3 : vector<1x16xf32> to vector<16x16xf32>
    %5 = arith.addf %2, %4 : vector<16x16xf32>
    %cst_5 = arith.constant 0.000000e+00 : f32
    %6 = vector.broadcast %cst_5 : f32 to vector<16x16xf32>
    %7 = arith.maximumf %5, %6 : vector<16x16xf32>
    %c0_6 = arith.constant 0 : index
    %c0_7 = arith.constant 0 : index
    %8 = vector.load %arg4[%c0_6, %c0_7] : memref<16x16xf32, #tpu.memory_space<vmem>>, vector<16x16xf32>
    tpu.vector_store %arg4[%c0_6, %c0_7], %7 {strides = array<i32>} : memref<16x16xf32, #tpu.memory_space<vmem>>, vector<16x16xf32>,
    return
  }
  func.func @transform_0(%arg0: i32) -> (i32, i32) {
    %c0_i32 = arith.constant 0 : i32
    %c0_i32_0 = arith.constant 0 : i32
    return %arg0, %c0_i32 : i32, i32
  }
  func.func @transform_1(%arg0: i32) -> (i32, i32) {
    %c0_i32 = arith.constant 0 : i32
    %c0_i32_0 = arith.constant 0 : i32
    %c0_i32_1 = arith.constant 0 : i32
    return %c0_i32, %c0_i32_0 : i32, i32
  }
  func.func @transform_2(%arg0: i32) -> (i32, i32) {
    %c0_i32 = arith.constant 0 : i32
    %c0_i32_0 = arith.constant 0 : i32
    %c0_i32_1 = arith.constant 0 : i32
    return %c0_i32, %c0_i32_0 : i32, i32
  }
  func.func @transform_3(%arg0: i32) -> (i32, i32) {
    %c0_i32 = arith.constant 0 : i32
    %c0_i32_0 = arith.constant 0 : i32
    return %arg0, %c0_i32 : i32, i32
  }
}

module attributes {stable_mosaic.version = 11 : i64} {
  func.func @_mm_bias_kernel(%arg0: i32, %arg1: memref<16x128xbf16, #tpu.memory_space<vmem>>, %arg2: memref<128x16xbf16, #tpu.memory_space<vmem>>, %arg3: memref<1x16xf32, #tpu.memory_space<vmem>>, %arg4: memref<16x16xf32, #tpu.memory_space<vmem>>) attributes {dimension_semantics = [#tpu.dimension_semantics<parallel>], iteration_bounds = array<i64: 1>, scalar_prefetch = 0 : i64, scratch_operands = 0 : i64, tpu.core_type = #tpu.core_type<tc>, window_params = [{transform_indices = @transform_0, window_bounds = array<i64: 16, 128>}, {pipeline_mode = #tpu.pipeline_mode<synchronous>, transform_indices = @transform_1, window_bounds = array<i64: 128, 16>}, {pipeline_mode = #tpu.pipeline_mode<synchronous>, transform_indices = @transform_2, window_bounds = array<i64: 1, 16>}, {transform_indices = @transform_3, window_bounds = array<i64: 16, 16>}]} {
    %c0 = arith.constant 0 : index
    %c0_0 = arith.constant 0 : index
    %0 = vector.load %arg1[%c0, %c0_0] : memref<16x128xbf16, #tpu.memory_space<vmem>>, vector<16x128xbf16>
    %c0_1 = arith.constant 0 : index
    %c0_2 = arith.constant 0 : index
    %1 = vector.load %arg2[%c0_1, %c0_2] : memref<128x16xbf16, #tpu.memory_space<vmem>>, vector<128x16xbf16>
    %cst = arith.constant dense<0.000000e+00> : vector<16x16xf32>
    %2 = tpu.matmul %0, %1, %cst {dimension_numbers = #tpu.dot_dimension_numbers<[1], [0], [0], [1], [0, 0, 1, 1], [], []>} : vector<16x128xbf16>, vector<128x16xbf16>, vector<16x16xf32> -> vector<16x16xf32>
    %c0_3 = arith.constant 0 : index
    %c0_4 = arith.constant 0 : index
    %3 = vector.load %arg3[%c0_3, %c0_4] : memref<1x16xf32, #tpu.memory_space<vmem>>, vector<1x16xf32>
    %4 = vector.broadcast %3 : vector<1x16xf32> to vector<16x16xf32>
    %5 = arith.addf %2, %4 : vector<16x16xf32>
    %cst_5 = arith.constant 0.000000e+00 : f32
    %6 = vector.broadcast %cst_5 : f32 to vector<16x16xf32>
    %7 = arith.maximumf %5, %6 : vector<16x16xf32>
    %c0_6 = arith.constant 0 : index
    %c0_7 = arith.constant 0 : index
    %8 = vector.load %arg4[%c0_6, %c0_7] : memref<16x16xf32, #tpu.memory_space<vmem>>, vector<16x16xf32>
    tpu.vector_store %arg4[%c0_6, %c0_7], %7 {strides = array<i32>} : memref<16x16xf32, #tpu.memory_space<vmem>>, vector<16x16xf32>,
    return
  }
  func.func @transform_0(%arg0: i32) -> (i32, i32) {
    %c0_i32 = arith.constant 0 : i32
    %c0_i32_0 = arith.constant 0 : i32
    return %arg0, %c0_i32 : i32, i32
  }
  func.func @transform_1(%arg0: i32) -> (i32, i32) {
    %c0_i32 = arith.constant 0 : i32
    %c0_i32_0 = arith.constant 0 : i32
    %c0_i32_1 = arith.constant 0 : i32
    return %c0_i32, %c0_i32_0 : i32, i32
  }
  func.func @transform_2(%arg0: i32) -> (i32, i32) {
    %c0_i32 = arith.constant 0 : i32
    %c0_i32_0 = arith.constant 0 : i32
    %c0_i32_1 = arith.constant 0 : i32
    return %c0_i32, %c0_i32_0 : i32, i32
  }
  func.func @transform_3(%arg0: i32) -> (i32, i32) {
    %c0_i32 = arith.constant 0 : i32
    %c0_i32_0 = arith.constant 0 : i32
    return %arg0, %c0_i32 : i32, i32
  }
}

module attributes {stable_mosaic.version = 11 : i64} {
  func.func @_mm_bias_kernel(%arg0: i32, %arg1: memref<16x128xbf16, #tpu.memory_space<vmem>>, %arg2: memref<128x64xbf16, #tpu.memory_space<vmem>>, %arg3: memref<1x64xf32, #tpu.memory_space<vmem>>, %arg4: memref<16x64xf32, #tpu.memory_space<vmem>>) attributes {dimension_semantics = [#tpu.dimension_semantics<parallel>], iteration_bounds = array<i64: 1>, scalar_prefetch = 0 : i64, scratch_operands = 0 : i64, tpu.core_type = #tpu.core_type<tc>, window_params = [{transform_indices = @transform_0, window_bounds = array<i64: 16, 128>}, {pipeline_mode = #tpu.pipeline_mode<synchronous>, transform_indices = @transform_1, window_bounds = array<i64: 128, 64>}, {pipeline_mode = #tpu.pipeline_mode<synchronous>, transform_indices = @transform_2, window_bounds = array<i64: 1, 64>}, {transform_indices = @transform_3, window_bounds = array<i64: 16, 64>}]} {
    %c0 = arith.constant 0 : index
    %c0_0 = arith.constant 0 : index
    %0 = vector.load %arg1[%c0, %c0_0] : memref<16x128xbf16, #tpu.memory_space<vmem>>, vector<16x128xbf16>
    %c0_1 = arith.constant 0 : index
    %c0_2 = arith.constant 0 : index
    %1 = vector.load %arg2[%c0_1, %c0_2] : memref<128x64xbf16, #tpu.memory_space<vmem>>, vector<128x64xbf16>
    %cst = arith.constant dense<0.000000e+00> : vector<16x64xf32>
    %2 = tpu.matmul %0, %1, %cst {dimension_numbers = #tpu.dot_dimension_numbers<[1], [0], [0], [1], [0, 0, 1, 1], [], []>} : vector<16x128xbf16>, vector<128x64xbf16>, vector<16x64xf32> -> vector<16x64xf32>
    %c0_3 = arith.constant 0 : index
    %c0_4 = arith.constant 0 : index
    %3 = vector.load %arg3[%c0_3, %c0_4] : memref<1x64xf32, #tpu.memory_space<vmem>>, vector<1x64xf32>
    %4 = vector.broadcast %3 : vector<1x64xf32> to vector<16x64xf32>
    %5 = arith.addf %2, %4 : vector<16x64xf32>
    %c0_5 = arith.constant 0 : index
    %c0_6 = arith.constant 0 : index
    %6 = vector.load %arg4[%c0_5, %c0_6] : memref<16x64xf32, #tpu.memory_space<vmem>>, vector<16x64xf32>
    tpu.vector_store %arg4[%c0_5, %c0_6], %5 {strides = array<i32>} : memref<16x64xf32, #tpu.memory_space<vmem>>, vector<16x64xf32>,
    return
  }
  func.func @transform_0(%arg0: i32) -> (i32, i32) {
    %c0_i32 = arith.constant 0 : i32
    %c0_i32_0 = arith.constant 0 : i32
    return %arg0, %c0_i32 : i32, i32
  }
  func.func @transform_1(%arg0: i32) -> (i32, i32) {
    %c0_i32 = arith.constant 0 : i32
    %c0_i32_0 = arith.constant 0 : i32
    %c0_i32_1 = arith.constant 0 : i32
    return %c0_i32, %c0_i32_0 : i32, i32
  }
  func.func @transform_2(%arg0: i32) -> (i32, i32) {
    %c0_i32 = arith.constant 0 : i32
    %c0_i32_0 = arith.constant 0 : i32
    %c0_i32_1 = arith.constant 0 : i32
    return %c0_i32, %c0_i32_0 : i32, i32
  }
  func.func @transform_3(%arg0: i32) -> (i32, i32) {
    %c0_i32 = arith.constant 0 : i32
    %c0_i32_0 = arith.constant 0 : i32
    return %arg0, %c0_i32 : i32, i32
  }
}

module attributes {stable_mosaic.version = 11 : i64} {
  func.func @_mm_bias_mul_relu_kernel(%arg0: i32, %arg1: memref<16x256xbf16, #tpu.memory_space<vmem>>, %arg2: memref<256x16xbf16, #tpu.memory_space<vmem>>, %arg3: memref<1x16xf32, #tpu.memory_space<vmem>>, %arg4: memref<16x16xf32, #tpu.memory_space<vmem>>, %arg5: memref<16x16xf32, #tpu.memory_space<vmem>>) attributes {dimension_semantics = [#tpu.dimension_semantics<parallel>], iteration_bounds = array<i64: 1>, scalar_prefetch = 0 : i64, scratch_operands = 0 : i64, tpu.core_type = #tpu.core_type<tc>, window_params = [{transform_indices = @transform_0, window_bounds = array<i64: 16, 256>}, {pipeline_mode = #tpu.pipeline_mode<synchronous>, transform_indices = @transform_1, window_bounds = array<i64: 256, 16>}, {pipeline_mode = #tpu.pipeline_mode<synchronous>, transform_indices = @transform_2, window_bounds = array<i64: 1, 16>}, {transform_indices = @transform_3, window_bounds = array<i64: 16, 16>}, {transform_indices = @transform_4, window_bounds = array<i64: 16, 16>}]} {
    %c0 = arith.constant 0 : index
    %c0_0 = arith.constant 0 : index
    %0 = vector.load %arg1[%c0, %c0_0] : memref<16x256xbf16, #tpu.memory_space<vmem>>, vector<16x256xbf16>
    %c0_1 = arith.constant 0 : index
    %c0_2 = arith.constant 0 : index
    %1 = vector.load %arg2[%c0_1, %c0_2] : memref<256x16xbf16, #tpu.memory_space<vmem>>, vector<256x16xbf16>
    %cst = arith.constant dense<0.000000e+00> : vector<16x16xf32>
    %2 = tpu.matmul %0, %1, %cst {dimension_numbers = #tpu.dot_dimension_numbers<[1], [0], [0], [1], [0, 0, 1, 1], [], []>} : vector<16x256xbf16>, vector<256x16xbf16>, vector<16x16xf32> -> vector<16x16xf32>
    %c0_3 = arith.constant 0 : index
    %c0_4 = arith.constant 0 : index
    %3 = vector.load %arg3[%c0_3, %c0_4] : memref<1x16xf32, #tpu.memory_space<vmem>>, vector<1x16xf32>
    %4 = vector.broadcast %3 : vector<1x16xf32> to vector<16x16xf32>
    %5 = arith.addf %2, %4 : vector<16x16xf32>
    %c0_5 = arith.constant 0 : index
    %c0_6 = arith.constant 0 : index
    %6 = vector.load %arg4[%c0_5, %c0_6] : memref<16x16xf32, #tpu.memory_space<vmem>>, vector<16x16xf32>
    %7 = arith.mulf %5, %6 : vector<16x16xf32>
    %cst_7 = arith.constant 0.000000e+00 : f32
    %8 = vector.broadcast %cst_7 : f32 to vector<16x16xf32>
    %9 = arith.maximumf %7, %8 : vector<16x16xf32>
    %c0_8 = arith.constant 0 : index
    %c0_9 = arith.constant 0 : index
    %10 = vector.load %arg5[%c0_8, %c0_9] : memref<16x16xf32, #tpu.memory_space<vmem>>, vector<16x16xf32>
    tpu.vector_store %arg5[%c0_8, %c0_9], %9 {strides = array<i32>} : memref<16x16xf32, #tpu.memory_space<vmem>>, vector<16x16xf32>,
    return
  }
  func.func @transform_0(%arg0: i32) -> (i32, i32) {
    %c0_i32 = arith.constant 0 : i32
    %c0_i32_0 = arith.constant 0 : i32
    return %arg0, %c0_i32 : i32, i32
  }
  func.func @transform_1(%arg0: i32) -> (i32, i32) {
    %c0_i32 = arith.constant 0 : i32
    %c0_i32_0 = arith.constant 0 : i32
    %c0_i32_1 = arith.constant 0 : i32
    return %c0_i32, %c0_i32_0 : i32, i32
  }
  func.func @transform_2(%arg0: i32) -> (i32, i32) {
    %c0_i32 = arith.constant 0 : i32
    %c0_i32_0 = arith.constant 0 : i32
    %c0_i32_1 = arith.constant 0 : i32
    return %c0_i32, %c0_i32_0 : i32, i32
  }
  func.func @transform_3(%arg0: i32) -> (i32, i32) {
    %c0_i32 = arith.constant 0 : i32
    %c0_i32_0 = arith.constant 0 : i32
    return %arg0, %c0_i32 : i32, i32
  }
  func.func @transform_4(%arg0: i32) -> (i32, i32) {
    %c0_i32 = arith.constant 0 : i32
    %c0_i32_0 = arith.constant 0 : i32
    return %arg0, %c0_i32 : i32, i32
  }
}

module attributes {stable_mosaic.version = 11 : i64} {
  func.func @_mm_bias_kernel(%arg0: i32, %arg1: memref<16x256xbf16, #tpu.memory_space<vmem>>, %arg2: memref<256x20xbf16, #tpu.memory_space<vmem>>, %arg3: memref<1x20xf32, #tpu.memory_space<vmem>>, %arg4: memref<16x20xf32, #tpu.memory_space<vmem>>) attributes {dimension_semantics = [#tpu.dimension_semantics<parallel>], iteration_bounds = array<i64: 1>, scalar_prefetch = 0 : i64, scratch_operands = 0 : i64, tpu.core_type = #tpu.core_type<tc>, window_params = [{transform_indices = @transform_0, window_bounds = array<i64: 16, 256>}, {pipeline_mode = #tpu.pipeline_mode<synchronous>, transform_indices = @transform_1, window_bounds = array<i64: 256, 20>}, {pipeline_mode = #tpu.pipeline_mode<synchronous>, transform_indices = @transform_2, window_bounds = array<i64: 1, 20>}, {transform_indices = @transform_3, window_bounds = array<i64: 16, 20>}]} {
    %c0 = arith.constant 0 : index
    %c0_0 = arith.constant 0 : index
    %0 = vector.load %arg1[%c0, %c0_0] : memref<16x256xbf16, #tpu.memory_space<vmem>>, vector<16x256xbf16>
    %c0_1 = arith.constant 0 : index
    %c0_2 = arith.constant 0 : index
    %1 = vector.load %arg2[%c0_1, %c0_2] : memref<256x20xbf16, #tpu.memory_space<vmem>>, vector<256x20xbf16>
    %cst = arith.constant dense<0.000000e+00> : vector<16x20xf32>
    %2 = tpu.matmul %0, %1, %cst {dimension_numbers = #tpu.dot_dimension_numbers<[1], [0], [0], [1], [0, 0, 1, 1], [], []>} : vector<16x256xbf16>, vector<256x20xbf16>, vector<16x20xf32> -> vector<16x20xf32>
    %c0_3 = arith.constant 0 : index
    %c0_4 = arith.constant 0 : index
    %3 = vector.load %arg3[%c0_3, %c0_4] : memref<1x20xf32, #tpu.memory_space<vmem>>, vector<1x20xf32>
    %4 = vector.broadcast %3 : vector<1x20xf32> to vector<16x20xf32>
    %5 = arith.addf %2, %4 : vector<16x20xf32>
    %c0_5 = arith.constant 0 : index
    %c0_6 = arith.constant 0 : index
    %6 = vector.load %arg4[%c0_5, %c0_6] : memref<16x20xf32, #tpu.memory_space<vmem>>, vector<16x20xf32>
    tpu.vector_store %arg4[%c0_5, %c0_6], %5 {strides = array<i32>} : memref<16x20xf32, #tpu.memory_space<vmem>>, vector<16x20xf32>,
    return
  }
  func.func @transform_0(%arg0: i32) -> (i32, i32) {
    %c0_i32 = arith.constant 0 : i32
    %c0_i32_0 = arith.constant 0 : i32
    return %arg0, %c0_i32 : i32, i32
  }
  func.func @transform_1(%arg0: i32) -> (i32, i32) {
    %c0_i32 = arith.constant 0 : i32
    %c0_i32_0 = arith.constant 0 : i32
    %c0_i32_1 = arith.constant 0 : i32
    return %c0_i32, %c0_i32_0 : i32, i32
  }
  func.func @transform_2(%arg0: i32) -> (i32, i32) {
    %c0_i32 = arith.constant 0 : i32
    %c0_i32_0 = arith.constant 0 : i32
    %c0_i32_1 = arith.constant 0 : i32
    return %c0_i32, %c0_i32_0 : i32, i32
  }
  func.func @transform_3(%arg0: i32) -> (i32, i32) {
    %c0_i32 = arith.constant 0 : i32
    %c0_i32_0 = arith.constant 0 : i32
    return %arg0, %c0_i32 : i32, i32
  }
}

module attributes {stable_mosaic.version = 11 : i64} {
  func.func @_mm_bias_kernel(%arg0: i32, %arg1: memref<16x128xbf16, #tpu.memory_space<vmem>>, %arg2: memref<128x64xbf16, #tpu.memory_space<vmem>>, %arg3: memref<1x64xf32, #tpu.memory_space<vmem>>, %arg4: memref<16x64xf32, #tpu.memory_space<vmem>>) attributes {dimension_semantics = [#tpu.dimension_semantics<parallel>], iteration_bounds = array<i64: 1>, scalar_prefetch = 0 : i64, scratch_operands = 0 : i64, tpu.core_type = #tpu.core_type<tc>, window_params = [{transform_indices = @transform_0, window_bounds = array<i64: 16, 128>}, {pipeline_mode = #tpu.pipeline_mode<synchronous>, transform_indices = @transform_1, window_bounds = array<i64: 128, 64>}, {pipeline_mode = #tpu.pipeline_mode<synchronous>, transform_indices = @transform_2, window_bounds = array<i64: 1, 64>}, {transform_indices = @transform_3, window_bounds = array<i64: 16, 64>}]} {
    %c0 = arith.constant 0 : index
    %c0_0 = arith.constant 0 : index
    %0 = vector.load %arg1[%c0, %c0_0] : memref<16x128xbf16, #tpu.memory_space<vmem>>, vector<16x128xbf16>
    %c0_1 = arith.constant 0 : index
    %c0_2 = arith.constant 0 : index
    %1 = vector.load %arg2[%c0_1, %c0_2] : memref<128x64xbf16, #tpu.memory_space<vmem>>, vector<128x64xbf16>
    %cst = arith.constant dense<0.000000e+00> : vector<16x64xf32>
    %2 = tpu.matmul %0, %1, %cst {dimension_numbers = #tpu.dot_dimension_numbers<[1], [0], [0], [1], [0, 0, 1, 1], [], []>} : vector<16x128xbf16>, vector<128x64xbf16>, vector<16x64xf32> -> vector<16x64xf32>
    %c0_3 = arith.constant 0 : index
    %c0_4 = arith.constant 0 : index
    %3 = vector.load %arg3[%c0_3, %c0_4] : memref<1x64xf32, #tpu.memory_space<vmem>>, vector<1x64xf32>
    %4 = vector.broadcast %3 : vector<1x64xf32> to vector<16x64xf32>
    %5 = arith.addf %2, %4 : vector<16x64xf32>
    %c0_5 = arith.constant 0 : index
    %c0_6 = arith.constant 0 : index
    %6 = vector.load %arg4[%c0_5, %c0_6] : memref<16x64xf32, #tpu.memory_space<vmem>>, vector<16x64xf32>
    tpu.vector_store %arg4[%c0_5, %c0_6], %5 {strides = array<i32>} : memref<16x64xf32, #tpu.memory_space<vmem>>, vector<16x64xf32>,
    return
  }
  func.func @transform_0(%arg0: i32) -> (i32, i32) {
    %c0_i32 = arith.constant 0 : i32
    %c0_i32_0 = arith.constant 0 : i32
    return %arg0, %c0_i32 : i32, i32
  }
  func.func @transform_1(%arg0: i32) -> (i32, i32) {
    %c0_i32 = arith.constant 0 : i32
    %c0_i32_0 = arith.constant 0 : i32
    %c0_i32_1 = arith.constant 0 : i32
    return %c0_i32, %c0_i32_0 : i32, i32
  }
  func.func @transform_2(%arg0: i32) -> (i32, i32) {
    %c0_i32 = arith.constant 0 : i32
    %c0_i32_0 = arith.constant 0 : i32
    %c0_i32_1 = arith.constant 0 : i32
    return %c0_i32, %c0_i32_0 : i32, i32
  }
  func.func @transform_3(%arg0: i32) -> (i32, i32) {
    %c0_i32 = arith.constant 0 : i32
    %c0_i32_0 = arith.constant 0 : i32
    return %arg0, %c0_i32 : i32, i32
  }
}

module attributes {stable_mosaic.version = 11 : i64} {
  func.func @_mm_bias_mul_relu_kernel(%arg0: i32, %arg1: memref<32x256xbf16, #tpu.memory_space<vmem>>, %arg2: memref<256x16xbf16, #tpu.memory_space<vmem>>, %arg3: memref<1x16xf32, #tpu.memory_space<vmem>>, %arg4: memref<32x16xf32, #tpu.memory_space<vmem>>, %arg5: memref<32x16xf32, #tpu.memory_space<vmem>>) attributes {dimension_semantics = [#tpu.dimension_semantics<parallel>], iteration_bounds = array<i64: 1>, scalar_prefetch = 0 : i64, scratch_operands = 0 : i64, tpu.core_type = #tpu.core_type<tc>, window_params = [{transform_indices = @transform_0, window_bounds = array<i64: 32, 256>}, {pipeline_mode = #tpu.pipeline_mode<synchronous>, transform_indices = @transform_1, window_bounds = array<i64: 256, 16>}, {pipeline_mode = #tpu.pipeline_mode<synchronous>, transform_indices = @transform_2, window_bounds = array<i64: 1, 16>}, {transform_indices = @transform_3, window_bounds = array<i64: 32, 16>}, {transform_indices = @transform_4, window_bounds = array<i64: 32, 16>}]} {
    %c0 = arith.constant 0 : index
    %c0_0 = arith.constant 0 : index
    %0 = vector.load %arg1[%c0, %c0_0] : memref<32x256xbf16, #tpu.memory_space<vmem>>, vector<32x256xbf16>
    %c0_1 = arith.constant 0 : index
    %c0_2 = arith.constant 0 : index
    %1 = vector.load %arg2[%c0_1, %c0_2] : memref<256x16xbf16, #tpu.memory_space<vmem>>, vector<256x16xbf16>
    %cst = arith.constant dense<0.000000e+00> : vector<32x16xf32>
    %2 = tpu.matmul %0, %1, %cst {dimension_numbers = #tpu.dot_dimension_numbers<[1], [0], [0], [1], [0, 0, 1, 1], [], []>} : vector<32x256xbf16>, vector<256x16xbf16>, vector<32x16xf32> -> vector<32x16xf32>
    %c0_3 = arith.constant 0 : index
    %c0_4 = arith.constant 0 : index
    %3 = vector.load %arg3[%c0_3, %c0_4] : memref<1x16xf32, #tpu.memory_space<vmem>>, vector<1x16xf32>
    %4 = vector.broadcast %3 : vector<1x16xf32> to vector<32x16xf32>
    %5 = arith.addf %2, %4 : vector<32x16xf32>
    %c0_5 = arith.constant 0 : index
    %c0_6 = arith.constant 0 : index
    %6 = vector.load %arg4[%c0_5, %c0_6] : memref<32x16xf32, #tpu.memory_space<vmem>>, vector<32x16xf32>
    %7 = arith.mulf %5, %6 : vector<32x16xf32>
    %cst_7 = arith.constant 0.000000e+00 : f32
    %8 = vector.broadcast %cst_7 : f32 to vector<32x16xf32>
    %9 = arith.maximumf %7, %8 : vector<32x16xf32>
    %c0_8 = arith.constant 0 : index
    %c0_9 = arith.constant 0 : index
    %10 = vector.load %arg5[%c0_8, %c0_9] : memref<32x16xf32, #tpu.memory_space<vmem>>, vector<32x16xf32>
    tpu.vector_store %arg5[%c0_8, %c0_9], %9 {strides = array<i32>} : memref<32x16xf32, #tpu.memory_space<vmem>>, vector<32x16xf32>,
    return
  }
  func.func @transform_0(%arg0: i32) -> (i32, i32) {
    %c0_i32 = arith.constant 0 : i32
    %c0_i32_0 = arith.constant 0 : i32
    return %arg0, %c0_i32 : i32, i32
  }
  func.func @transform_1(%arg0: i32) -> (i32, i32) {
    %c0_i32 = arith.constant 0 : i32
    %c0_i32_0 = arith.constant 0 : i32
    %c0_i32_1 = arith.constant 0 : i32
    return %c0_i32, %c0_i32_0 : i32, i32
  }
  func.func @transform_2(%arg0: i32) -> (i32, i32) {
    %c0_i32 = arith.constant 0 : i32
    %c0_i32_0 = arith.constant 0 : i32
    %c0_i32_1 = arith.constant 0 : i32
    return %c0_i32, %c0_i32_0 : i32, i32
  }
  func.func @transform_3(%arg0: i32) -> (i32, i32) {
    %c0_i32 = arith.constant 0 : i32
    %c0_i32_0 = arith.constant 0 : i32
    return %arg0, %c0_i32 : i32, i32
  }
  func.func @transform_4(%arg0: i32) -> (i32, i32) {
    %c0_i32 = arith.constant 0 : i32
    %c0_i32_0 = arith.constant 0 : i32
    return %arg0, %c0_i32 : i32, i32
  }
}

module attributes {stable_mosaic.version = 11 : i64} {
  func.func @_mm_bias_kernel(%arg0: i32, %arg1: memref<32x256xbf16, #tpu.memory_space<vmem>>, %arg2: memref<256x20xbf16, #tpu.memory_space<vmem>>, %arg3: memref<1x20xf32, #tpu.memory_space<vmem>>, %arg4: memref<32x20xf32, #tpu.memory_space<vmem>>) attributes {dimension_semantics = [#tpu.dimension_semantics<parallel>], iteration_bounds = array<i64: 1>, scalar_prefetch = 0 : i64, scratch_operands = 0 : i64, tpu.core_type = #tpu.core_type<tc>, window_params = [{transform_indices = @transform_0, window_bounds = array<i64: 32, 256>}, {pipeline_mode = #tpu.pipeline_mode<synchronous>, transform_indices = @transform_1, window_bounds = array<i64: 256, 20>}, {pipeline_mode = #tpu.pipeline_mode<synchronous>, transform_indices = @transform_2, window_bounds = array<i64: 1, 20>}, {transform_indices = @transform_3, window_bounds = array<i64: 32, 20>}]} {
    %c0 = arith.constant 0 : index
    %c0_0 = arith.constant 0 : index
    %0 = vector.load %arg1[%c0, %c0_0] : memref<32x256xbf16, #tpu.memory_space<vmem>>, vector<32x256xbf16>
    %c0_1 = arith.constant 0 : index
    %c0_2 = arith.constant 0 : index
    %1 = vector.load %arg2[%c0_1, %c0_2] : memref<256x20xbf16, #tpu.memory_space<vmem>>, vector<256x20xbf16>
    %cst = arith.constant dense<0.000000e+00> : vector<32x20xf32>
    %2 = tpu.matmul %0, %1, %cst {dimension_numbers = #tpu.dot_dimension_numbers<[1], [0], [0], [1], [0, 0, 1, 1], [], []>} : vector<32x256xbf16>, vector<256x20xbf16>, vector<32x20xf32> -> vector<32x20xf32>
    %c0_3 = arith.constant 0 : index
    %c0_4 = arith.constant 0 : index
    %3 = vector.load %arg3[%c0_3, %c0_4] : memref<1x20xf32, #tpu.memory_space<vmem>>, vector<1x20xf32>
    %4 = vector.broadcast %3 : vector<1x20xf32> to vector<32x20xf32>
    %5 = arith.addf %2, %4 : vector<32x20xf32>
    %c0_5 = arith.constant 0 : index
    %c0_6 = arith.constant 0 : index
    %6 = vector.load %arg4[%c0_5, %c0_6] : memref<32x20xf32, #tpu.memory_space<vmem>>, vector<32x20xf32>
    tpu.vector_store %arg4[%c0_5, %c0_6], %5 {strides = array<i32>} : memref<32x20xf32, #tpu.memory_space<vmem>>, vector<32x20xf32>,
    return
  }
  func.func @transform_0(%arg0: i32) -> (i32, i32) {
    %c0_i32 = arith.constant 0 : i32
    %c0_i32_0 = arith.constant 0 : i32
    return %arg0, %c0_i32 : i32, i32
  }
  func.func @transform_1(%arg0: i32) -> (i32, i32) {
    %c0_i32 = arith.constant 0 : i32
    %c0_i32_0 = arith.constant 0 : i32
    %c0_i32_1 = arith.constant 0 : i32
    return %c0_i32, %c0_i32_0 : i32, i32
  }
  func.func @transform_2(%arg0: i32) -> (i32, i32) {
    %c0_i32 = arith.constant 0 : i32
    %c0_i32_0 = arith.constant 0 : i32
    %c0_i32_1 = arith.constant 0 : i32
    return %c0_i32, %c0_i32_0 : i32, i32
  }
  func.func @transform_3(%arg0: i32) -> (i32, i32) {
    %c0_i32 = arith.constant 0 : i32
    %c0_i32_0 = arith.constant 0 : i32
    return %arg0, %c0_i32 : i32, i32
  }
}

module attributes {stable_mosaic.version = 11 : i64} {
  func.func @_mm_bias_kernel(%arg0: i32, %arg1: memref<32x128xbf16, #tpu.memory_space<vmem>>, %arg2: memref<128x64xbf16, #tpu.memory_space<vmem>>, %arg3: memref<1x64xf32, #tpu.memory_space<vmem>>, %arg4: memref<32x64xf32, #tpu.memory_space<vmem>>) attributes {dimension_semantics = [#tpu.dimension_semantics<parallel>], iteration_bounds = array<i64: 1>, scalar_prefetch = 0 : i64, scratch_operands = 0 : i64, tpu.core_type = #tpu.core_type<tc>, window_params = [{transform_indices = @transform_0, window_bounds = array<i64: 32, 128>}, {pipeline_mode = #tpu.pipeline_mode<synchronous>, transform_indices = @transform_1, window_bounds = array<i64: 128, 64>}, {pipeline_mode = #tpu.pipeline_mode<synchronous>, transform_indices = @transform_2, window_bounds = array<i64: 1, 64>}, {transform_indices = @transform_3, window_bounds = array<i64: 32, 64>}]} {
    %c0 = arith.constant 0 : index
    %c0_0 = arith.constant 0 : index
    %0 = vector.load %arg1[%c0, %c0_0] : memref<32x128xbf16, #tpu.memory_space<vmem>>, vector<32x128xbf16>
    %c0_1 = arith.constant 0 : index
    %c0_2 = arith.constant 0 : index
    %1 = vector.load %arg2[%c0_1, %c0_2] : memref<128x64xbf16, #tpu.memory_space<vmem>>, vector<128x64xbf16>
    %cst = arith.constant dense<0.000000e+00> : vector<32x64xf32>
    %2 = tpu.matmul %0, %1, %cst {dimension_numbers = #tpu.dot_dimension_numbers<[1], [0], [0], [1], [0, 0, 1, 1], [], []>} : vector<32x128xbf16>, vector<128x64xbf16>, vector<32x64xf32> -> vector<32x64xf32>
    %c0_3 = arith.constant 0 : index
    %c0_4 = arith.constant 0 : index
    %3 = vector.load %arg3[%c0_3, %c0_4] : memref<1x64xf32, #tpu.memory_space<vmem>>, vector<1x64xf32>
    %4 = vector.broadcast %3 : vector<1x64xf32> to vector<32x64xf32>
    %5 = arith.addf %2, %4 : vector<32x64xf32>
    %c0_5 = arith.constant 0 : index
    %c0_6 = arith.constant 0 : index
    %6 = vector.load %arg4[%c0_5, %c0_6] : memref<32x64xf32, #tpu.memory_space<vmem>>, vector<32x64xf32>
    tpu.vector_store %arg4[%c0_5, %c0_6], %5 {strides = array<i32>} : memref<32x64xf32, #tpu.memory_space<vmem>>, vector<32x64xf32>,
    return
  }
  func.func @transform_0(%arg0: i32) -> (i32, i32) {
    %c0_i32 = arith.constant 0 : i32
    %c0_i32_0 = arith.constant 0 : i32
    return %arg0, %c0_i32 : i32, i32
  }
  func.func @transform_1(%arg0: i32) -> (i32, i32) {
    %c0_i32 = arith.constant 0 : i32
    %c0_i32_0 = arith.constant 0 : i32
    %c0_i32_1 = arith.constant 0 : i32
    return %c0_i32, %c0_i32_0 : i32, i32
  }
  func.func @transform_2(%arg0: i32) -> (i32, i32) {
    %c0_i32 = arith.constant 0 : i32
    %c0_i32_0 = arith.constant 0 : i32
    %c0_i32_1 = arith.constant 0 : i32
    return %c0_i32, %c0_i32_0 : i32, i32
  }
  func.func @transform_3(%arg0: i32) -> (i32, i32) {
    %c0_i32 = arith.constant 0 : i32
    %c0_i32_0 = arith.constant 0 : i32
    return %arg0, %c0_i32 : i32, i32
  }
}

module attributes {stable_mosaic.version = 11 : i64} {
  func.func @_mm_bias_mul_relu_kernel(%arg0: i32, %arg1: memref<128x128xbf16, #tpu.memory_space<vmem>>, %arg2: memref<128x16xbf16, #tpu.memory_space<vmem>>, %arg3: memref<1x16xf32, #tpu.memory_space<vmem>>, %arg4: memref<128x16xf32, #tpu.memory_space<vmem>>, %arg5: memref<128x16xf32, #tpu.memory_space<vmem>>) attributes {dimension_semantics = [#tpu.dimension_semantics<parallel>], iteration_bounds = array<i64: 1>, scalar_prefetch = 0 : i64, scratch_operands = 0 : i64, tpu.core_type = #tpu.core_type<tc>, window_params = [{transform_indices = @transform_0, window_bounds = array<i64: 128, 128>}, {pipeline_mode = #tpu.pipeline_mode<synchronous>, transform_indices = @transform_1, window_bounds = array<i64: 128, 16>}, {pipeline_mode = #tpu.pipeline_mode<synchronous>, transform_indices = @transform_2, window_bounds = array<i64: 1, 16>}, {transform_indices = @transform_3, window_bounds = array<i64: 128, 16>}, {transform_indices = @transform_4, window_bounds = array<i64: 128, 16>}]} {
    %c0 = arith.constant 0 : index
    %c0_0 = arith.constant 0 : index
    %0 = vector.load %arg1[%c0, %c0_0] : memref<128x128xbf16, #tpu.memory_space<vmem>>, vector<128x128xbf16>
    %c0_1 = arith.constant 0 : index
    %c0_2 = arith.constant 0 : index
    %1 = vector.load %arg2[%c0_1, %c0_2] : memref<128x16xbf16, #tpu.memory_space<vmem>>, vector<128x16xbf16>
    %cst = arith.constant dense<0.000000e+00> : vector<128x16xf32>
    %2 = tpu.matmul %0, %1, %cst {dimension_numbers = #tpu.dot_dimension_numbers<[1], [0], [0], [1], [0, 0, 1, 1], [], []>} : vector<128x128xbf16>, vector<128x16xbf16>, vector<128x16xf32> -> vector<128x16xf32>
    %c0_3 = arith.constant 0 : index
    %c0_4 = arith.constant 0 : index
    %3 = vector.load %arg3[%c0_3, %c0_4] : memref<1x16xf32, #tpu.memory_space<vmem>>, vector<1x16xf32>
    %4 = vector.broadcast %3 : vector<1x16xf32> to vector<128x16xf32>
    %5 = arith.addf %2, %4 : vector<128x16xf32>
    %c0_5 = arith.constant 0 : index
    %c0_6 = arith.constant 0 : index
    %6 = vector.load %arg4[%c0_5, %c0_6] : memref<128x16xf32, #tpu.memory_space<vmem>>, vector<128x16xf32>
    %7 = arith.mulf %5, %6 : vector<128x16xf32>
    %cst_7 = arith.constant 0.000000e+00 : f32
    %8 = vector.broadcast %cst_7 : f32 to vector<128x16xf32>
    %9 = arith.maximumf %7, %8 : vector<128x16xf32>
    %c0_8 = arith.constant 0 : index
    %c0_9 = arith.constant 0 : index
    %10 = vector.load %arg5[%c0_8, %c0_9] : memref<128x16xf32, #tpu.memory_space<vmem>>, vector<128x16xf32>
    tpu.vector_store %arg5[%c0_8, %c0_9], %9 {strides = array<i32>} : memref<128x16xf32, #tpu.memory_space<vmem>>, vector<128x16xf32>,
    return
  }
  func.func @transform_0(%arg0: i32) -> (i32, i32) {
    %c0_i32 = arith.constant 0 : i32
    %c0_i32_0 = arith.constant 0 : i32
    return %arg0, %c0_i32 : i32, i32
  }
  func.func @transform_1(%arg0: i32) -> (i32, i32) {
    %c0_i32 = arith.constant 0 : i32
    %c0_i32_0 = arith.constant 0 : i32
    %c0_i32_1 = arith.constant 0 : i32
    return %c0_i32, %c0_i32_0 : i32, i32
  }
  func.func @transform_2(%arg0: i32) -> (i32, i32) {
    %c0_i32 = arith.constant 0 : i32
    %c0_i32_0 = arith.constant 0 : i32
    %c0_i32_1 = arith.constant 0 : i32
    return %c0_i32, %c0_i32_0 : i32, i32
  }
  func.func @transform_3(%arg0: i32) -> (i32, i32) {
    %c0_i32 = arith.constant 0 : i32
    %c0_i32_0 = arith.constant 0 : i32
    return %arg0, %c0_i32 : i32, i32
  }
  func.func @transform_4(%arg0: i32) -> (i32, i32) {
    %c0_i32 = arith.constant 0 : i32
    %c0_i32_0 = arith.constant 0 : i32
    return %arg0, %c0_i32 : i32, i32
  }
}

module attributes {stable_mosaic.version = 11 : i64} {
  func.func @_mm_bias_kernel(%arg0: i32, %arg1: memref<128x256xbf16, #tpu.memory_space<vmem>>, %arg2: memref<256x20xbf16, #tpu.memory_space<vmem>>, %arg3: memref<1x20xf32, #tpu.memory_space<vmem>>, %arg4: memref<128x20xf32, #tpu.memory_space<vmem>>) attributes {dimension_semantics = [#tpu.dimension_semantics<parallel>], iteration_bounds = array<i64: 1>, scalar_prefetch = 0 : i64, scratch_operands = 0 : i64, tpu.core_type = #tpu.core_type<tc>, window_params = [{transform_indices = @transform_0, window_bounds = array<i64: 128, 256>}, {pipeline_mode = #tpu.pipeline_mode<synchronous>, transform_indices = @transform_1, window_bounds = array<i64: 256, 20>}, {pipeline_mode = #tpu.pipeline_mode<synchronous>, transform_indices = @transform_2, window_bounds = array<i64: 1, 20>}, {transform_indices = @transform_3, window_bounds = array<i64: 128, 20>}]} {
    %c0 = arith.constant 0 : index
    %c0_0 = arith.constant 0 : index
    %0 = vector.load %arg1[%c0, %c0_0] : memref<128x256xbf16, #tpu.memory_space<vmem>>, vector<128x256xbf16>
    %c0_1 = arith.constant 0 : index
    %c0_2 = arith.constant 0 : index
    %1 = vector.load %arg2[%c0_1, %c0_2] : memref<256x20xbf16, #tpu.memory_space<vmem>>, vector<256x20xbf16>
    %cst = arith.constant dense<0.000000e+00> : vector<128x20xf32>
    %2 = tpu.matmul %0, %1, %cst {dimension_numbers = #tpu.dot_dimension_numbers<[1], [0], [0], [1], [0, 0, 1, 1], [], []>} : vector<128x256xbf16>, vector<256x20xbf16>, vector<128x20xf32> -> vector<128x20xf32>
    %c0_3 = arith.constant 0 : index
    %c0_4 = arith.constant 0 : index
    %3 = vector.load %arg3[%c0_3, %c0_4] : memref<1x20xf32, #tpu.memory_space<vmem>>, vector<1x20xf32>
    %4 = vector.broadcast %3 : vector<1x20xf32> to vector<128x20xf32>
    %5 = arith.addf %2, %4 : vector<128x20xf32>
    %c0_5 = arith.constant 0 : index
    %c0_6 = arith.constant 0 : index
    %6 = vector.load %arg4[%c0_5, %c0_6] : memref<128x20xf32, #tpu.memory_space<vmem>>, vector<128x20xf32>
    tpu.vector_store %arg4[%c0_5, %c0_6], %5 {strides = array<i32>} : memref<128x20xf32, #tpu.memory_space<vmem>>, vector<128x20xf32>,
    return
  }
  func.func @transform_0(%arg0: i32) -> (i32, i32) {
    %c0_i32 = arith.constant 0 : i32
    %c0_i32_0 = arith.constant 0 : i32
    return %arg0, %c0_i32 : i32, i32
  }
  func.func @transform_1(%arg0: i32) -> (i32, i32) {
    %c0_i32 = arith.constant 0 : i32
    %c0_i32_0 = arith.constant 0 : i32
    %c0_i32_1 = arith.constant 0 : i32
    return %c0_i32, %c0_i32_0 : i32, i32
  }
  func.func @transform_2(%arg0: i32) -> (i32, i32) {
    %c0_i32 = arith.constant 0 : i32
    %c0_i32_0 = arith.constant 0 : i32
    %c0_i32_1 = arith.constant 0 : i32
    return %c0_i32, %c0_i32_0 : i32, i32
  }
  func.func @transform_3(%arg0: i32) -> (i32, i32) {
    %c0_i32 = arith.constant 0 : i32
    %c0_i32_0 = arith.constant 0 : i32
    return %arg0, %c0_i32 : i32, i32
  }
}

module attributes {stable_mosaic.version = 11 : i64} {
  func.func @_mm_bias_kernel(%arg0: i32, %arg1: memref<16x256xbf16, #tpu.memory_space<vmem>>, %arg2: memref<256x20xbf16, #tpu.memory_space<vmem>>, %arg3: memref<1x20xf32, #tpu.memory_space<vmem>>, %arg4: memref<16x20xf32, #tpu.memory_space<vmem>>) attributes {dimension_semantics = [#tpu.dimension_semantics<parallel>], iteration_bounds = array<i64: 1>, scalar_prefetch = 0 : i64, scratch_operands = 0 : i64, tpu.core_type = #tpu.core_type<tc>, window_params = [{transform_indices = @transform_0, window_bounds = array<i64: 16, 256>}, {pipeline_mode = #tpu.pipeline_mode<synchronous>, transform_indices = @transform_1, window_bounds = array<i64: 256, 20>}, {pipeline_mode = #tpu.pipeline_mode<synchronous>, transform_indices = @transform_2, window_bounds = array<i64: 1, 20>}, {transform_indices = @transform_3, window_bounds = array<i64: 16, 20>}]} {
    %c0 = arith.constant 0 : index
    %c0_0 = arith.constant 0 : index
    %0 = vector.load %arg1[%c0, %c0_0] : memref<16x256xbf16, #tpu.memory_space<vmem>>, vector<16x256xbf16>
    %c0_1 = arith.constant 0 : index
    %c0_2 = arith.constant 0 : index
    %1 = vector.load %arg2[%c0_1, %c0_2] : memref<256x20xbf16, #tpu.memory_space<vmem>>, vector<256x20xbf16>
    %cst = arith.constant dense<0.000000e+00> : vector<16x20xf32>
    %2 = tpu.matmul %0, %1, %cst {dimension_numbers = #tpu.dot_dimension_numbers<[1], [0], [0], [1], [0, 0, 1, 1], [], []>} : vector<16x256xbf16>, vector<256x20xbf16>, vector<16x20xf32> -> vector<16x20xf32>
    %c0_3 = arith.constant 0 : index
    %c0_4 = arith.constant 0 : index
    %3 = vector.load %arg3[%c0_3, %c0_4] : memref<1x20xf32, #tpu.memory_space<vmem>>, vector<1x20xf32>
    %4 = vector.broadcast %3 : vector<1x20xf32> to vector<16x20xf32>
    %5 = arith.addf %2, %4 : vector<16x20xf32>
    %c0_5 = arith.constant 0 : index
    %c0_6 = arith.constant 0 : index
    %6 = vector.load %arg4[%c0_5, %c0_6] : memref<16x20xf32, #tpu.memory_space<vmem>>, vector<16x20xf32>
    tpu.vector_store %arg4[%c0_5, %c0_6], %5 {strides = array<i32>} : memref<16x20xf32, #tpu.memory_space<vmem>>, vector<16x20xf32>,
    return
  }
  func.func @transform_0(%arg0: i32) -> (i32, i32) {
    %c0_i32 = arith.constant 0 : i32
    %c0_i32_0 = arith.constant 0 : i32
    return %arg0, %c0_i32 : i32, i32
  }
  func.func @transform_1(%arg0: i32) -> (i32, i32) {
    %c0_i32 = arith.constant 0 : i32
    %c0_i32_0 = arith.constant 0 : i32
    %c0_i32_1 = arith.constant 0 : i32
    return %c0_i32, %c0_i32_0 : i32, i32
  }
  func.func @transform_2(%arg0: i32) -> (i32, i32) {
    %c0_i32 = arith.constant 0 : i32
    %c0_i32_0 = arith.constant 0 : i32
    %c0_i32_1 = arith.constant 0 : i32
    return %c0_i32, %c0_i32_0 : i32, i32
  }
  func.func @transform_3(%arg0: i32) -> (i32, i32) {
    %c0_i32 = arith.constant 0 : i32
    %c0_i32_0 = arith.constant 0 : i32
    return %arg0, %c0_i32 : i32, i32
  }
}

</mosaic_0001>

<bundles_post_ra>
// kernel: deconv_ssd_forward.21
= control target key start
LH: loop header
LB: loop body
LE: loop exit
PB: predicated region body
PF: predicated region fallthrough
CT: control target
= control target key end

     0   :  { %vm695_vm0 = vcmask 64512   ;;  %s1446_s1 = inlined_call_operand.vmem [shape: bf16[128,8], index: 1, kind: input, shape index: {}]   ;;  %s1447_s0 = inlined_call_operand.vmem [shape: bf16[512,128], index: 0, kind: input, shape index: {}]   ;;  %s1448_s2 = inlined_call_operand.vmem [shape: f32[1,8], index: 2, kind: input, shape index: {}]   ;;  %s1449_s3 = inlined_call_operand.vmem [shape: f32[512,8], index: 3, kind: output, shape index: {}]  }
   0x1   :  { %v941_v0 = vld [vmem:[%s1446_s1] sm:$0xff]   ;;  %v942_v1 = vld [vmem:[%s1446_s1 + $0x8] sm:$0xff]   ;;  %v943_v2 = vld [vmem:[%s1446_s1 + $0x10] sm:$0xff]  }
   0x2   :  { %845 = vmatprep.subr.bf16.mxu0 %v941_v0  ;;  %925 = vmatprep.subr.bf16.mxu1 %v941_v0  ;;  %v944_v3 = vld [vmem:[%s1446_s1 + $0x18] sm:$0xff]   ;;  %v949_v4 = vld [vmem:[%s1447_s0] sm:$0xff]   ;;  %v946_v7 = vld [vmem:[%s1446_s1 + $0x28] sm:$0xff]  }
   0x3   :  { %846 = vmatpush3.bf16.msra.mxu0 %v941_v0  ;;  %933 = vmatpush3.bf16.msra.mxu1 %v941_v0  ;;  %v950_v5 = vld [vmem:[%s1447_s0 + $0x80] sm:$0xff]   ;;  %v947_v8 = vld [vmem:[%s1446_s1 + $0x30] sm:$0xff]   ;;  %v948_v9 = vld [vmem:[%s1446_s1 + $0x38] sm:$0xff]  }
   0x4   :  { %847 = vmatprep.subr.bf16.mxu0 %v942_v1  ;;  %926 = vmatprep.subr.bf16.mxu1 %v942_v1  ;;  %v945_v6 = vld [vmem:[%s1446_s1 + $0x20] sm:$0xff]   ;;  %v951_v10 = vld [vmem:[%s1447_s0 + $0x8] sm:$0xff]   ;;  %v953_v12 = vld [vmem:[%s1447_s0 + $0x10] sm:$0xff]  }
   0x5   :  { %861 = vmatprep.mubr.bf16.mxu0 %v949_v4  ;;  %893 = vmatprep.mubr.bf16.mxu1 %v950_v5  ;;  %v952_v11 = vld [vmem:[%s1447_s0 + $0x88] sm:$0xff]   ;;  %v954_v13 = vld [vmem:[%s1447_s0 + $0x90] sm:$0xff]   ;;  %v955_v14 = vld [vmem:[%s1447_s0 + $0x18] sm:$0xff]  }
   0x6   :  { %v956_v15 = vld [vmem:[%s1447_s0 + $0x98] sm:$0xff]   ;;  %v957_v16 = vld [vmem:[%s1447_s0 + $0x20] sm:$0xff]   ;;  %v959_v18 = vld [vmem:[%s1447_s0 + $0x28] sm:$0xff]  }
   0x7   :  { %848 = vmatpush3.bf16.msra.mxu0 %v942_v1  ;;  %934 = vmatpush3.bf16.msra.mxu1 %v942_v1  ;;  %v958_v17 = vld [vmem:[%s1447_s0 + $0xa0] sm:$0xff]   ;;  %v960_v19 = vld [vmem:[%s1447_s0 + $0xa8] sm:$0xff]   ;;  %v961_v20 = vld [vmem:[%s1447_s0 + $0x30] sm:$0xff]  }
   0x8   :  { %849 = vmatprep.subr.bf16.mxu0 %v943_v2  ;;  %927 = vmatprep.subr.bf16.mxu1 %v943_v2  ;;  %v962_v21 = vld [vmem:[%s1447_s0 + $0xb0] sm:$0xff]   ;;  %v963_v22 = vld [vmem:[%s1447_s0 + $0x38] sm:$0xff]   ;;  %v965_v24 = vld [vmem:[%s1447_s0 + $0x40] sm:$0xff]  }
   0x9   :  { %v964_v23 = vld [vmem:[%s1447_s0 + $0xb8] sm:$0xff]   ;;  %v966_v25 = vld [vmem:[%s1447_s0 + $0xc0] sm:$0xff]   ;;  %v967_v26 = vld [vmem:[%s1447_s0 + $0x48] sm:$0xff]  }
   0xa   :  { %v968_v27 = vld [vmem:[%s1447_s0 + $0xc8] sm:$0xff]   ;;  %v969_v28 = vld [vmem:[%s1447_s0 + $0x50] sm:$0xff]   ;;  %v971_v30 = vld [vmem:[%s1447_s0 + $0x58] sm:$0xff]  }
   0xb   :  { %850 = vmatpush3.bf16.msra.mxu0 %v943_v2  ;;  %935 = vmatpush3.bf16.msra.mxu1 %v943_v2  ;;  %v970_v29 = vld [vmem:[%s1447_s0 + $0xd0] sm:$0xff]   ;;  %v972_v31 = vld [vmem:[%s1447_s0 + $0xd8] sm:$0xff]   ;;  %v973_v32 = vld [vmem:[%s1447_s0 + $0x60] sm:$0xff]  }
   0xc   :  { %851 = vmatprep.subr.bf16.mxu0 %v944_v3  ;;  %928 = vmatprep.subr.bf16.mxu1 %v944_v3  ;;  %v974_v33 = vld [vmem:[%s1447_s0 + $0xe0] sm:$0xff]   ;;  %v975_v34 = vld [vmem:[%s1447_s0 + $0x68] sm:$0xff]   ;;  %v977_v36 = vld [vmem:[%s1447_s0 + $0x70] sm:$0xff]  }
   0xd   :  { %v976_v35 = vld [vmem:[%s1447_s0 + $0xe8] sm:$0xff]   ;;  %v978_v37 = vld [vmem:[%s1447_s0 + $0xf0] sm:$0xff]   ;;  %v979_v38 = vld [vmem:[%s1447_s0 + $0x78] sm:$0xff]  }
   0xe   :  { %v980_v39 = vld [vmem:[%s1447_s0 + $0xf8] sm:$0xff]   ;;  %v1124_v40 = vld [vmem:[%s1448_s2] ss:$0 sm:$0xff] }
   0xf   :  { %852 = vmatpush3.bf16.msra.mxu0 %v944_v3  ;;  %936 = vmatpush3.bf16.msra.mxu1 %v944_v3 }
  0x10   :  { %853 = vmatprep.subr.bf16.mxu0 %v945_v6  ;;  %929 = vmatprep.subr.bf16.mxu1 %v945_v6 }
  0x13   :  { %854 = vmatpush3.bf16.msra.mxu0 %v945_v6  ;;  %937 = vmatpush3.bf16.msra.mxu1 %v945_v6 }
  0x14   :  { %855 = vmatprep.subr.bf16.mxu0 %v946_v7  ;;  %930 = vmatprep.subr.bf16.mxu1 %v946_v7 }
  0x17   :  { %856 = vmatpush3.bf16.msra.mxu0 %v946_v7  ;;  %938 = vmatpush3.bf16.msra.mxu1 %v946_v7 }
  0x18   :  { %857 = vmatprep.subr.bf16.mxu0 %v947_v8  ;;  %931 = vmatprep.subr.bf16.mxu1 %v947_v8 }
  0x1b   :  { %858 = vmatpush3.bf16.msra.mxu0 %v947_v8  ;;  %939 = vmatpush3.bf16.msra.mxu1 %v947_v8 }
  0x1c   :  { %859 = vmatprep.subr.bf16.mxu0 %v948_v9  ;;  %932 = vmatprep.subr.bf16.mxu1 %v948_v9 }
  0x1f   :  { %860 = vmatpush3.bf16.msra.mxu0 %v948_v9  ;;  %940 = vmatpush3.bf16.msra.mxu1 %v948_v9 }
  0x22   :  { %862 = vmatmul.mubr.bf16.vlgmr.msra.gmra.mrb[0].mxu0 %v951_v10  ;;  %894 = vmatmul.mubr.bf16.vlgmr.msra.gmra.mrb[0].mxu1 %v952_v11 }
  0x23   :  { %865 = vmatprep.mubr.bf16.mxu0 %v953_v12  ;;  %897 = vmatprep.mubr.bf16.mxu1 %v954_v13 }
  0x2a   :  { %866 = vmatmul.mubr.bf16.gmra.mrb[4].mxu0 %v955_v14  ;;  %898 = vmatmul.mubr.bf16.gmra.mrb[4].mxu1 %v956_v15 }
  0x2b   :  { %869 = vmatprep.mubr.bf16.mxu0 %v957_v16  ;;  %901 = vmatprep.mubr.bf16.mxu1 %v958_v17 }
  0x32   :  { %870 = vmatmul.mubr.bf16.gmra.mrb[8].mxu0 %v959_v18  ;;  %902 = vmatmul.mubr.bf16.gmra.mrb[8].mxu1 %v960_v19 }
  0x33   :  { %873 = vmatprep.mubr.bf16.mxu0 %v961_v20  ;;  %905 = vmatprep.mubr.bf16.mxu1 %v962_v21 }
  0x3a   :  { %874 = vmatmul.mubr.bf16.gmra.mrb[12].mxu0 %v963_v22  ;;  %906 = vmatmul.mubr.bf16.gmra.mrb[12].mxu1 %v964_v23 }
  0x3b   :  { %877 = vmatprep.mubr.bf16.mxu0 %v965_v24  ;;  %909 = vmatprep.mubr.bf16.mxu1 %v966_v25 }
  0x42   :  { %878 = vmatmul.mubr.bf16.gmra.mrb[16].mxu0 %v967_v26  ;;  %910 = vmatmul.mubr.bf16.gmra.mrb[16].mxu1 %v968_v27 }
  0x43   :  { %881 = vmatprep.mubr.bf16.mxu0 %v969_v28  ;;  %913 = vmatprep.mubr.bf16.mxu1 %v970_v29 }
  0x4a   :  { %882 = vmatmul.mubr.bf16.gmra.mrb[20].mxu0 %v971_v30  ;;  %914 = vmatmul.mubr.bf16.gmra.mrb[20].mxu1 %v972_v31 }
  0x4b   :  { %885 = vmatprep.mubr.bf16.mxu0 %v973_v32  ;;  %917 = vmatprep.mubr.bf16.mxu1 %v974_v33 }
  0x52   :  { %886 = vmatmul.mubr.bf16.gmra.mrb[24].mxu0 %v975_v34  ;;  %918 = vmatmul.mubr.bf16.gmra.mrb[24].mxu1 %v976_v35 }
  0x53   :  { %889 = vmatprep.mubr.bf16.mxu0 %v977_v36  ;;  %921 = vmatprep.mubr.bf16.mxu1 %v978_v37 }
  0x5a   :  { %890 = vmatmul.mubr.bf16.gmra.mrb[28].mxu0 %v979_v38  ;;  %922 = vmatmul.mubr.bf16.gmra.mrb[28].mxu1 %v980_v39 }
  0xf5   :  { %v863_v41 = vpop.f32.mrb[0].mxu0  ;;  %v895_v42 = vpop.f32.mrb[0].mxu1 }
  0xf6   :  { %v385_v43 = vadd.f32 %v863_v41, %v1124_v40  ;;  %v513_v44 = vadd.f32 %v895_v42, %v1124_v40  ;;  %v376_v45 = vpop.f32.mrb[1].mxu0  ;;  %v504_v46 = vpop.f32.mrb[1].mxu1 }
  0xf7   :  { %v377_v47 = vadd.f32 %v1124_v40, %v376_v45  ;;  %v505_v48 = vadd.f32 %v1124_v40, %v504_v46  ;;  %v864_v49 = vpop.f32.mrb[2].mxu0  ;;  %v896_v50 = vpop.f32.mrb[2].mxu1 }
  0xf8   :  { %v633_v51 = vmax.f32 %v385_v43, 0.0  ;;  %v665_v52 = vmax.f32 %v513_v44, 0.0  ;;  %v388_v53 = vadd.f32 %v864_v49, %v1124_v40  ;;  %v516_v54 = vadd.f32 %v896_v50, %v1124_v40  ;;  %v379_v55 = vpop.f32.mrb[3].mxu0  ;;  %v507_v56 = vpop.f32.mrb[3].mxu1 }
  0xf9   :  { %v631_v57 = vmax.f32 %v377_v47, 0.0  ;;  %v663_v58 = vmax.f32 %v505_v48, 0.0  ;;  %v380_v59 = vadd.f32 %v1124_v40, %v379_v55  ;;  %v508_v60 = vadd.f32 %v1124_v40, %v507_v56 }
  0xfa   :  { %698 = vst.msk [vmem:[%s1449_s3 + $0x10] sm:$0xff] %vm695_vm0, %v633_v51  ;;  %730 = vst.msk [vmem:[%s1449_s3 + $0x110] sm:$0xff] %vm695_vm0, %v665_v52  ;;  %v634_v61 = vmax.f32 %v388_v53, 0.0  ;;  %v666_v62 = vmax.f32 %v516_v54, 0.0 }
  0xfb   :  { %696 = vst.msk [vmem:[%s1449_s3] sm:$0xff] %vm695_vm0, %v631_v57  ;;  %728 = vst.msk [vmem:[%s1449_s3 + $0x100] sm:$0xff] %vm695_vm0, %v663_v58  ;;  %v632_v63 = vmax.f32 %v380_v59, 0.0  ;;  %v664_v0 = vmax.f32 %v508_v60, 0.0 }
  0xfc   :  { %699 = vst.msk [vmem:[%s1449_s3 + $0x18] sm:$0xff] %vm695_vm0, %v634_v61  ;;  %731 = vst.msk [vmem:[%s1449_s3 + $0x118] sm:$0xff] %vm695_vm0, %v666_v62 }
  0xfd   :  { %697 = vst.msk [vmem:[%s1449_s3 + $0x8] sm:$0xff] %vm695_vm0, %v632_v63  ;;  %729 = vst.msk [vmem:[%s1449_s3 + $0x108] sm:$0xff] %vm695_vm0, %v664_v0  ;;  %v867_v1 = vpop.f32.mrb[4].mxu0  ;;  %v899_v2 = vpop.f32.mrb[4].mxu1 }
  0xfe   :  { %v401_v3 = vadd.f32 %v867_v1, %v1124_v40  ;;  %v529_v4 = vadd.f32 %v899_v2, %v1124_v40  ;;  %v392_v5 = vpop.f32.mrb[5].mxu0  ;;  %v520_v6 = vpop.f32.mrb[5].mxu1 }
  0xff   :  { %v393_v7 = vadd.f32 %v1124_v40, %v392_v5  ;;  %v521_v8 = vadd.f32 %v1124_v40, %v520_v6  ;;  %v868_v9 = vpop.f32.mrb[6].mxu0  ;;  %v900_v10 = vpop.f32.mrb[6].mxu1 }
 0x100   :  { %v637_v11 = vmax.f32 %v401_v3, 0.0  ;;  %v669_v12 = vmax.f32 %v529_v4, 0.0  ;;  %v404_v13 = vadd.f32 %v868_v9, %v1124_v40  ;;  %v532_v14 = vadd.f32 %v900_v10, %v1124_v40  ;;  %v395_v15 = vpop.f32.mrb[7].mxu0  ;;  %v523_v16 = vpop.f32.mrb[7].mxu1 }
 0x101   :  { %v635_v17 = vmax.f32 %v393_v7, 0.0  ;;  %v667_v18 = vmax.f32 %v521_v8, 0.0  ;;  %v396_v19 = vadd.f32 %v1124_v40, %v395_v15  ;;  %v524_v20 = vadd.f32 %v1124_v40, %v523_v16 }
 0x102   :  { %702 = vst.msk [vmem:[%s1449_s3 + $0x30] sm:$0xff] %vm695_vm0, %v637_v11  ;;  %734 = vst.msk [vmem:[%s1449_s3 + $0x130] sm:$0xff] %vm695_vm0, %v669_v12  ;;  %v638_v21 = vmax.f32 %v404_v13, 0.0  ;;  %v670_v22 = vmax.f32 %v532_v14, 0.0 }
 0x103   :  { %700 = vst.msk [vmem:[%s1449_s3 + $0x20] sm:$0xff] %vm695_vm0, %v635_v17  ;;  %732 = vst.msk [vmem:[%s1449_s3 + $0x120] sm:$0xff] %vm695_vm0, %v667_v18  ;;  %v636_v23 = vmax.f32 %v396_v19, 0.0  ;;  %v668_v24 = vmax.f32 %v524_v20, 0.0 }
 0x104   :  { %703 = vst.msk [vmem:[%s1449_s3 + $0x38] sm:$0xff] %vm695_vm0, %v638_v21  ;;  %735 = vst.msk [vmem:[%s1449_s3 + $0x138] sm:$0xff] %vm695_vm0, %v670_v22 }
 0x105   :  { %701 = vst.msk [vmem:[%s1449_s3 + $0x28] sm:$0xff] %vm695_vm0, %v636_v23  ;;  %733 = vst.msk [vmem:[%s1449_s3 + $0x128] sm:$0xff] %vm695_vm0, %v668_v24  ;;  %v871_v25 = vpop.f32.mrb[8].mxu0  ;;  %v903_v26 = vpop.f32.mrb[8].mxu1 }
 0x106   :  { %v417_v27 = vadd.f32 %v871_v25, %v1124_v40  ;;  %v545_v28 = vadd.f32 %v903_v26, %v1124_v40  ;;  %v408_v29 = vpop.f32.mrb[9].mxu0  ;;  %v536_v30 = vpop.f32.mrb[9].mxu1 }
 0x107   :  { %v409_v31 = vadd.f32 %v1124_v40, %v408_v29  ;;  %v537_v32 = vadd.f32 %v1124_v40, %v536_v30  ;;  %v872_v33 = vpop.f32.mrb[10].mxu0  ;;  %v904_v34 = vpop.f32.mrb[10].mxu1 }
 0x108   :  { %v641_v35 = vmax.f32 %v417_v27, 0.0  ;;  %v673_v36 = vmax.f32 %v545_v28, 0.0  ;;  %v420_v37 = vadd.f32 %v872_v33, %v1124_v40  ;;  %v548_v38 = vadd.f32 %v904_v34, %v1124_v40  ;;  %v411_v39 = vpop.f32.mrb[11].mxu0  ;;  %v539_v41 = vpop.f32.mrb[11].mxu1 }
 0x109   :  { %v639_v42 = vmax.f32 %v409_v31, 0.0  ;;  %v671_v43 = vmax.f32 %v537_v32, 0.0  ;;  %v412_v44 = vadd.f32 %v1124_v40, %v411_v39  ;;  %v540_v45 = vadd.f32 %v1124_v40, %v539_v41 }
 0x10a   :  { %706 = vst.msk [vmem:[%s1449_s3 + $0x50] sm:$0xff] %vm695_vm0, %v641_v35  ;;  %738 = vst.msk [vmem:[%s1449_s3 + $0x150] sm:$0xff] %vm695_vm0, %v673_v36  ;;  %v642_v46 = vmax.f32 %v420_v37, 0.0  ;;  %v674_v47 = vmax.f32 %v548_v38, 0.0 }
 0x10b   :  { %704 = vst.msk [vmem:[%s1449_s3 + $0x40] sm:$0xff] %vm695_vm0, %v639_v42  ;;  %736 = vst.msk [vmem:[%s1449_s3 + $0x140] sm:$0xff] %vm695_vm0, %v671_v43  ;;  %v640_v48 = vmax.f32 %v412_v44, 0.0  ;;  %v672_v49 = vmax.f32 %v540_v45, 0.0 }
 0x10c   :  { %707 = vst.msk [vmem:[%s1449_s3 + $0x58] sm:$0xff] %vm695_vm0, %v642_v46  ;;  %739 = vst.msk [vmem:[%s1449_s3 + $0x158] sm:$0xff] %vm695_vm0, %v674_v47 }
 0x10d   :  { %705 = vst.msk [vmem:[%s1449_s3 + $0x48] sm:$0xff] %vm695_vm0, %v640_v48  ;;  %737 = vst.msk [vmem:[%s1449_s3 + $0x148] sm:$0xff] %vm695_vm0, %v672_v49  ;;  %v875_v50 = vpop.f32.mrb[12].mxu0  ;;  %v907_v51 = vpop.f32.mrb[12].mxu1 }
 0x10e   :  { %v433_v52 = vadd.f32 %v875_v50, %v1124_v40  ;;  %v561_v53 = vadd.f32 %v907_v51, %v1124_v40  ;;  %v424_v54 = vpop.f32.mrb[13].mxu0  ;;  %v552_v55 = vpop.f32.mrb[13].mxu1 }
 0x10f   :  { %v425_v56 = vadd.f32 %v1124_v40, %v424_v54  ;;  %v553_v57 = vadd.f32 %v1124_v40, %v552_v55  ;;  %v876_v58 = vpop.f32.mrb[14].mxu0  ;;  %v908_v59 = vpop.f32.mrb[14].mxu1 }
 0x110   :  { %v645_v60 = vmax.f32 %v433_v52, 0.0  ;;  %v677_v61 = vmax.f32 %v561_v53, 0.0  ;;  %v436_v62 = vadd.f32 %v876_v58, %v1124_v40  ;;  %v564_v63 = vadd.f32 %v908_v59, %v1124_v40  ;;  %v427_v0 = vpop.f32.mrb[15].mxu0  ;;  %v555_v1 = vpop.f32.mrb[15].mxu1 }
 0x111   :  { %v643_v2 = vmax.f32 %v425_v56, 0.0  ;;  %v675_v3 = vmax.f32 %v553_v57, 0.0  ;;  %v428_v4 = vadd.f32 %v1124_v40, %v427_v0  ;;  %v556_v5 = vadd.f32 %v1124_v40, %v555_v1 }
 0x112   :  { %710 = vst.msk [vmem:[%s1449_s3 + $0x70] sm:$0xff] %vm695_vm0, %v645_v60  ;;  %742 = vst.msk [vmem:[%s1449_s3 + $0x170] sm:$0xff] %vm695_vm0, %v677_v61  ;;  %v646_v6 = vmax.f32 %v436_v62, 0.0  ;;  %v678_v7 = vmax.f32 %v564_v63, 0.0 }
 0x113   :  { %708 = vst.msk [vmem:[%s1449_s3 + $0x60] sm:$0xff] %vm695_vm0, %v643_v2  ;;  %740 = vst.msk [vmem:[%s1449_s3 + $0x160] sm:$0xff] %vm695_vm0, %v675_v3  ;;  %v644_v8 = vmax.f32 %v428_v4, 0.0  ;;  %v676_v9 = vmax.f32 %v556_v5, 0.0 }
 0x114   :  { %711 = vst.msk [vmem:[%s1449_s3 + $0x78] sm:$0xff] %vm695_vm0, %v646_v6  ;;  %743 = vst.msk [vmem:[%s1449_s3 + $0x178] sm:$0xff] %vm695_vm0, %v678_v7 }
 0x115   :  { %709 = vst.msk [vmem:[%s1449_s3 + $0x68] sm:$0xff] %vm695_vm0, %v644_v8  ;;  %741 = vst.msk [vmem:[%s1449_s3 + $0x168] sm:$0xff] %vm695_vm0, %v676_v9  ;;  %v879_v10 = vpop.f32.mrb[16].mxu0  ;;  %v911_v11 = vpop.f32.mrb[16].mxu1 }
 0x116   :  { %v449_v12 = vadd.f32 %v879_v10, %v1124_v40  ;;  %v577_v13 = vadd.f32 %v911_v11, %v1124_v40  ;;  %v440_v14 = vpop.f32.mrb[17].mxu0  ;;  %v568_v15 = vpop.f32.mrb[17].mxu1 }
 0x117   :  { %v441_v16 = vadd.f32 %v1124_v40, %v440_v14  ;;  %v569_v17 = vadd.f32 %v1124_v40, %v568_v15  ;;  %v880_v18 = vpop.f32.mrb[18].mxu0  ;;  %v912_v19 = vpop.f32.mrb[18].mxu1 }
 0x118   :  { %v649_v20 = vmax.f32 %v449_v12, 0.0  ;;  %v681_v21 = vmax.f32 %v577_v13, 0.0  ;;  %v452_v22 = vadd.f32 %v880_v18, %v1124_v40  ;;  %v580_v23 = vadd.f32 %v912_v19, %v1124_v40  ;;  %v443_v24 = vpop.f32.mrb[19].mxu0  ;;  %v571_v25 = vpop.f32.mrb[19].mxu1 }
 0x119   :  { %v647_v26 = vmax.f32 %v441_v16, 0.0  ;;  %v679_v27 = vmax.f32 %v569_v17, 0.0  ;;  %v444_v28 = vadd.f32 %v1124_v40, %v443_v24  ;;  %v572_v29 = vadd.f32 %v1124_v40, %v571_v25 }
 0x11a   :  { %714 = vst.msk [vmem:[%s1449_s3 + $0x90] sm:$0xff] %vm695_vm0, %v649_v20  ;;  %746 = vst.msk [vmem:[%s1449_s3 + $0x190] sm:$0xff] %vm695_vm0, %v681_v21  ;;  %v650_v30 = vmax.f32 %v452_v22, 0.0  ;;  %v682_v31 = vmax.f32 %v580_v23, 0.0 }
 0x11b   :  { %712 = vst.msk [vmem:[%s1449_s3 + $0x80] sm:$0xff] %vm695_vm0, %v647_v26  ;;  %744 = vst.msk [vmem:[%s1449_s3 + $0x180] sm:$0xff] %vm695_vm0, %v679_v27  ;;  %v648_v32 = vmax.f32 %v444_v28, 0.0  ;;  %v680_v33 = vmax.f32 %v572_v29, 0.0 }
 0x11c   :  { %715 = vst.msk [vmem:[%s1449_s3 + $0x98] sm:$0xff] %vm695_vm0, %v650_v30  ;;  %747 = vst.msk [vmem:[%s1449_s3 + $0x198] sm:$0xff] %vm695_vm0, %v682_v31 }
 0x11d   :  { %713 = vst.msk [vmem:[%s1449_s3 + $0x88] sm:$0xff] %vm695_vm0, %v648_v32  ;;  %745 = vst.msk [vmem:[%s1449_s3 + $0x188] sm:$0xff] %vm695_vm0, %v680_v33  ;;  %v883_v34 = vpop.f32.mrb[20].mxu0  ;;  %v915_v35 = vpop.f32.mrb[20].mxu1 }
 0x11e   :  { %v465_v36 = vadd.f32 %v883_v34, %v1124_v40  ;;  %v593_v37 = vadd.f32 %v915_v35, %v1124_v40  ;;  %v456_v38 = vpop.f32.mrb[21].mxu0  ;;  %v584_v39 = vpop.f32.mrb[21].mxu1 }
 0x11f   :  { %v457_v41 = vadd.f32 %v1124_v40, %v456_v38  ;;  %v585_v42 = vadd.f32 %v1124_v40, %v584_v39  ;;  %v884_v43 = vpop.f32.mrb[22].mxu0  ;;  %v916_v44 = vpop.f32.mrb[22].mxu1 }
 0x120   :  { %v653_v45 = vmax.f32 %v465_v36, 0.0  ;;  %v685_v46 = vmax.f32 %v593_v37, 0.0  ;;  %v468_v47 = vadd.f32 %v884_v43, %v1124_v40  ;;  %v596_v48 = vadd.f32 %v916_v44, %v1124_v40  ;;  %v459_v49 = vpop.f32.mrb[23].mxu0  ;;  %v587_v50 = vpop.f32.mrb[23].mxu1 }
 0x121   :  { %v651_v51 = vmax.f32 %v457_v41, 0.0  ;;  %v683_v52 = vmax.f32 %v585_v42, 0.0  ;;  %v460_v53 = vadd.f32 %v1124_v40, %v459_v49  ;;  %v588_v54 = vadd.f32 %v1124_v40, %v587_v50 }
 0x122   :  { %718 = vst.msk [vmem:[%s1449_s3 + $0xb0] sm:$0xff] %vm695_vm0, %v653_v45  ;;  %750 = vst.msk [vmem:[%s1449_s3 + $0x1b0] sm:$0xff] %vm695_vm0, %v685_v46  ;;  %v654_v55 = vmax.f32 %v468_v47, 0.0  ;;  %v686_v56 = vmax.f32 %v596_v48, 0.0 }
 0x123   :  { %716 = vst.msk [vmem:[%s1449_s3 + $0xa0] sm:$0xff] %vm695_vm0, %v651_v51  ;;  %748 = vst.msk [vmem:[%s1449_s3 + $0x1a0] sm:$0xff] %vm695_vm0, %v683_v52  ;;  %v652_v57 = vmax.f32 %v460_v53, 0.0  ;;  %v684_v58 = vmax.f32 %v588_v54, 0.0 }
 0x124   :  { %719 = vst.msk [vmem:[%s1449_s3 + $0xb8] sm:$0xff] %vm695_vm0, %v654_v55  ;;  %751 = vst.msk [vmem:[%s1449_s3 + $0x1b8] sm:$0xff] %vm695_vm0, %v686_v56 }
 0x125   :  { %717 = vst.msk [vmem:[%s1449_s3 + $0xa8] sm:$0xff] %vm695_vm0, %v652_v57  ;;  %749 = vst.msk [vmem:[%s1449_s3 + $0x1a8] sm:$0xff] %vm695_vm0, %v684_v58  ;;  %v887_v59 = vpop.f32.mrb[24].mxu0  ;;  %v919_v60 = vpop.f32.mrb[24].mxu1 }
 0x126   :  { %v481_v61 = vadd.f32 %v887_v59, %v1124_v40  ;;  %v609_v62 = vadd.f32 %v919_v60, %v1124_v40  ;;  %v472_v63 = vpop.f32.mrb[25].mxu0  ;;  %v600_v0 = vpop.f32.mrb[25].mxu1 }
 0x127   :  { %v473_v1 = vadd.f32 %v1124_v40, %v472_v63  ;;  %v601_v2 = vadd.f32 %v1124_v40, %v600_v0  ;;  %v888_v3 = vpop.f32.mrb[26].mxu0  ;;  %v920_v4 = vpop.f32.mrb[26].mxu1 }
 0x128   :  { %v657_v5 = vmax.f32 %v481_v61, 0.0  ;;  %v689_v6 = vmax.f32 %v609_v62, 0.0  ;;  %v484_v7 = vadd.f32 %v888_v3, %v1124_v40  ;;  %v612_v8 = vadd.f32 %v920_v4, %v1124_v40  ;;  %v475_v9 = vpop.f32.mrb[27].mxu0  ;;  %v603_v10 = vpop.f32.mrb[27].mxu1 }
 0x129   :  { %v655_v11 = vmax.f32 %v473_v1, 0.0  ;;  %v687_v12 = vmax.f32 %v601_v2, 0.0  ;;  %v476_v13 = vadd.f32 %v1124_v40, %v475_v9  ;;  %v604_v14 = vadd.f32 %v1124_v40, %v603_v10 }
 0x12a   :  { %722 = vst.msk [vmem:[%s1449_s3 + $0xd0] sm:$0xff] %vm695_vm0, %v657_v5  ;;  %754 = vst.msk [vmem:[%s1449_s3 + $0x1d0] sm:$0xff] %vm695_vm0, %v689_v6  ;;  %v658_v15 = vmax.f32 %v484_v7, 0.0  ;;  %v690_v16 = vmax.f32 %v612_v8, 0.0 }
 0x12b   :  { %720 = vst.msk [vmem:[%s1449_s3 + $0xc0] sm:$0xff] %vm695_vm0, %v655_v11  ;;  %752 = vst.msk [vmem:[%s1449_s3 + $0x1c0] sm:$0xff] %vm695_vm0, %v687_v12  ;;  %v656_v17 = vmax.f32 %v476_v13, 0.0  ;;  %v688_v18 = vmax.f32 %v604_v14, 0.0 }
 0x12c   :  { %723 = vst.msk [vmem:[%s1449_s3 + $0xd8] sm:$0xff] %vm695_vm0, %v658_v15  ;;  %755 = vst.msk [vmem:[%s1449_s3 + $0x1d8] sm:$0xff] %vm695_vm0, %v690_v16 }
 0x12d   :  { %721 = vst.msk [vmem:[%s1449_s3 + $0xc8] sm:$0xff] %vm695_vm0, %v656_v17  ;;  %753 = vst.msk [vmem:[%s1449_s3 + $0x1c8] sm:$0xff] %vm695_vm0, %v688_v18  ;;  %v891_v19 = vpop.f32.mrb[28].mxu0  ;;  %v923_v20 = vpop.f32.mrb[28].mxu1 }
 0x12e   :  { %v497_v21 = vadd.f32 %v891_v19, %v1124_v40  ;;  %v625_v22 = vadd.f32 %v923_v20, %v1124_v40  ;;  %v488_v23 = vpop.f32.mrb[29].mxu0  ;;  %v616_v24 = vpop.f32.mrb[29].mxu1 }
 0x12f   :  { %v489_v25 = vadd.f32 %v1124_v40, %v488_v23  ;;  %v617_v26 = vadd.f32 %v1124_v40, %v616_v24  ;;  %v892_v27 = vpop.f32.mrb[30].mxu0  ;;  %v924_v28 = vpop.f32.mrb[30].mxu1 }
 0x130   :  { %v661_v29 = vmax.f32 %v497_v21, 0.0  ;;  %v693_v30 = vmax.f32 %v625_v22, 0.0  ;;  %v500_v31 = vadd.f32 %v892_v27, %v1124_v40  ;;  %v628_v32 = vadd.f32 %v924_v28, %v1124_v40  ;;  %v491_v33 = vpop.f32.mrb[31].mxu0  ;;  %v619_v34 = vpop.f32.mrb[31].mxu1 }
 0x131   :  { %v659_v35 = vmax.f32 %v489_v25, 0.0  ;;  %v691_v36 = vmax.f32 %v617_v26, 0.0  ;;  %v492_v37 = vadd.f32 %v1124_v40, %v491_v33  ;;  %v620_v38 = vadd.f32 %v1124_v40, %v619_v34 }
 0x132   :  { %726 = vst.msk [vmem:[%s1449_s3 + $0xf0] sm:$0xff] %vm695_vm0, %v661_v29  ;;  %758 = vst.msk [vmem:[%s1449_s3 + $0x1f0] sm:$0xff] %vm695_vm0, %v693_v30  ;;  %v662_v39 = vmax.f32 %v500_v31, 0.0  ;;  %v694_v41 = vmax.f32 %v628_v32, 0.0 }
 0x133   :  { %724 = vst.msk [vmem:[%s1449_s3 + $0xe0] sm:$0xff] %vm695_vm0, %v659_v35  ;;  %756 = vst.msk [vmem:[%s1449_s3 + $0x1e0] sm:$0xff] %vm695_vm0, %v691_v36  ;;  %v660_v40 = vmax.f32 %v492_v37, 0.0  ;;  %v692_v42 = vmax.f32 %v620_v38, 0.0 }
 0x134   :  { %727 = vst.msk [vmem:[%s1449_s3 + $0xf8] sm:$0xff] %vm695_vm0, %v662_v39  ;;  %759 = vst.msk [vmem:[%s1449_s3 + $0x1f8] sm:$0xff] %vm695_vm0, %v694_v41 }
 0x135   :  { %725 = vst.msk [vmem:[%s1449_s3 + $0xe8] sm:$0xff] %vm695_vm0, %v660_v40  ;;  %757 = vst.msk [vmem:[%s1449_s3 + $0x1e8] sm:$0xff] %vm695_vm0, %v692_v42 }

// kernel: deconv_ssd_forward.23
= control target key start
LH: loop header
LB: loop body
LE: loop exit
PB: predicated region body
PF: predicated region fallthrough
CT: control target
= control target key end

     0   :  { %vm263_vm0 = vcmask 64512   ;;  %s516_s1 = inlined_call_operand.vmem [shape: bf16[128,8], index: 1, kind: input, shape index: {}]   ;;  %s517_s0 = inlined_call_operand.vmem [shape: bf16[128,128], index: 0, kind: input, shape index: {}]   ;;  %s518_s2 = inlined_call_operand.vmem [shape: f32[1,8], index: 2, kind: input, shape index: {}]   ;;  %s519_s3 = inlined_call_operand.vmem [shape: f32[128,8], index: 3, kind: output, shape index: {}]  }
   0x1   :  { %v365_v0 = vld [vmem:[%s516_s1] sm:$0xff]   ;;  %v366_v1 = vld [vmem:[%s516_s1 + $0x8] sm:$0xff]   ;;  %v367_v2 = vld [vmem:[%s516_s1 + $0x10] sm:$0xff]  }
   0x2   :  { %317 = vmatprep.subr.bf16.mxu0 %v365_v0  ;;  %349 = vmatprep.subr.bf16.mxu1 %v365_v0  ;;  %v368_v3 = vld [vmem:[%s516_s1 + $0x18] sm:$0xff]   ;;  %v373_v4 = vld [vmem:[%s517_s0] sm:$0xff]   ;;  %v370_v7 = vld [vmem:[%s516_s1 + $0x28] sm:$0xff]  }
   0x3   :  { %318 = vmatpush3.bf16.msra.mxu0 %v365_v0  ;;  %357 = vmatpush3.bf16.msra.mxu1 %v365_v0  ;;  %v374_v5 = vld [vmem:[%s517_s0 + $0x20] sm:$0xff]   ;;  %v371_v8 = vld [vmem:[%s516_s1 + $0x30] sm:$0xff]   ;;  %v372_v9 = vld [vmem:[%s516_s1 + $0x38] sm:$0xff]  }
   0x4   :  { %319 = vmatprep.subr.bf16.mxu0 %v366_v1  ;;  %350 = vmatprep.subr.bf16.mxu1 %v366_v1  ;;  %v369_v6 = vld [vmem:[%s516_s1 + $0x20] sm:$0xff]   ;;  %v375_v10 = vld [vmem:[%s517_s0 + $0x8] sm:$0xff]   ;;  %v377_v12 = vld [vmem:[%s517_s0 + $0x10] sm:$0xff]  }
   0x5   :  { %333 = vmatprep.mubr.bf16.mxu0 %v373_v4  ;;  %341 = vmatprep.mubr.bf16.mxu1 %v374_v5  ;;  %v376_v11 = vld [vmem:[%s517_s0 + $0x28] sm:$0xff]   ;;  %v378_v13 = vld [vmem:[%s517_s0 + $0x30] sm:$0xff]   ;;  %v379_v14 = vld [vmem:[%s517_s0 + $0x18] sm:$0xff]  }
   0x6   :  { %v380_v15 = vld [vmem:[%s517_s0 + $0x38] sm:$0xff]   ;;  %v284_v16 = vld [vmem:[%s518_s2] ss:$0 sm:$0xff] }
   0x7   :  { %320 = vmatpush3.bf16.msra.mxu0 %v366_v1  ;;  %358 = vmatpush3.bf16.msra.mxu1 %v366_v1 }
   0x8   :  { %321 = vmatprep.subr.bf16.mxu0 %v367_v2  ;;  %351 = vmatprep.subr.bf16.mxu1 %v367_v2 }
   0xb   :  { %322 = vmatpush3.bf16.msra.mxu0 %v367_v2  ;;  %359 = vmatpush3.bf16.msra.mxu1 %v367_v2 }
   0xc   :  { %323 = vmatprep.subr.bf16.mxu0 %v368_v3  ;;  %352 = vmatprep.subr.bf16.mxu1 %v368_v3 }
   0xf   :  { %324 = vmatpush3.bf16.msra.mxu0 %v368_v3  ;;  %360 = vmatpush3.bf16.msra.mxu1 %v368_v3 }
  0x10   :  { %325 = vmatprep.subr.bf16.mxu0 %v369_v6  ;;  %353 = vmatprep.subr.bf16.mxu1 %v369_v6 }
  0x13   :  { %326 = vmatpush3.bf16.msra.mxu0 %v369_v6  ;;  %361 = vmatpush3.bf16.msra.mxu1 %v369_v6 }
  0x14   :  { %327 = vmatprep.subr.bf16.mxu0 %v370_v7  ;;  %354 = vmatprep.subr.bf16.mxu1 %v370_v7 }
  0x17   :  { %328 = vmatpush3.bf16.msra.mxu0 %v370_v7  ;;  %362 = vmatpush3.bf16.msra.mxu1 %v370_v7 }
  0x18   :  { %329 = vmatprep.subr.bf16.mxu0 %v371_v8  ;;  %355 = vmatprep.subr.bf16.mxu1 %v371_v8 }
  0x1b   :  { %330 = vmatpush3.bf16.msra.mxu0 %v371_v8  ;;  %363 = vmatpush3.bf16.msra.mxu1 %v371_v8 }
  0x1c   :  { %331 = vmatprep.subr.bf16.mxu0 %v372_v9  ;;  %356 = vmatprep.subr.bf16.mxu1 %v372_v9 }
  0x1f   :  { %332 = vmatpush3.bf16.msra.mxu0 %v372_v9  ;;  %364 = vmatpush3.bf16.msra.mxu1 %v372_v9 }
  0x22   :  { %334 = vmatmul.mubr.bf16.vlgmr.msra.gmra.mrb[0].mxu0 %v375_v10  ;;  %342 = vmatmul.mubr.bf16.vlgmr.msra.gmra.mrb[0].mxu1 %v376_v11 }
  0x23   :  { %337 = vmatprep.mubr.bf16.mxu0 %v377_v12  ;;  %345 = vmatprep.mubr.bf16.mxu1 %v378_v13 }
  0x2a   :  { %338 = vmatmul.mubr.bf16.gmra.mrb[4].mxu0 %v379_v14  ;;  %346 = vmatmul.mubr.bf16.gmra.mrb[4].mxu1 %v380_v15 }
  0xf5   :  { %v335_v17 = vpop.f32.mrb[0].mxu0  ;;  %v343_v18 = vpop.f32.mrb[0].mxu1 }
  0xf6   :  { %v193_v19 = vadd.f32 %v335_v17, %v284_v16  ;;  %v225_v20 = vadd.f32 %v343_v18, %v284_v16  ;;  %v184_v21 = vpop.f32.mrb[1].mxu0  ;;  %v216_v22 = vpop.f32.mrb[1].mxu1 }
  0xf7   :  { %v185_v23 = vadd.f32 %v284_v16, %v184_v21  ;;  %v217_v24 = vadd.f32 %v284_v16, %v216_v22  ;;  %v336_v25 = vpop.f32.mrb[2].mxu0  ;;  %v344_v26 = vpop.f32.mrb[2].mxu1 }
  0xf8   :  { %v249_v27 = vmax.f32 %v193_v19, 0.0  ;;  %v257_v28 = vmax.f32 %v225_v20, 0.0  ;;  %v196_v29 = vadd.f32 %v336_v25, %v284_v16  ;;  %v228_v30 = vadd.f32 %v344_v26, %v284_v16  ;;  %v187_v31 = vpop.f32.mrb[3].mxu0  ;;  %v219_v32 = vpop.f32.mrb[3].mxu1 }
  0xf9   :  { %v247_v33 = vmax.f32 %v185_v23, 0.0  ;;  %v255_v34 = vmax.f32 %v217_v24, 0.0  ;;  %v188_v35 = vadd.f32 %v284_v16, %v187_v31  ;;  %v220_v36 = vadd.f32 %v284_v16, %v219_v32 }
  0xfa   :  { %266 = vst.msk [vmem:[%s519_s3 + $0x10] sm:$0xff] %vm263_vm0, %v249_v27  ;;  %274 = vst.msk [vmem:[%s519_s3 + $0x50] sm:$0xff] %vm263_vm0, %v257_v28  ;;  %v250_v37 = vmax.f32 %v196_v29, 0.0  ;;  %v258_v38 = vmax.f32 %v228_v30, 0.0 }
  0xfb   :  { %264 = vst.msk [vmem:[%s519_s3] sm:$0xff] %vm263_vm0, %v247_v33  ;;  %272 = vst.msk [vmem:[%s519_s3 + $0x40] sm:$0xff] %vm263_vm0, %v255_v34  ;;  %v248_v39 = vmax.f32 %v188_v35, 0.0  ;;  %v256_v40 = vmax.f32 %v220_v36, 0.0 }
  0xfc   :  { %267 = vst.msk [vmem:[%s519_s3 + $0x18] sm:$0xff] %vm263_vm0, %v250_v37  ;;  %275 = vst.msk [vmem:[%s519_s3 + $0x58] sm:$0xff] %vm263_vm0, %v258_v38 }
  0xfd   :  { %265 = vst.msk [vmem:[%s519_s3 + $0x8] sm:$0xff] %vm263_vm0, %v248_v39  ;;  %273 = vst.msk [vmem:[%s519_s3 + $0x48] sm:$0xff] %vm263_vm0, %v256_v40  ;;  %v339_v41 = vpop.f32.mrb[4].mxu0  ;;  %v347_v42 = vpop.f32.mrb[4].mxu1 }
  0xfe   :  { %v209_v43 = vadd.f32 %v339_v41, %v284_v16  ;;  %v241_v44 = vadd.f32 %v347_v42, %v284_v16  ;;  %v200_v45 = vpop.f32.mrb[5].mxu0  ;;  %v232_v46 = vpop.f32.mrb[5].mxu1 }
  0xff   :  { %v201_v47 = vadd.f32 %v284_v16, %v200_v45  ;;  %v233_v48 = vadd.f32 %v284_v16, %v232_v46  ;;  %v340_v49 = vpop.f32.mrb[6].mxu0  ;;  %v348_v50 = vpop.f32.mrb[6].mxu1 }
 0x100   :  { %v253_v51 = vmax.f32 %v209_v43, 0.0  ;;  %v261_v52 = vmax.f32 %v241_v44, 0.0  ;;  %v212_v53 = vadd.f32 %v340_v49, %v284_v16  ;;  %v244_v54 = vadd.f32 %v348_v50, %v284_v16  ;;  %v203_v55 = vpop.f32.mrb[7].mxu0  ;;  %v235_v56 = vpop.f32.mrb[7].mxu1 }
 0x101   :  { %v251_v57 = vmax.f32 %v201_v47, 0.0  ;;  %v259_v58 = vmax.f32 %v233_v48, 0.0  ;;  %v204_v59 = vadd.f32 %v284_v16, %v203_v55  ;;  %v236_v60 = vadd.f32 %v284_v16, %v235_v56 }
 0x102   :  { %270 = vst.msk [vmem:[%s519_s3 + $0x30] sm:$0xff] %vm263_vm0, %v253_v51  ;;  %278 = vst.msk [vmem:[%s519_s3 + $0x70] sm:$0xff] %vm263_vm0, %v261_v52  ;;  %v254_v61 = vmax.f32 %v212_v53, 0.0  ;;  %v262_v62 = vmax.f32 %v244_v54, 0.0 }
 0x103   :  { %268 = vst.msk [vmem:[%s519_s3 + $0x20] sm:$0xff] %vm263_vm0, %v251_v57  ;;  %276 = vst.msk [vmem:[%s519_s3 + $0x60] sm:$0xff] %vm263_vm0, %v259_v58  ;;  %v252_v63 = vmax.f32 %v204_v59, 0.0  ;;  %v260_v0 = vmax.f32 %v236_v60, 0.0 }
 0x104   :  { %271 = vst.msk [vmem:[%s519_s3 + $0x38] sm:$0xff] %vm263_vm0, %v254_v61  ;;  %279 = vst.msk [vmem:[%s519_s3 + $0x78] sm:$0xff] %vm263_vm0, %v262_v62 }
 0x105   :  { %269 = vst.msk [vmem:[%s519_s3 + $0x28] sm:$0xff] %vm263_vm0, %v252_v63  ;;  %277 = vst.msk [vmem:[%s519_s3 + $0x68] sm:$0xff] %vm263_vm0, %v260_v0 }

// kernel: deconv_ssd_forward.27
= control target key start
LH: loop header
LB: loop body
LE: loop exit
PB: predicated region body
PF: predicated region fallthrough
CT: control target
= control target key end

     0   :  { %vm155_vm0 = vcmask 130048   ;;  %s280_s1 = inlined_call_operand.vmem [shape: bf16[128,16], index: 1, kind: input, shape index: {}]   ;;  %s281_s0 = inlined_call_operand.vmem [shape: bf16[32,128], index: 0, kind: input, shape index: {}]   ;;  %s282_s2 = inlined_call_operand.vmem [shape: f32[1,16], index: 2, kind: input, shape index: {}]   ;;  %s283_s3 = inlined_call_operand.vmem [shape: f32[32,16], index: 3, kind: output, shape index: {}]  }
   0x1   :  { %v205_v0 = vld [vmem:[%s280_s1] sm:$0xff]   ;;  %v206_v1 = vld [vmem:[%s280_s1 + $0x8] sm:$0xff]   ;;  %v207_v2 = vld [vmem:[%s280_s1 + $0x10] sm:$0xff]  }
   0x2   :  { %185 = vmatprep.subr.bf16.mxu0 %v205_v0  ;;  %v208_v3 = vld [vmem:[%s280_s1 + $0x18] sm:$0xff]   ;;  %v213_v4 = vld [vmem:[%s281_s0] sm:$0xff]   ;;  %v210_v6 = vld [vmem:[%s280_s1 + $0x28] sm:$0xff]  }
   0x3   :  { %186 = vmatpush3.bf16.msra.mxu0 %v205_v0  ;;  %201 = vmatprep.mubr.bf16.mxu0 %v213_v4  ;;  %v209_v5 = vld [vmem:[%s280_s1 + $0x20] sm:$0xff]   ;;  %v211_v7 = vld [vmem:[%s280_s1 + $0x30] sm:$0xff]   ;;  %v212_v8 = vld [vmem:[%s280_s1 + $0x38] sm:$0xff]  }
   0x4   :  { %187 = vmatprep.subr.bf16.mxu0 %v206_v1  ;;  %v214_v9 = vld [vmem:[%s281_s0 + $0x8] sm:$0xff]   ;;  %v164_v10 = vld [vmem:[%s282_s2] ss:$0 sm:$0xff] }
   0x7   :  { %188 = vmatpush3.bf16.msra.mxu0 %v206_v1 }
   0x8   :  { %189 = vmatprep.subr.bf16.mxu0 %v207_v2 }
   0xb   :  { %190 = vmatpush3.bf16.msra.mxu0 %v207_v2 }
   0xc   :  { %191 = vmatprep.subr.bf16.mxu0 %v208_v3 }
   0xf   :  { %192 = vmatpush3.bf16.msra.mxu0 %v208_v3 }
  0x10   :  { %193 = vmatprep.subr.bf16.mxu0 %v209_v5 }
  0x13   :  { %194 = vmatpush3.bf16.msra.mxu0 %v209_v5 }
  0x14   :  { %195 = vmatprep.subr.bf16.mxu0 %v210_v6 }
  0x17   :  { %196 = vmatpush3.bf16.msra.mxu0 %v210_v6 }
  0x18   :  { %197 = vmatprep.subr.bf16.mxu0 %v211_v7 }
  0x1b   :  { %198 = vmatpush3.bf16.msra.mxu0 %v211_v7 }
  0x1c   :  { %199 = vmatprep.subr.bf16.mxu0 %v212_v8 }
  0x1f   :  { %200 = vmatpush3.bf16.msra.mxu0 %v212_v8 }
  0x22   :  { %202 = vmatmul.mubr.bf16.vlgmr.msra.gmra.mrb[0].mxu0 %v214_v9 }
  0xf5   :  { %v203_v11 = vpop.f32.mrb[0].mxu0 }
  0xf6   :  { %v145_v12 = vadd.f32 %v203_v11, %v164_v10  ;;  %v136_v13 = vpop.f32.mrb[1].mxu0 }
  0xf7   :  { %v137_v14 = vadd.f32 %v164_v10, %v136_v13  ;;  %v204_v15 = vpop.f32.mrb[2].mxu0 }
  0xf8   :  { %v153_v16 = vmax.f32 %v145_v12, 0.0  ;;  %v148_v17 = vadd.f32 %v204_v15, %v164_v10  ;;  %v139_v18 = vpop.f32.mrb[3].mxu0 }
  0xf9   :  { %v151_v19 = vmax.f32 %v137_v14, 0.0  ;;  %v140_v20 = vadd.f32 %v164_v10, %v139_v18 }
  0xfa   :  { %158 = vst.msk [vmem:[%s283_s3 + $0x10] sm:$0xff] %vm155_vm0, %v153_v16  ;;  %v154_v21 = vmax.f32 %v148_v17, 0.0 }
  0xfb   :  { %156 = vst.msk [vmem:[%s283_s3] sm:$0xff] %vm155_vm0, %v151_v19  ;;  %v152_v22 = vmax.f32 %v140_v20, 0.0 }
  0xfc   :  { %159 = vst.msk [vmem:[%s283_s3 + $0x18] sm:$0xff] %vm155_vm0, %v154_v21 }
  0xfd   :  { %157 = vst.msk [vmem:[%s283_s3 + $0x8] sm:$0xff] %vm155_vm0, %v152_v22 }

// kernel: deconv_ssd_forward.28
= control target key start
LH: loop header
LB: loop body
LE: loop exit
PB: predicated region body
PF: predicated region fallthrough
CT: control target
= control target key end

     0   :  { %vm155_vm0 = vcmask 64512   ;;  %s280_s1 = inlined_call_operand.vmem [shape: bf16[128,8], index: 1, kind: input, shape index: {}]   ;;  %s281_s0 = inlined_call_operand.vmem [shape: bf16[32,128], index: 0, kind: input, shape index: {}]   ;;  %s282_s2 = inlined_call_operand.vmem [shape: f32[1,8], index: 2, kind: input, shape index: {}]   ;;  %s283_s3 = inlined_call_operand.vmem [shape: f32[32,8], index: 3, kind: output, shape index: {}]  }
   0x1   :  { %v205_v0 = vld [vmem:[%s280_s1] sm:$0xff]   ;;  %v206_v1 = vld [vmem:[%s280_s1 + $0x8] sm:$0xff]   ;;  %v207_v2 = vld [vmem:[%s280_s1 + $0x10] sm:$0xff]  }
   0x2   :  { %185 = vmatprep.subr.bf16.mxu0 %v205_v0  ;;  %v208_v3 = vld [vmem:[%s280_s1 + $0x18] sm:$0xff]   ;;  %v213_v4 = vld [vmem:[%s281_s0] sm:$0xff]   ;;  %v210_v6 = vld [vmem:[%s280_s1 + $0x28] sm:$0xff]  }
   0x3   :  { %186 = vmatpush3.bf16.msra.mxu0 %v205_v0  ;;  %201 = vmatprep.mubr.bf16.mxu0 %v213_v4  ;;  %v209_v5 = vld [vmem:[%s280_s1 + $0x20] sm:$0xff]   ;;  %v211_v7 = vld [vmem:[%s280_s1 + $0x30] sm:$0xff]   ;;  %v212_v8 = vld [vmem:[%s280_s1 + $0x38] sm:$0xff]  }
   0x4   :  { %187 = vmatprep.subr.bf16.mxu0 %v206_v1  ;;  %v214_v9 = vld [vmem:[%s281_s0 + $0x8] sm:$0xff]   ;;  %v164_v10 = vld [vmem:[%s282_s2] ss:$0 sm:$0xff] }
   0x7   :  { %188 = vmatpush3.bf16.msra.mxu0 %v206_v1 }
   0x8   :  { %189 = vmatprep.subr.bf16.mxu0 %v207_v2 }
   0xb   :  { %190 = vmatpush3.bf16.msra.mxu0 %v207_v2 }
   0xc   :  { %191 = vmatprep.subr.bf16.mxu0 %v208_v3 }
   0xf   :  { %192 = vmatpush3.bf16.msra.mxu0 %v208_v3 }
  0x10   :  { %193 = vmatprep.subr.bf16.mxu0 %v209_v5 }
  0x13   :  { %194 = vmatpush3.bf16.msra.mxu0 %v209_v5 }
  0x14   :  { %195 = vmatprep.subr.bf16.mxu0 %v210_v6 }
  0x17   :  { %196 = vmatpush3.bf16.msra.mxu0 %v210_v6 }
  0x18   :  { %197 = vmatprep.subr.bf16.mxu0 %v211_v7 }
  0x1b   :  { %198 = vmatpush3.bf16.msra.mxu0 %v211_v7 }
  0x1c   :  { %199 = vmatprep.subr.bf16.mxu0 %v212_v8 }
  0x1f   :  { %200 = vmatpush3.bf16.msra.mxu0 %v212_v8 }
  0x22   :  { %202 = vmatmul.mubr.bf16.vlgmr.msra.gmra.mrb[0].mxu0 %v214_v9 }
  0xf5   :  { %v203_v11 = vpop.f32.mrb[0].mxu0 }
  0xf6   :  { %v145_v12 = vadd.f32 %v203_v11, %v164_v10  ;;  %v136_v13 = vpop.f32.mrb[1].mxu0 }
  0xf7   :  { %v137_v14 = vadd.f32 %v164_v10, %v136_v13  ;;  %v204_v15 = vpop.f32.mrb[2].mxu0 }
  0xf8   :  { %v153_v16 = vmax.f32 %v145_v12, 0.0  ;;  %v148_v17 = vadd.f32 %v204_v15, %v164_v10  ;;  %v139_v18 = vpop.f32.mrb[3].mxu0 }
  0xf9   :  { %v151_v19 = vmax.f32 %v137_v14, 0.0  ;;  %v140_v20 = vadd.f32 %v164_v10, %v139_v18 }
  0xfa   :  { %158 = vst.msk [vmem:[%s283_s3 + $0x10] sm:$0xff] %vm155_vm0, %v153_v16  ;;  %v154_v21 = vmax.f32 %v148_v17, 0.0 }
  0xfb   :  { %156 = vst.msk [vmem:[%s283_s3] sm:$0xff] %vm155_vm0, %v151_v19  ;;  %v152_v22 = vmax.f32 %v140_v20, 0.0 }
  0xfc   :  { %159 = vst.msk [vmem:[%s283_s3 + $0x18] sm:$0xff] %vm155_vm0, %v154_v21 }
  0xfd   :  { %157 = vst.msk [vmem:[%s283_s3 + $0x8] sm:$0xff] %vm155_vm0, %v152_v22 }

// kernel: deconv_ssd_forward.30
= control target key start
LH: loop header
LB: loop body
LE: loop exit
PB: predicated region body
PF: predicated region fallthrough
CT: control target
= control target key end

     0   :  { %v230_v1 = vmov 0.0   ;;  %vm231_vm0 = vmmov 0   ;;  %vm137_vm1 = vcmask 64512   ;;  %s285_s0 = inlined_call_operand.vmem [shape: bf16[8,128], index: 0, kind: input, shape index: {}]   ;;  %s286_s1 = inlined_call_operand.vmem [shape: bf16[128,8], index: 1, kind: input, shape index: {}]   ;;  %s287_s2 = inlined_call_operand.vmem [shape: f32[1,8], index: 2, kind: input, shape index: {}]   ;;  %s288_s3 = inlined_call_operand.vmem [shape: f32[8,8], index: 3, kind: output, shape index: {}]  }
   0x1   :  { %v221_v0 = vld [vmem:[%s286_s1] sm:$0xff]   ;;  %199 = vmatprep.subr.bf16.mxu0 %v230_v1  ;;  %v222_v2 = vld [vmem:[%s286_s1 + $0x8] sm:$0xff]   ;;  %215 = vmatprep.mubr.msk.bf16.mxu0 %vm231_vm0, %v230_v1  ;;  %v223_v3 = vld [vmem:[%s286_s1 + $0x10] sm:$0xff]  }
   0x2   :  { %200 = vmatpush3.bf16.msra.mxu0 %v221_v0  ;;  %v224_v4 = vld [vmem:[%s286_s1 + $0x18] sm:$0xff]   ;;  %v225_v5 = vld [vmem:[%s286_s1 + $0x20] sm:$0xff]   ;;  %v226_v6 = vld [vmem:[%s286_s1 + $0x28] sm:$0xff]  }
   0x3   :  { %201 = vmatprep.subr.bf16.mxu0 %v230_v1  ;;  %v227_v7 = vld [vmem:[%s286_s1 + $0x30] sm:$0xff]   ;;  %v228_v8 = vld [vmem:[%s286_s1 + $0x38] sm:$0xff]   ;;  %v229_v9 = vld [vmem:[%s285_s0] sm:$0xff]  }
   0x4   :  { %v180_v10 = vld [vmem:[%s287_s2] ss:$0 sm:$0xff] }
   0x6   :  { %202 = vmatpush3.bf16.msra.mxu0 %v222_v2 }
   0x7   :  { %203 = vmatprep.subr.bf16.mxu0 %v230_v1 }
   0xa   :  { %204 = vmatpush3.bf16.msra.mxu0 %v223_v3 }
   0xb   :  { %205 = vmatprep.subr.bf16.mxu0 %v230_v1 }
   0xe   :  { %206 = vmatpush3.bf16.msra.mxu0 %v224_v4 }
   0xf   :  { %207 = vmatprep.subr.bf16.mxu0 %v230_v1 }
  0x12   :  { %208 = vmatpush3.bf16.msra.mxu0 %v225_v5 }
  0x13   :  { %209 = vmatprep.subr.bf16.mxu0 %v230_v1 }
  0x16   :  { %210 = vmatpush3.bf16.msra.mxu0 %v226_v6 }
  0x17   :  { %211 = vmatprep.subr.bf16.mxu0 %v230_v1 }
  0x1a   :  { %212 = vmatpush3.bf16.msra.mxu0 %v227_v7 }
  0x1b   :  { %213 = vmatprep.subr.bf16.mxu0 %v230_v1 }
  0x1e   :  { %214 = vmatpush3.bf16.msra.mxu0 %v228_v8 }
  0x21   :  { %216 = vmatmul.mubr.bf16.vlgmr.msra.gmra.mrb[0].mxu0 %v229_v9 }
  0xf4   :  { %v128_v11 = vpop.f32.mrb[0].mxu0 }
  0xf5   :  { %v129_v12 = vadd.f32 %v180_v10, %v128_v11  ;;  %v217_v13 = vpop.f32.mrb[1].mxu0 }
  0xf6   :  { %v131_v14 = vpop.f32.mrb[2].mxu0 }
  0xf7   :  { %v135_v15 = vmax.f32 %v129_v12, 0.0  ;;  %v218_v16 = vpop.f32.mrb[3].mxu0 }
  0xf9   :  { %138 = vst.msk [vmem:[#allocation2] sm:$0xff] %vm137_vm1, %v135_v15 }
 0x100   :  { %v169_v17 = vld [vmem:[#allocation2] sm:$0xff] }
 0x101   :  { %170 = vst [vmem:[%s288_s3] sm:$0xff] %v169_v17 }

// kernel: deconv_ssd_forward.29
= control target key start
LH: loop header
LB: loop body
LE: loop exit
PB: predicated region body
PF: predicated region fallthrough
CT: control target
= control target key end

     0   :  { %v230_v1 = vmov 0.0   ;;  %vm231_vm0 = vmmov 0   ;;  %vm137_vm1 = vcmask 130048   ;;  %s285_s0 = inlined_call_operand.vmem [shape: bf16[8,128], index: 0, kind: input, shape index: {}]   ;;  %s286_s1 = inlined_call_operand.vmem [shape: bf16[128,16], index: 1, kind: input, shape index: {}]   ;;  %s287_s2 = inlined_call_operand.vmem [shape: f32[1,16], index: 2, kind: input, shape index: {}]   ;;  %s288_s3 = inlined_call_operand.vmem [shape: f32[8,16], index: 3, kind: output, shape index: {}]  }
   0x1   :  { %v221_v0 = vld [vmem:[%s286_s1] sm:$0xff]   ;;  %199 = vmatprep.subr.bf16.mxu0 %v230_v1  ;;  %v222_v2 = vld [vmem:[%s286_s1 + $0x8] sm:$0xff]   ;;  %215 = vmatprep.mubr.msk.bf16.mxu0 %vm231_vm0, %v230_v1  ;;  %v223_v3 = vld [vmem:[%s286_s1 + $0x10] sm:$0xff]  }
   0x2   :  { %200 = vmatpush3.bf16.msra.mxu0 %v221_v0  ;;  %v224_v4 = vld [vmem:[%s286_s1 + $0x18] sm:$0xff]   ;;  %v225_v5 = vld [vmem:[%s286_s1 + $0x20] sm:$0xff]   ;;  %v226_v6 = vld [vmem:[%s286_s1 + $0x28] sm:$0xff]  }
   0x3   :  { %201 = vmatprep.subr.bf16.mxu0 %v230_v1  ;;  %v227_v7 = vld [vmem:[%s286_s1 + $0x30] sm:$0xff]   ;;  %v228_v8 = vld [vmem:[%s286_s1 + $0x38] sm:$0xff]   ;;  %v229_v9 = vld [vmem:[%s285_s0] sm:$0xff]  }
   0x4   :  { %v180_v10 = vld [vmem:[%s287_s2] ss:$0 sm:$0xff] }
   0x6   :  { %202 = vmatpush3.bf16.msra.mxu0 %v222_v2 }
   0x7   :  { %203 = vmatprep.subr.bf16.mxu0 %v230_v1 }
   0xa   :  { %204 = vmatpush3.bf16.msra.mxu0 %v223_v3 }
   0xb   :  { %205 = vmatprep.subr.bf16.mxu0 %v230_v1 }
   0xe   :  { %206 = vmatpush3.bf16.msra.mxu0 %v224_v4 }
   0xf   :  { %207 = vmatprep.subr.bf16.mxu0 %v230_v1 }
  0x12   :  { %208 = vmatpush3.bf16.msra.mxu0 %v225_v5 }
  0x13   :  { %209 = vmatprep.subr.bf16.mxu0 %v230_v1 }
  0x16   :  { %210 = vmatpush3.bf16.msra.mxu0 %v226_v6 }
  0x17   :  { %211 = vmatprep.subr.bf16.mxu0 %v230_v1 }
  0x1a   :  { %212 = vmatpush3.bf16.msra.mxu0 %v227_v7 }
  0x1b   :  { %213 = vmatprep.subr.bf16.mxu0 %v230_v1 }
  0x1e   :  { %214 = vmatpush3.bf16.msra.mxu0 %v228_v8 }
  0x21   :  { %216 = vmatmul.mubr.bf16.vlgmr.msra.gmra.mrb[0].mxu0 %v229_v9 }
  0xf4   :  { %v128_v11 = vpop.f32.mrb[0].mxu0 }
  0xf5   :  { %v129_v12 = vadd.f32 %v180_v10, %v128_v11  ;;  %v217_v13 = vpop.f32.mrb[1].mxu0 }
  0xf6   :  { %v131_v14 = vpop.f32.mrb[2].mxu0 }
  0xf7   :  { %v135_v15 = vmax.f32 %v129_v12, 0.0  ;;  %v218_v16 = vpop.f32.mrb[3].mxu0 }
  0xf9   :  { %138 = vst.msk [vmem:[#allocation2] sm:$0xff] %vm137_vm1, %v135_v15 }
 0x100   :  { %v169_v17 = vld [vmem:[#allocation2] sm:$0xff] }
 0x101   :  { %170 = vst [vmem:[%s288_s3] sm:$0xff] %v169_v17 }

// kernel: deconv_ssd_forward.32
= control target key start
LH: loop header
LB: loop body
LE: loop exit
PB: predicated region body
PF: predicated region fallthrough
CT: control target
= control target key end

     0   :  { %v284_v1 = vmov 0.0   ;;  %vm285_vm0 = vmmov 0   ;;  %v61_v4 = vlaneseq  ;;  %v286_v14 = vmov 1966171168   ;;  %s361_s0 = inlined_call_operand.vmem [shape: bf16[2,128], index: 0, kind: input, shape index: {}]   ;;  %s362_s1 = inlined_call_operand.vmem [shape: bf16[128,64], index: 1, kind: input, shape index: {}]   ;;  %s363_s2 = inlined_call_operand.vmem [shape: f32[1,64], index: 2, kind: input, shape index: {}]   ;;  %s364_s3 = inlined_call_operand.vmem [shape: f32[2,64], index: 3, kind: output, shape index: {}]  }
   0x1   :  { %v276_v0 = vld [vmem:[%s362_s1] sm:$0xff]   ;;  %253 = vmatprep.subr.bf16.mxu0 %v284_v1  ;;  %v277_v2 = vld [vmem:[%s362_s1 + $0x8] sm:$0xff]   ;;  %269 = vmatprep.mubr.msk.bf16.mxu0 %vm285_vm0, %v284_v1  ;;  %v278_v3 = vld [vmem:[%s362_s1 + $0x10] sm:$0xff]   ;;  %v59_v15 = vunpack.c.l.s4 %v286_v14  ;;  %vm193_vm1 = vcmask 523264  }
   0x2   :  { %254 = vmatpush3.bf16.msra.mxu0 %v276_v0  ;;  %v279_v5 = vld [vmem:[%s362_s1 + $0x18] sm:$0xff]   ;;  %v15_v6 = vld [vmem:[%s361_s0] sm:$0x1]  ;;  %v16_v7 = vld [vmem:[%s361_s0 + $0x1] sm:$0x1]  ;;  %v62_v16 = vshrl.u32 %v61_v4, 7 }
   0x3   :  { %255 = vmatprep.subr.bf16.mxu0 %v284_v1  ;;  %v17_v8 = vld [vmem:[%s361_s0 + $0x2] sm:$0x1]  ;;  %v18_v9 = vld [vmem:[%s361_s0 + $0x3] sm:$0x1]  ;;  %v19_v10 = vld [vmem:[%s361_s0 + $0x4] sm:$0x1]  ;;  %v54_v17 = vcombine.low %v15_v6, %v16_v7  ;;  %v60_v21 = vunpack.c.0.s8 %v59_v15 }
   0x4   :  { %v20_v11 = vld [vmem:[%s361_s0 + $0x5] sm:$0x1]  ;;  %v21_v12 = vld [vmem:[%s361_s0 + $0x6] sm:$0x1]  ;;  %v22_v13 = vld [vmem:[%s361_s0 + $0x7] sm:$0x1]  ;;  %v55_v18 = vcombine.low %v17_v8, %v18_v9 }
   0x5   :  { %v56_v19 = vcombine.low %v19_v10, %v20_v11  ;;  %v57_v20 = vcombine.low %v21_v12, %v22_v13  ;;  %v280_v22 = vld [vmem:[%s362_s1 + $0x20] sm:$0xff]   ;;  %v63_v23 = vsub.s32 %v60_v21, %v62_v16  ;;  %v281_v28 = vld [vmem:[%s362_s1 + $0x28] sm:$0xff]   ;;  %v282_v31 = vld [vmem:[%s362_s1 + $0x30] sm:$0xff]  }
   0x6   :  { %256 = vmatpush3.bf16.msra.mxu0 %v277_v2  ;;  %v283_v34 = vld [vmem:[%s362_s1 + $0x38] sm:$0xff]   ;;  %v235_v36 = vld [vmem:[%s363_s2] ss:$0 sm:$0xff] }
   0x7   :  { %257 = vmatprep.subr.bf16.mxu0 %v284_v1  ;;  %v64_v24 = vrot.slane %v54_v17, %v63_v23  ;;  %v71_v25 = vrot.slane %v55_v18, %v63_v23  ;;  %v78_v26 = vrot.slane %v56_v19, %v63_v23  ;;  %v85_v27 = vrot.slane %v57_v20, %v63_v23 }
   0x9   :  { %v86_v29 = vcombine.low %v64_v24, %v71_v25  ;;  %v87_v30 = vcombine.low %v78_v26, %v85_v27 }
   0xa   :  { %258 = vmatpush3.bf16.msra.mxu0 %v278_v3 }
   0xb   :  { %259 = vmatprep.subr.bf16.mxu0 %v284_v1  ;;  %v94_v32 = vrot.slane %v86_v29, %v63_v23  ;;  %v101_v33 = vrot.slane %v87_v30, %v63_v23 }
   0xd   :  { %v102_v35 = vcombine.low %v94_v32, %v101_v33 }
   0xe   :  { %260 = vmatpush3.bf16.msra.mxu0 %v279_v5 }
   0xf   :  { %261 = vmatprep.subr.bf16.mxu0 %v284_v1 }
  0x12   :  { %262 = vmatpush3.bf16.msra.mxu0 %v280_v22 }
  0x13   :  { %263 = vmatprep.subr.bf16.mxu0 %v284_v1 }
  0x16   :  { %264 = vmatpush3.bf16.msra.mxu0 %v281_v28 }
  0x17   :  { %265 = vmatprep.subr.bf16.mxu0 %v284_v1 }
  0x1a   :  { %266 = vmatpush3.bf16.msra.mxu0 %v282_v31 }
  0x1b   :  { %267 = vmatprep.subr.bf16.mxu0 %v284_v1 }
  0x1e   :  { %268 = vmatpush3.bf16.msra.mxu0 %v283_v34 }
  0x21   :  { %270 = vmatmul.mubr.bf16.vlgmr.msra.gmra.mrb[0].mxu0 %v102_v35 }
  0xf4   :  { %v186_v37 = vpop.f32.mrb[0].mxu0 }
  0xf5   :  { %v187_v38 = vadd.f32 %v235_v36, %v186_v37  ;;  %v271_v39 = vpop.f32.mrb[1].mxu0 }
  0xf6   :  { %v189_v40 = vpop.f32.mrb[2].mxu0 }
  0xf7   :  { %194 = vst.msk [vmem:[#allocation2] sm:$0xff] %vm193_vm1, %v187_v38  ;;  %v272_v41 = vpop.f32.mrb[3].mxu0 }
  0xfe   :  { %v213_v42 = vld [vmem:[#allocation2] sm:$0x3] }
  0xff   :  { %214 = vst [vmem:[%s364_s3] sm:$0x3] %v213_v42 }

// kernel: deconv_ssd_forward.31
= control target key start
LH: loop header
LB: loop body
LE: loop exit
PB: predicated region body
PF: predicated region fallthrough
CT: control target
= control target key end

     0   :  { %v286_v1 = vmov 0.0   ;;  %vm287_vm0 = vmmov 0   ;;  %v61_v4 = vlaneseq  ;;  %v288_v14 = vmov 1966171168   ;;  %s363_s0 = inlined_call_operand.vmem [shape: bf16[2,128], index: 0, kind: input, shape index: {}]   ;;  %s364_s1 = inlined_call_operand.vmem [shape: bf16[128,16], index: 1, kind: input, shape index: {}]   ;;  %s365_s2 = inlined_call_operand.vmem [shape: f32[1,16], index: 2, kind: input, shape index: {}]   ;;  %s366_s3 = inlined_call_operand.vmem [shape: f32[2,16], index: 3, kind: output, shape index: {}]  }
   0x1   :  { %v278_v0 = vld [vmem:[%s364_s1] sm:$0xff]   ;;  %255 = vmatprep.subr.bf16.mxu0 %v286_v1  ;;  %v279_v2 = vld [vmem:[%s364_s1 + $0x8] sm:$0xff]   ;;  %271 = vmatprep.mubr.msk.bf16.mxu0 %vm287_vm0, %v286_v1  ;;  %v280_v3 = vld [vmem:[%s364_s1 + $0x10] sm:$0xff]   ;;  %v59_v15 = vunpack.c.l.s4 %v288_v14  ;;  %vm195_vm1 = vcmask 130048  }
   0x2   :  { %256 = vmatpush3.bf16.msra.mxu0 %v278_v0  ;;  %v281_v5 = vld [vmem:[%s364_s1 + $0x18] sm:$0xff]   ;;  %v15_v6 = vld [vmem:[%s363_s0] sm:$0x1]  ;;  %v16_v7 = vld [vmem:[%s363_s0 + $0x1] sm:$0x1]  ;;  %v62_v16 = vshrl.u32 %v61_v4, 7 }
   0x3   :  { %257 = vmatprep.subr.bf16.mxu0 %v286_v1  ;;  %v17_v8 = vld [vmem:[%s363_s0 + $0x2] sm:$0x1]  ;;  %v18_v9 = vld [vmem:[%s363_s0 + $0x3] sm:$0x1]  ;;  %v19_v10 = vld [vmem:[%s363_s0 + $0x4] sm:$0x1]  ;;  %v54_v17 = vcombine.low %v15_v6, %v16_v7  ;;  %v60_v21 = vunpack.c.0.s8 %v59_v15 }
   0x4   :  { %v20_v11 = vld [vmem:[%s363_s0 + $0x5] sm:$0x1]  ;;  %v21_v12 = vld [vmem:[%s363_s0 + $0x6] sm:$0x1]  ;;  %v22_v13 = vld [vmem:[%s363_s0 + $0x7] sm:$0x1]  ;;  %v55_v18 = vcombine.low %v17_v8, %v18_v9 }
   0x5   :  { %v56_v19 = vcombine.low %v19_v10, %v20_v11  ;;  %v57_v20 = vcombine.low %v21_v12, %v22_v13  ;;  %v282_v22 = vld [vmem:[%s364_s1 + $0x20] sm:$0xff]   ;;  %v63_v23 = vsub.s32 %v60_v21, %v62_v16  ;;  %v283_v28 = vld [vmem:[%s364_s1 + $0x28] sm:$0xff]   ;;  %v284_v31 = vld [vmem:[%s364_s1 + $0x30] sm:$0xff]  }
   0x6   :  { %258 = vmatpush3.bf16.msra.mxu0 %v279_v2  ;;  %v285_v34 = vld [vmem:[%s364_s1 + $0x38] sm:$0xff]   ;;  %v237_v36 = vld [vmem:[%s365_s2] ss:$0 sm:$0xff] }
   0x7   :  { %259 = vmatprep.subr.bf16.mxu0 %v286_v1  ;;  %v64_v24 = vrot.slane %v54_v17, %v63_v23  ;;  %v71_v25 = vrot.slane %v55_v18, %v63_v23  ;;  %v78_v26 = vrot.slane %v56_v19, %v63_v23  ;;  %v85_v27 = vrot.slane %v57_v20, %v63_v23 }
   0x9   :  { %v86_v29 = vcombine.low %v64_v24, %v71_v25  ;;  %v87_v30 = vcombine.low %v78_v26, %v85_v27 }
   0xa   :  { %260 = vmatpush3.bf16.msra.mxu0 %v280_v3 }
   0xb   :  { %261 = vmatprep.subr.bf16.mxu0 %v286_v1  ;;  %v94_v32 = vrot.slane %v86_v29, %v63_v23  ;;  %v101_v33 = vrot.slane %v87_v30, %v63_v23 }
   0xd   :  { %v102_v35 = vcombine.low %v94_v32, %v101_v33 }
   0xe   :  { %262 = vmatpush3.bf16.msra.mxu0 %v281_v5 }
   0xf   :  { %263 = vmatprep.subr.bf16.mxu0 %v286_v1 }
  0x12   :  { %264 = vmatpush3.bf16.msra.mxu0 %v282_v22 }
  0x13   :  { %265 = vmatprep.subr.bf16.mxu0 %v286_v1 }
  0x16   :  { %266 = vmatpush3.bf16.msra.mxu0 %v283_v28 }
  0x17   :  { %267 = vmatprep.subr.bf16.mxu0 %v286_v1 }
  0x1a   :  { %268 = vmatpush3.bf16.msra.mxu0 %v284_v31 }
  0x1b   :  { %269 = vmatprep.subr.bf16.mxu0 %v286_v1 }
  0x1e   :  { %270 = vmatpush3.bf16.msra.mxu0 %v285_v34 }
  0x21   :  { %272 = vmatmul.mubr.bf16.vlgmr.msra.gmra.mrb[0].mxu0 %v102_v35 }
  0xf4   :  { %v186_v37 = vpop.f32.mrb[0].mxu0 }
  0xf5   :  { %v187_v38 = vadd.f32 %v237_v36, %v186_v37  ;;  %v273_v39 = vpop.f32.mrb[1].mxu0 }
  0xf6   :  { %v189_v40 = vpop.f32.mrb[2].mxu0 }
  0xf7   :  { %v193_v41 = vmax.f32 %v187_v38, 0.0  ;;  %v274_v42 = vpop.f32.mrb[3].mxu0 }
  0xf9   :  { %196 = vst.msk [vmem:[#allocation2] sm:$0xff] %vm195_vm1, %v193_v41 }
 0x100   :  { %v215_v43 = vld [vmem:[#allocation2] sm:$0x3] }
 0x101   :  { %216 = vst [vmem:[%s366_s3] sm:$0x3] %v215_v43 }

// kernel: deconv_ssd_forward.33
= control target key start
LH: loop header
LB: loop body
LE: loop exit
PB: predicated region body
PF: predicated region fallthrough
CT: control target
= control target key end

     0   :  { %vm212_vm0 = vcmask 130048   ;;  %s403_s0 = inlined_call_operand.vmem [shape: bf16[8,256], index: 0, kind: input, shape index: {}]   ;;  %s404_s1 = inlined_call_operand.vmem [shape: bf16[256,16], index: 1, kind: input, shape index: {}]   ;;  %s405_s2 = inlined_call_operand.vmem [shape: f32[1,16], index: 2, kind: input, shape index: {}]   ;;  %s406_s3 = inlined_call_operand.vmem [shape: f32[8,16], index: 3, kind: input, shape index: {}]   ;;  %s407_s4 = inlined_call_operand.vmem [shape: f32[8,16], index: 4, kind: output, shape index: {}]  }
   0x1   :  { %v296_v0 = vld [vmem:[%s404_s1 + $0x40] sm:$0xff]   ;;  %v298_v2 = vld [vmem:[%s404_s1 + $0x48] sm:$0xff]   ;;  %v300_v4 = vld [vmem:[%s404_s1 + $0x50] sm:$0xff]  }
   0x2   :  { %v297_v1 = vld [vmem:[%s404_s1] sm:$0xff]   ;;  %274 = vmatprep.subr.bf16.mxu0 %v296_v0  ;;  %v299_v3 = vld [vmem:[%s404_s1 + $0x8] sm:$0xff]   ;;  %v301_v5 = vld [vmem:[%s404_s1 + $0x10] sm:$0xff]  }
   0x3   :  { %275 = vmatpush3.bf16.msra.mxu0 %v297_v1  ;;  %v302_v6 = vld [vmem:[%s404_s1 + $0x58] sm:$0xff]   ;;  %v304_v8 = vld [vmem:[%s404_s1 + $0x60] sm:$0xff]   ;;  %v306_v10 = vld [vmem:[%s404_s1 + $0x68] sm:$0xff]  }
   0x4   :  { %276 = vmatprep.subr.bf16.mxu0 %v298_v2  ;;  %v303_v7 = vld [vmem:[%s404_s1 + $0x18] sm:$0xff]   ;;  %v305_v9 = vld [vmem:[%s404_s1 + $0x20] sm:$0xff]   ;;  %v307_v12 = vld [vmem:[%s404_s1 + $0x28] sm:$0xff]  }
   0x5   :  { %v314_v11 = vld [vmem:[%s403_s0 + $0x4] ss:$8 sps:$4 sm:$0xff]   ;;  %v308_v13 = vld [vmem:[%s404_s1 + $0x70] sm:$0xff]   ;;  %v310_v15 = vld [vmem:[%s404_s1 + $0x78] sm:$0xff]  }
   0x6   :  { %197 = vmatprep.mubr.bf16.mxu0 %v314_v11  ;;  %v309_v14 = vld [vmem:[%s404_s1 + $0x30] sm:$0xff]   ;;  %v311_v16 = vld [vmem:[%s404_s1 + $0x38] sm:$0xff]   ;;  %v312_v17 = vld [vmem:[%s403_s0] ss:$8 sps:$4 sm:$0xff]  }
   0x7   :  { %277 = vmatpush3.bf16.msra.mxu0 %v299_v3  ;;  %v255_v19 = vld [vmem:[%s405_s2] ss:$0 sm:$0xff] }
   0x8   :  { %278 = vmatprep.subr.bf16.mxu0 %v300_v4  ;;  %v206_v23 = vld [vmem:[%s406_s3] sm:$0xff] }
   0xb   :  { %279 = vmatpush3.bf16.msra.mxu0 %v301_v5 }
   0xc   :  { %280 = vmatprep.subr.bf16.mxu0 %v302_v6 }
   0xf   :  { %281 = vmatpush3.bf16.msra.mxu0 %v303_v7 }
  0x10   :  { %282 = vmatprep.subr.bf16.mxu0 %v304_v8 }
  0x13   :  { %283 = vmatpush3.bf16.msra.mxu0 %v305_v9 }
  0x14   :  { %284 = vmatprep.subr.bf16.mxu0 %v306_v10 }
  0x17   :  { %285 = vmatpush3.bf16.msra.mxu0 %v307_v12 }
  0x18   :  { %286 = vmatprep.subr.bf16.mxu0 %v308_v13 }
  0x1b   :  { %287 = vmatpush3.bf16.msra.mxu0 %v309_v14 }
  0x1c   :  { %288 = vmatprep.subr.bf16.mxu0 %v310_v15 }
  0x1f   :  { %289 = vmatpush3.bf16.msra.mxu0 %v311_v16 }
  0x22   :  { %198 = vmatmul.mubr.bf16.vlgmr.msra.gmra.mrb[0].mxu0 %v312_v17 }
  0xf5   :  { %v290_v18 = vpop.f32.mrb[0].mxu0 }
  0xf6   :  { %v291_v20 = vpop.f32.mrb[1].mxu0 }
  0xf7   :  { %v292_v21 = vadd.f32 %v291_v20, %v290_v18  ;;  %v293_v22 = vpop.f32.mrb[2].mxu0 }
  0xf8   :  { %v294_v24 = vpop.f32.mrb[3].mxu0 }
  0xf9   :  { %v200_v25 = vadd.f32 %v292_v21, %v255_v19 }
  0xfb   :  { %v208_v26 = vmul.f32 %v206_v23, %v200_v25 }
  0xfd   :  { %v210_v27 = vmax.f32 %v208_v26, 0.0 }
  0xff   :  { %213 = vst.msk [vmem:[#allocation2] sm:$0xff] %vm212_vm0, %v210_v27 }
 0x106   :  { %v244_v28 = vld [vmem:[#allocation2] sm:$0xff] }
 0x107   :  { %245 = vst [vmem:[%s407_s4] sm:$0xff] %v244_v28 }

// kernel: deconv_ssd_forward.40
= control target key start
LH: loop header
LB: loop body
LE: loop exit
PB: predicated region body
PF: predicated region fallthrough
CT: control target
= control target key end

     0   :  { %vm203_vm0 = vcmask 162816   ;;  %s386_s0 = inlined_call_operand.vmem [shape: bf16[8,256], index: 0, kind: input, shape index: {}]   ;;  %s387_s1 = inlined_call_operand.vmem [shape: bf16[256,20], index: 1, kind: input, shape index: {}]   ;;  %s388_s2 = inlined_call_operand.vmem [shape: f32[1,20], index: 2, kind: input, shape index: {}]   ;;  %s389_s3 = inlined_call_operand.vmem [shape: f32[8,20], index: 3, kind: output, shape index: {}]  }
   0x1   :  { %v287_v0 = vld [vmem:[%s387_s1 + $0x40] sm:$0xff]   ;;  %v289_v2 = vld [vmem:[%s387_s1 + $0x48] sm:$0xff]   ;;  %v291_v4 = vld [vmem:[%s387_s1 + $0x50] sm:$0xff]  }
   0x2   :  { %v288_v1 = vld [vmem:[%s387_s1] sm:$0xff]   ;;  %265 = vmatprep.subr.bf16.mxu0 %v287_v0  ;;  %v290_v3 = vld [vmem:[%s387_s1 + $0x8] sm:$0xff]   ;;  %v292_v5 = vld [vmem:[%s387_s1 + $0x10] sm:$0xff]  }
   0x3   :  { %266 = vmatpush3.bf16.msra.mxu0 %v288_v1  ;;  %v293_v6 = vld [vmem:[%s387_s1 + $0x58] sm:$0xff]   ;;  %v295_v8 = vld [vmem:[%s387_s1 + $0x60] sm:$0xff]   ;;  %v297_v10 = vld [vmem:[%s387_s1 + $0x68] sm:$0xff]  }
   0x4   :  { %267 = vmatprep.subr.bf16.mxu0 %v289_v2  ;;  %v294_v7 = vld [vmem:[%s387_s1 + $0x18] sm:$0xff]   ;;  %v296_v9 = vld [vmem:[%s387_s1 + $0x20] sm:$0xff]   ;;  %v298_v12 = vld [vmem:[%s387_s1 + $0x28] sm:$0xff]  }
   0x5   :  { %v305_v11 = vld [vmem:[%s386_s0 + $0x4] ss:$8 sps:$4 sm:$0xff]   ;;  %v299_v13 = vld [vmem:[%s387_s1 + $0x70] sm:$0xff]   ;;  %v301_v15 = vld [vmem:[%s387_s1 + $0x78] sm:$0xff]  }
   0x6   :  { %194 = vmatprep.mubr.bf16.mxu0 %v305_v11  ;;  %v300_v14 = vld [vmem:[%s387_s1 + $0x30] sm:$0xff]   ;;  %v302_v16 = vld [vmem:[%s387_s1 + $0x38] sm:$0xff]   ;;  %v303_v17 = vld [vmem:[%s386_s0] ss:$8 sps:$4 sm:$0xff]  }
   0x7   :  { %268 = vmatpush3.bf16.msra.mxu0 %v290_v3  ;;  %v246_v19 = vld [vmem:[%s388_s2] ss:$0 sm:$0xff] }
   0x8   :  { %269 = vmatprep.subr.bf16.mxu0 %v291_v4 }
   0xb   :  { %270 = vmatpush3.bf16.msra.mxu0 %v292_v5 }
   0xc   :  { %271 = vmatprep.subr.bf16.mxu0 %v293_v6 }
   0xf   :  { %272 = vmatpush3.bf16.msra.mxu0 %v294_v7 }
  0x10   :  { %273 = vmatprep.subr.bf16.mxu0 %v295_v8 }
  0x13   :  { %274 = vmatpush3.bf16.msra.mxu0 %v296_v9 }
  0x14   :  { %275 = vmatprep.subr.bf16.mxu0 %v297_v10 }
  0x17   :  { %276 = vmatpush3.bf16.msra.mxu0 %v298_v12 }
  0x18   :  { %277 = vmatprep.subr.bf16.mxu0 %v299_v13 }
  0x1b   :  { %278 = vmatpush3.bf16.msra.mxu0 %v300_v14 }
  0x1c   :  { %279 = vmatprep.subr.bf16.mxu0 %v301_v15 }
  0x1f   :  { %280 = vmatpush3.bf16.msra.mxu0 %v302_v16 }
  0x22   :  { %195 = vmatmul.mubr.bf16.vlgmr.msra.gmra.mrb[0].mxu0 %v303_v17 }
  0xf5   :  { %v281_v18 = vpop.f32.mrb[0].mxu0 }
  0xf6   :  { %v282_v20 = vpop.f32.mrb[1].mxu0 }
  0xf7   :  { %v283_v21 = vadd.f32 %v282_v20, %v281_v18  ;;  %v284_v22 = vpop.f32.mrb[2].mxu0 }
  0xf8   :  { %v285_v23 = vpop.f32.mrb[3].mxu0 }
  0xf9   :  { %v197_v24 = vadd.f32 %v283_v21, %v246_v19 }
  0xfb   :  { %204 = vst.msk [vmem:[#allocation2] sm:$0xff] %vm203_vm0, %v197_v24 }
 0x102   :  { %v235_v25 = vld [vmem:[#allocation2] sm:$0xff] }
 0x103   :  { %236 = vst [vmem:[%s389_s3] sm:$0xff] %v235_v25 }

// kernel: deconv_ssd_forward.34
= control target key start
LH: loop header
LB: loop body
LE: loop exit
PB: predicated region body
PF: predicated region fallthrough
CT: control target
= control target key end

     0   :  { %v228_v1 = vmov 0.0   ;;  %vm229_vm0 = vmmov 0   ;;  %vm135_vm1 = vcmask 523264   ;;  %s283_s0 = inlined_call_operand.vmem [shape: bf16[8,128], index: 0, kind: input, shape index: {}]   ;;  %s284_s1 = inlined_call_operand.vmem [shape: bf16[128,64], index: 1, kind: input, shape index: {}]   ;;  %s285_s2 = inlined_call_operand.vmem [shape: f32[1,64], index: 2, kind: input, shape index: {}]   ;;  %s286_s3 = inlined_call_operand.vmem [shape: f32[8,64], index: 3, kind: output, shape index: {}]  }
   0x1   :  { %v219_v0 = vld [vmem:[%s284_s1] sm:$0xff]   ;;  %197 = vmatprep.subr.bf16.mxu0 %v228_v1  ;;  %v220_v2 = vld [vmem:[%s284_s1 + $0x8] sm:$0xff]   ;;  %213 = vmatprep.mubr.msk.bf16.mxu0 %vm229_vm0, %v228_v1  ;;  %v221_v3 = vld [vmem:[%s284_s1 + $0x10] sm:$0xff]  }
   0x2   :  { %198 = vmatpush3.bf16.msra.mxu0 %v219_v0  ;;  %v222_v4 = vld [vmem:[%s284_s1 + $0x18] sm:$0xff]   ;;  %v223_v5 = vld [vmem:[%s284_s1 + $0x20] sm:$0xff]   ;;  %v224_v6 = vld [vmem:[%s284_s1 + $0x28] sm:$0xff]  }
   0x3   :  { %199 = vmatprep.subr.bf16.mxu0 %v228_v1  ;;  %v225_v7 = vld [vmem:[%s284_s1 + $0x30] sm:$0xff]   ;;  %v226_v8 = vld [vmem:[%s284_s1 + $0x38] sm:$0xff]   ;;  %v227_v9 = vld [vmem:[%s283_s0] sm:$0xff]  }
   0x4   :  { %v178_v10 = vld [vmem:[%s285_s2] ss:$0 sm:$0xff] }
   0x6   :  { %200 = vmatpush3.bf16.msra.mxu0 %v220_v2 }
   0x7   :  { %201 = vmatprep.subr.bf16.mxu0 %v228_v1 }
   0xa   :  { %202 = vmatpush3.bf16.msra.mxu0 %v221_v3 }
   0xb   :  { %203 = vmatprep.subr.bf16.mxu0 %v228_v1 }
   0xe   :  { %204 = vmatpush3.bf16.msra.mxu0 %v222_v4 }
   0xf   :  { %205 = vmatprep.subr.bf16.mxu0 %v228_v1 }
  0x12   :  { %206 = vmatpush3.bf16.msra.mxu0 %v223_v5 }
  0x13   :  { %207 = vmatprep.subr.bf16.mxu0 %v228_v1 }
  0x16   :  { %208 = vmatpush3.bf16.msra.mxu0 %v224_v6 }
  0x17   :  { %209 = vmatprep.subr.bf16.mxu0 %v228_v1 }
  0x1a   :  { %210 = vmatpush3.bf16.msra.mxu0 %v225_v7 }
  0x1b   :  { %211 = vmatprep.subr.bf16.mxu0 %v228_v1 }
  0x1e   :  { %212 = vmatpush3.bf16.msra.mxu0 %v226_v8 }
  0x21   :  { %214 = vmatmul.mubr.bf16.vlgmr.msra.gmra.mrb[0].mxu0 %v227_v9 }
  0xf4   :  { %v128_v11 = vpop.f32.mrb[0].mxu0 }
  0xf5   :  { %v129_v12 = vadd.f32 %v178_v10, %v128_v11  ;;  %v215_v13 = vpop.f32.mrb[1].mxu0 }
  0xf6   :  { %v131_v14 = vpop.f32.mrb[2].mxu0 }
  0xf7   :  { %136 = vst.msk [vmem:[#allocation2] sm:$0xff] %vm135_vm1, %v129_v12  ;;  %v216_v15 = vpop.f32.mrb[3].mxu0 }
  0xfe   :  { %v167_v16 = vld [vmem:[#allocation2] sm:$0xff] }
  0xff   :  { %168 = vst [vmem:[%s286_s3] sm:$0xff] %v167_v16 }

// kernel: deconv_ssd_forward.35
= control target key start
LH: loop header
LB: loop body
LE: loop exit
PB: predicated region body
PF: predicated region fallthrough
CT: control target
= control target key end

     0   :  { %vm238_vm0 = vcmask 130048   ;;  %s446_s1 = inlined_call_operand.vmem [shape: bf16[256,16], index: 1, kind: input, shape index: {}]   ;;  %s447_s0 = inlined_call_operand.vmem [shape: bf16[32,256], index: 0, kind: input, shape index: {}]   ;;  %s448_s2 = inlined_call_operand.vmem [shape: f32[1,16], index: 2, kind: input, shape index: {}]   ;;  %s449_s3 = inlined_call_operand.vmem [shape: f32[32,16], index: 3, kind: input, shape index: {}]   ;;  %s450_s4 = inlined_call_operand.vmem [shape: f32[32,16], index: 4, kind: output, shape index: {}]  }
   0x1   :  { %v312_v0 = vld [vmem:[%s446_s1 + $0x40] sm:$0xff]   ;;  %v314_v2 = vld [vmem:[%s446_s1 + $0x48] sm:$0xff]   ;;  %v316_v4 = vld [vmem:[%s446_s1 + $0x50] sm:$0xff]  }
   0x2   :  { %v313_v1 = vld [vmem:[%s446_s1] sm:$0xff]   ;;  %268 = vmatprep.subr.bf16.mxu0 %v312_v0  ;;  %296 = vmatprep.subr.bf16.mxu1 %v312_v0  ;;  %v315_v3 = vld [vmem:[%s446_s1 + $0x8] sm:$0xff]   ;;  %v317_v5 = vld [vmem:[%s446_s1 + $0x10] sm:$0xff]  }
   0x3   :  { %269 = vmatpush3.bf16.msra.mxu0 %v313_v1  ;;  %304 = vmatpush3.bf16.msra.mxu1 %v313_v1  ;;  %v318_v6 = vld [vmem:[%s446_s1 + $0x58] sm:$0xff]   ;;  %v320_v8 = vld [vmem:[%s446_s1 + $0x60] sm:$0xff]   ;;  %v322_v10 = vld [vmem:[%s446_s1 + $0x68] sm:$0xff]  }
   0x4   :  { %270 = vmatprep.subr.bf16.mxu0 %v314_v2  ;;  %297 = vmatprep.subr.bf16.mxu1 %v314_v2  ;;  %v319_v7 = vld [vmem:[%s446_s1 + $0x18] sm:$0xff]   ;;  %v321_v9 = vld [vmem:[%s446_s1 + $0x20] sm:$0xff]   ;;  %v323_v13 = vld [vmem:[%s446_s1 + $0x28] sm:$0xff]  }
   0x5   :  { %v330_v11 = vld [vmem:[%s447_s0 + $0x4] ss:$8 sps:$4 sm:$0xff]   ;;  %v333_v12 = vld [vmem:[%s447_s0 + $0x14] ss:$8 sps:$4 sm:$0xff]   ;;  %v328_v18 = vld [vmem:[%s447_s0] ss:$8 sps:$4 sm:$0xff]  }
   0x6   :  { %v324_v14 = vld [vmem:[%s446_s1 + $0x70] sm:$0xff]   ;;  %209 = vmatprep.mubr.bf16.mxu0 %v330_v11  ;;  %217 = vmatprep.mubr.bf16.mxu1 %v333_v12  ;;  %v326_v16 = vld [vmem:[%s446_s1 + $0x78] sm:$0xff]   ;;  %v247_v22 = vld [vmem:[%s448_s2] ss:$0 sm:$0xff] }
   0x7   :  { %271 = vmatpush3.bf16.msra.mxu0 %v315_v3  ;;  %305 = vmatpush3.bf16.msra.mxu1 %v315_v3  ;;  %v325_v15 = vld [vmem:[%s446_s1 + $0x30] sm:$0xff]   ;;  %v327_v17 = vld [vmem:[%s446_s1 + $0x38] sm:$0xff]   ;;  %v226_v29 = vld [vmem:[%s449_s3] sm:$0xff] }
   0x8   :  { %272 = vmatprep.subr.bf16.mxu0 %v316_v4  ;;  %298 = vmatprep.subr.bf16.mxu1 %v316_v4  ;;  %v331_v19 = vld [vmem:[%s447_s0 + $0x10] ss:$8 sps:$4 sm:$0xff]   ;;  %v227_v37 = vld [vmem:[%s449_s3 + $0x8] sm:$0xff] }
   0x9   :  { %v228_v30 = vld [vmem:[%s449_s3 + $0x10] sm:$0xff]  ;;  %v229_v38 = vld [vmem:[%s449_s3 + $0x18] sm:$0xff] }
   0xb   :  { %273 = vmatpush3.bf16.msra.mxu0 %v317_v5  ;;  %306 = vmatpush3.bf16.msra.mxu1 %v317_v5 }
   0xc   :  { %274 = vmatprep.subr.bf16.mxu0 %v318_v6  ;;  %299 = vmatprep.subr.bf16.mxu1 %v318_v6 }
   0xf   :  { %275 = vmatpush3.bf16.msra.mxu0 %v319_v7  ;;  %307 = vmatpush3.bf16.msra.mxu1 %v319_v7 }
  0x10   :  { %276 = vmatprep.subr.bf16.mxu0 %v320_v8  ;;  %300 = vmatprep.subr.bf16.mxu1 %v320_v8 }
  0x13   :  { %277 = vmatpush3.bf16.msra.mxu0 %v321_v9  ;;  %308 = vmatpush3.bf16.msra.mxu1 %v321_v9 }
  0x14   :  { %278 = vmatprep.subr.bf16.mxu0 %v322_v10  ;;  %301 = vmatprep.subr.bf16.mxu1 %v322_v10 }
  0x17   :  { %279 = vmatpush3.bf16.msra.mxu0 %v323_v13  ;;  %309 = vmatpush3.bf16.msra.mxu1 %v323_v13 }
  0x18   :  { %280 = vmatprep.subr.bf16.mxu0 %v324_v14  ;;  %302 = vmatprep.subr.bf16.mxu1 %v324_v14 }
  0x1b   :  { %281 = vmatpush3.bf16.msra.mxu0 %v325_v15  ;;  %310 = vmatpush3.bf16.msra.mxu1 %v325_v15 }
  0x1c   :  { %282 = vmatprep.subr.bf16.mxu0 %v326_v16  ;;  %303 = vmatprep.subr.bf16.mxu1 %v326_v16 }
  0x1f   :  { %283 = vmatpush3.bf16.msra.mxu0 %v327_v17  ;;  %311 = vmatpush3.bf16.msra.mxu1 %v327_v17 }
  0x22   :  { %210 = vmatmul.mubr.bf16.vlgmr.msra.gmra.mrb[0].mxu0 %v328_v18  ;;  %218 = vmatmul.mubr.bf16.vlgmr.msra.gmra.mrb[0].mxu1 %v331_v19 }
  0xf5   :  { %v284_v20 = vpop.f32.mrb[0].mxu0  ;;  %v290_v21 = vpop.f32.mrb[0].mxu1 }
  0xf6   :  { %v285_v23 = vpop.f32.mrb[1].mxu0  ;;  %v291_v24 = vpop.f32.mrb[1].mxu1 }
  0xf7   :  { %v286_v25 = vadd.f32 %v285_v23, %v284_v20  ;;  %v292_v26 = vadd.f32 %v291_v24, %v290_v21  ;;  %v287_v27 = vpop.f32.mrb[2].mxu0  ;;  %v293_v28 = vpop.f32.mrb[2].mxu1 }
  0xf8   :  { %v288_v31 = vpop.f32.mrb[3].mxu0  ;;  %v294_v32 = vpop.f32.mrb[3].mxu1 }
  0xf9   :  { %v212_v33 = vadd.f32 %v286_v25, %v247_v22  ;;  %v220_v34 = vadd.f32 %v292_v26, %v247_v22  ;;  %v289_v35 = vadd.f32 %v288_v31, %v287_v27  ;;  %v295_v36 = vadd.f32 %v294_v32, %v293_v28 }
  0xfb   :  { %v230_v39 = vmul.f32 %v226_v29, %v212_v33  ;;  %v232_v40 = vmul.f32 %v228_v30, %v220_v34  ;;  %v215_v41 = vadd.f32 %v289_v35, %v247_v22  ;;  %v223_v42 = vadd.f32 %v295_v36, %v247_v22 }
  0xfd   :  { %v234_v43 = vmax.f32 %v230_v39, 0.0  ;;  %v236_v44 = vmax.f32 %v232_v40, 0.0  ;;  %v231_v45 = vmul.f32 %v227_v37, %v215_v41  ;;  %v233_v46 = vmul.f32 %v229_v38, %v223_v42 }
  0xff   :  { %239 = vst.msk [vmem:[%s450_s4] sm:$0xff] %vm238_vm0, %v234_v43  ;;  %241 = vst.msk [vmem:[%s450_s4 + $0x10] sm:$0xff] %vm238_vm0, %v236_v44  ;;  %v235_v47 = vmax.f32 %v231_v45, 0.0  ;;  %v237_v48 = vmax.f32 %v233_v46, 0.0 }
 0x101   :  { %240 = vst.msk [vmem:[%s450_s4 + $0x8] sm:$0xff] %vm238_vm0, %v235_v47  ;;  %242 = vst.msk [vmem:[%s450_s4 + $0x18] sm:$0xff] %vm238_vm0, %v237_v48 }

// kernel: deconv_ssd_forward.39
= control target key start
LH: loop header
LB: loop body
LE: loop exit
PB: predicated region body
PF: predicated region fallthrough
CT: control target
= control target key end

     0   :  { %vm223_vm0 = vcmask 162816   ;;  %s414_s1 = inlined_call_operand.vmem [shape: bf16[256,20], index: 1, kind: input, shape index: {}]   ;;  %s415_s0 = inlined_call_operand.vmem [shape: bf16[32,256], index: 0, kind: input, shape index: {}]   ;;  %s416_s2 = inlined_call_operand.vmem [shape: f32[1,20], index: 2, kind: input, shape index: {}]   ;;  %s417_s3 = inlined_call_operand.vmem [shape: f32[32,20], index: 3, kind: output, shape index: {}]  }
   0x1   :  { %v297_v0 = vld [vmem:[%s414_s1 + $0x40] sm:$0xff]   ;;  %v299_v2 = vld [vmem:[%s414_s1 + $0x48] sm:$0xff]   ;;  %v301_v4 = vld [vmem:[%s414_s1 + $0x50] sm:$0xff]  }
   0x2   :  { %v298_v1 = vld [vmem:[%s414_s1] sm:$0xff]   ;;  %253 = vmatprep.subr.bf16.mxu0 %v297_v0  ;;  %281 = vmatprep.subr.bf16.mxu1 %v297_v0  ;;  %v300_v3 = vld [vmem:[%s414_s1 + $0x8] sm:$0xff]   ;;  %v302_v5 = vld [vmem:[%s414_s1 + $0x10] sm:$0xff]  }
   0x3   :  { %254 = vmatpush3.bf16.msra.mxu0 %v298_v1  ;;  %289 = vmatpush3.bf16.msra.mxu1 %v298_v1  ;;  %v303_v6 = vld [vmem:[%s414_s1 + $0x58] sm:$0xff]   ;;  %v305_v8 = vld [vmem:[%s414_s1 + $0x60] sm:$0xff]   ;;  %v307_v10 = vld [vmem:[%s414_s1 + $0x68] sm:$0xff]  }
   0x4   :  { %255 = vmatprep.subr.bf16.mxu0 %v299_v2  ;;  %282 = vmatprep.subr.bf16.mxu1 %v299_v2  ;;  %v304_v7 = vld [vmem:[%s414_s1 + $0x18] sm:$0xff]   ;;  %v306_v9 = vld [vmem:[%s414_s1 + $0x20] sm:$0xff]   ;;  %v308_v13 = vld [vmem:[%s414_s1 + $0x28] sm:$0xff]  }
   0x5   :  { %v315_v11 = vld [vmem:[%s415_s0 + $0x4] ss:$8 sps:$4 sm:$0xff]   ;;  %v318_v12 = vld [vmem:[%s415_s0 + $0x14] ss:$8 sps:$4 sm:$0xff]   ;;  %v313_v18 = vld [vmem:[%s415_s0] ss:$8 sps:$4 sm:$0xff]  }
   0x6   :  { %v309_v14 = vld [vmem:[%s414_s1 + $0x70] sm:$0xff]   ;;  %206 = vmatprep.mubr.bf16.mxu0 %v315_v11  ;;  %214 = vmatprep.mubr.bf16.mxu1 %v318_v12  ;;  %v311_v16 = vld [vmem:[%s414_s1 + $0x78] sm:$0xff]   ;;  %v232_v22 = vld [vmem:[%s416_s2] ss:$0 sm:$0xff] }
   0x7   :  { %256 = vmatpush3.bf16.msra.mxu0 %v300_v3  ;;  %290 = vmatpush3.bf16.msra.mxu1 %v300_v3  ;;  %v310_v15 = vld [vmem:[%s414_s1 + $0x30] sm:$0xff]   ;;  %v312_v17 = vld [vmem:[%s414_s1 + $0x38] sm:$0xff]  }
   0x8   :  { %257 = vmatprep.subr.bf16.mxu0 %v301_v4  ;;  %283 = vmatprep.subr.bf16.mxu1 %v301_v4  ;;  %v316_v19 = vld [vmem:[%s415_s0 + $0x10] ss:$8 sps:$4 sm:$0xff]  }
   0xb   :  { %258 = vmatpush3.bf16.msra.mxu0 %v302_v5  ;;  %291 = vmatpush3.bf16.msra.mxu1 %v302_v5 }
   0xc   :  { %259 = vmatprep.subr.bf16.mxu0 %v303_v6  ;;  %284 = vmatprep.subr.bf16.mxu1 %v303_v6 }
   0xf   :  { %260 = vmatpush3.bf16.msra.mxu0 %v304_v7  ;;  %292 = vmatpush3.bf16.msra.mxu1 %v304_v7 }
  0x10   :  { %261 = vmatprep.subr.bf16.mxu0 %v305_v8  ;;  %285 = vmatprep.subr.bf16.mxu1 %v305_v8 }
  0x13   :  { %262 = vmatpush3.bf16.msra.mxu0 %v306_v9  ;;  %293 = vmatpush3.bf16.msra.mxu1 %v306_v9 }
  0x14   :  { %263 = vmatprep.subr.bf16.mxu0 %v307_v10  ;;  %286 = vmatprep.subr.bf16.mxu1 %v307_v10 }
  0x17   :  { %264 = vmatpush3.bf16.msra.mxu0 %v308_v13  ;;  %294 = vmatpush3.bf16.msra.mxu1 %v308_v13 }
  0x18   :  { %265 = vmatprep.subr.bf16.mxu0 %v309_v14  ;;  %287 = vmatprep.subr.bf16.mxu1 %v309_v14 }
  0x1b   :  { %266 = vmatpush3.bf16.msra.mxu0 %v310_v15  ;;  %295 = vmatpush3.bf16.msra.mxu1 %v310_v15 }
  0x1c   :  { %267 = vmatprep.subr.bf16.mxu0 %v311_v16  ;;  %288 = vmatprep.subr.bf16.mxu1 %v311_v16 }
  0x1f   :  { %268 = vmatpush3.bf16.msra.mxu0 %v312_v17  ;;  %296 = vmatpush3.bf16.msra.mxu1 %v312_v17 }
  0x22   :  { %207 = vmatmul.mubr.bf16.vlgmr.msra.gmra.mrb[0].mxu0 %v313_v18  ;;  %215 = vmatmul.mubr.bf16.vlgmr.msra.gmra.mrb[0].mxu1 %v316_v19 }
  0xf5   :  { %v269_v20 = vpop.f32.mrb[0].mxu0  ;;  %v275_v21 = vpop.f32.mrb[0].mxu1 }
  0xf6   :  { %v270_v23 = vpop.f32.mrb[1].mxu0  ;;  %v276_v24 = vpop.f32.mrb[1].mxu1 }
  0xf7   :  { %v271_v25 = vadd.f32 %v270_v23, %v269_v20  ;;  %v277_v26 = vadd.f32 %v276_v24, %v275_v21  ;;  %v272_v27 = vpop.f32.mrb[2].mxu0  ;;  %v278_v28 = vpop.f32.mrb[2].mxu1 }
  0xf8   :  { %v273_v29 = vpop.f32.mrb[3].mxu0  ;;  %v279_v30 = vpop.f32.mrb[3].mxu1 }
  0xf9   :  { %v209_v31 = vadd.f32 %v271_v25, %v232_v22  ;;  %v217_v32 = vadd.f32 %v277_v26, %v232_v22  ;;  %v274_v33 = vadd.f32 %v273_v29, %v272_v27  ;;  %v280_v34 = vadd.f32 %v279_v30, %v278_v28 }
  0xfb   :  { %224 = vst.msk [vmem:[%s417_s3] sm:$0xff] %vm223_vm0, %v209_v31  ;;  %226 = vst.msk [vmem:[%s417_s3 + $0x10] sm:$0xff] %vm223_vm0, %v217_v32  ;;  %v212_v35 = vadd.f32 %v274_v33, %v232_v22  ;;  %v220_v36 = vadd.f32 %v280_v34, %v232_v22 }
  0xfd   :  { %225 = vst.msk [vmem:[%s417_s3 + $0x8] sm:$0xff] %vm223_vm0, %v212_v35  ;;  %227 = vst.msk [vmem:[%s417_s3 + $0x18] sm:$0xff] %vm223_vm0, %v220_v36 }

// kernel: deconv_ssd_forward.36
= control target key start
LH: loop header
LB: loop body
LE: loop exit
PB: predicated region body
PF: predicated region fallthrough
CT: control target
= control target key end

     0   :  { %vm151_vm0 = vcmask 523264   ;;  %s276_s1 = inlined_call_operand.vmem [shape: bf16[128,64], index: 1, kind: input, shape index: {}]   ;;  %s277_s0 = inlined_call_operand.vmem [shape: bf16[32,128], index: 0, kind: input, shape index: {}]   ;;  %s278_s2 = inlined_call_operand.vmem [shape: f32[1,64], index: 2, kind: input, shape index: {}]   ;;  %s279_s3 = inlined_call_operand.vmem [shape: f32[32,64], index: 3, kind: output, shape index: {}]  }
   0x1   :  { %v201_v0 = vld [vmem:[%s276_s1] sm:$0xff]   ;;  %v202_v1 = vld [vmem:[%s276_s1 + $0x8] sm:$0xff]   ;;  %v203_v2 = vld [vmem:[%s276_s1 + $0x10] sm:$0xff]  }
   0x2   :  { %181 = vmatprep.subr.bf16.mxu0 %v201_v0  ;;  %v204_v3 = vld [vmem:[%s276_s1 + $0x18] sm:$0xff]   ;;  %v209_v4 = vld [vmem:[%s277_s0] sm:$0xff]   ;;  %v206_v6 = vld [vmem:[%s276_s1 + $0x28] sm:$0xff]  }
   0x3   :  { %182 = vmatpush3.bf16.msra.mxu0 %v201_v0  ;;  %197 = vmatprep.mubr.bf16.mxu0 %v209_v4  ;;  %v205_v5 = vld [vmem:[%s276_s1 + $0x20] sm:$0xff]   ;;  %v207_v7 = vld [vmem:[%s276_s1 + $0x30] sm:$0xff]   ;;  %v208_v8 = vld [vmem:[%s276_s1 + $0x38] sm:$0xff]  }
   0x4   :  { %183 = vmatprep.subr.bf16.mxu0 %v202_v1  ;;  %v210_v9 = vld [vmem:[%s277_s0 + $0x8] sm:$0xff]   ;;  %v160_v10 = vld [vmem:[%s278_s2] ss:$0 sm:$0xff] }
   0x7   :  { %184 = vmatpush3.bf16.msra.mxu0 %v202_v1 }
   0x8   :  { %185 = vmatprep.subr.bf16.mxu0 %v203_v2 }
   0xb   :  { %186 = vmatpush3.bf16.msra.mxu0 %v203_v2 }
   0xc   :  { %187 = vmatprep.subr.bf16.mxu0 %v204_v3 }
   0xf   :  { %188 = vmatpush3.bf16.msra.mxu0 %v204_v3 }
  0x10   :  { %189 = vmatprep.subr.bf16.mxu0 %v205_v5 }
  0x13   :  { %190 = vmatpush3.bf16.msra.mxu0 %v205_v5 }
  0x14   :  { %191 = vmatprep.subr.bf16.mxu0 %v206_v6 }
  0x17   :  { %192 = vmatpush3.bf16.msra.mxu0 %v206_v6 }
  0x18   :  { %193 = vmatprep.subr.bf16.mxu0 %v207_v7 }
  0x1b   :  { %194 = vmatpush3.bf16.msra.mxu0 %v207_v7 }
  0x1c   :  { %195 = vmatprep.subr.bf16.mxu0 %v208_v8 }
  0x1f   :  { %196 = vmatpush3.bf16.msra.mxu0 %v208_v8 }
  0x22   :  { %198 = vmatmul.mubr.bf16.vlgmr.msra.gmra.mrb[0].mxu0 %v210_v9 }
  0xf5   :  { %v199_v11 = vpop.f32.mrb[0].mxu0 }
  0xf6   :  { %v145_v12 = vadd.f32 %v199_v11, %v160_v10  ;;  %v136_v13 = vpop.f32.mrb[1].mxu0 }
  0xf7   :  { %v137_v14 = vadd.f32 %v160_v10, %v136_v13  ;;  %v200_v15 = vpop.f32.mrb[2].mxu0 }
  0xf8   :  { %154 = vst.msk [vmem:[%s279_s3 + $0x10] sm:$0xff] %vm151_vm0, %v145_v12  ;;  %v148_v16 = vadd.f32 %v200_v15, %v160_v10  ;;  %v139_v17 = vpop.f32.mrb[3].mxu0 }
  0xf9   :  { %152 = vst.msk [vmem:[%s279_s3] sm:$0xff] %vm151_vm0, %v137_v14  ;;  %v140_v18 = vadd.f32 %v160_v10, %v139_v17 }
  0xfa   :  { %155 = vst.msk [vmem:[%s279_s3 + $0x18] sm:$0xff] %vm151_vm0, %v148_v16 }
  0xfb   :  { %153 = vst.msk [vmem:[%s279_s3 + $0x8] sm:$0xff] %vm151_vm0, %v140_v18 }

// kernel: deconv_ssd_forward.37
= control target key start
LH: loop header
LB: loop body
LE: loop exit
PB: predicated region body
PF: predicated region fallthrough
CT: control target
= control target key end

     0   :  { %vm298_vm0 = vcmask 130048   ;;  %s622_s1 = inlined_call_operand.vmem [shape: bf16[128,16], index: 1, kind: input, shape index: {}]   ;;  %s623_s0 = inlined_call_operand.vmem [shape: bf16[128,128], index: 0, kind: input, shape index: {}]   ;;  %s624_s2 = inlined_call_operand.vmem [shape: f32[1,16], index: 2, kind: input, shape index: {}]   ;;  %s625_s3 = inlined_call_operand.vmem [shape: f32[128,16], index: 3, kind: input, shape index: {}]   ;;  %s626_s4 = inlined_call_operand.vmem [shape: f32[128,16], index: 4, kind: output, shape index: {}]  }
   0x1   :  { %v400_v0 = vld [vmem:[%s622_s1] sm:$0xff]   ;;  %v401_v1 = vld [vmem:[%s622_s1 + $0x8] sm:$0xff]   ;;  %v402_v2 = vld [vmem:[%s622_s1 + $0x10] sm:$0xff]  }
   0x2   :  { %352 = vmatprep.subr.bf16.mxu0 %v400_v0  ;;  %384 = vmatprep.subr.bf16.mxu1 %v400_v0  ;;  %v403_v3 = vld [vmem:[%s622_s1 + $0x18] sm:$0xff]   ;;  %v408_v4 = vld [vmem:[%s623_s0] sm:$0xff]   ;;  %v405_v7 = vld [vmem:[%s622_s1 + $0x28] sm:$0xff]  }
   0x3   :  { %353 = vmatpush3.bf16.msra.mxu0 %v400_v0  ;;  %392 = vmatpush3.bf16.msra.mxu1 %v400_v0  ;;  %v409_v5 = vld [vmem:[%s623_s0 + $0x20] sm:$0xff]   ;;  %v406_v8 = vld [vmem:[%s622_s1 + $0x30] sm:$0xff]   ;;  %v407_v9 = vld [vmem:[%s622_s1 + $0x38] sm:$0xff]  }
   0x4   :  { %354 = vmatprep.subr.bf16.mxu0 %v401_v1  ;;  %385 = vmatprep.subr.bf16.mxu1 %v401_v1  ;;  %v404_v6 = vld [vmem:[%s622_s1 + $0x20] sm:$0xff]   ;;  %v410_v10 = vld [vmem:[%s623_s0 + $0x8] sm:$0xff]   ;;  %v412_v12 = vld [vmem:[%s623_s0 + $0x10] sm:$0xff]  }
   0x5   :  { %368 = vmatprep.mubr.bf16.mxu0 %v408_v4  ;;  %376 = vmatprep.mubr.bf16.mxu1 %v409_v5  ;;  %v411_v11 = vld [vmem:[%s623_s0 + $0x28] sm:$0xff]   ;;  %v413_v13 = vld [vmem:[%s623_s0 + $0x30] sm:$0xff]   ;;  %v414_v14 = vld [vmem:[%s623_s0 + $0x18] sm:$0xff]  }
   0x6   :  { %v415_v15 = vld [vmem:[%s623_s0 + $0x38] sm:$0xff]   ;;  %v492_v16 = vld [vmem:[%s624_s2] ss:$0 sm:$0xff]  ;;  %v252_v18 = vld [vmem:[%s625_s3 + $0x10] sm:$0xff] }
   0x7   :  { %355 = vmatpush3.bf16.msra.mxu0 %v401_v1  ;;  %393 = vmatpush3.bf16.msra.mxu1 %v401_v1  ;;  %v260_v20 = vld [vmem:[%s625_s3 + $0x50] sm:$0xff]  ;;  %v250_v24 = vld [vmem:[%s625_s3] sm:$0xff]  ;;  %v253_v30 = vld [vmem:[%s625_s3 + $0x18] sm:$0xff] }
   0x8   :  { %356 = vmatprep.subr.bf16.mxu0 %v402_v2  ;;  %386 = vmatprep.subr.bf16.mxu1 %v402_v2  ;;  %v258_v26 = vld [vmem:[%s625_s3 + $0x40] sm:$0xff]  ;;  %v261_v32 = vld [vmem:[%s625_s3 + $0x58] sm:$0xff]  ;;  %v251_v38 = vld [vmem:[%s625_s3 + $0x8] sm:$0xff] }
   0x9   :  { %v259_v40 = vld [vmem:[%s625_s3 + $0x48] sm:$0xff]  ;;  %v256_v58 = vld [vmem:[%s625_s3 + $0x30] sm:$0xff]  ;;  %v254_v0 = vld [vmem:[%s625_s3 + $0x20] sm:$0xff] }
   0xa   :  { %v264_v60 = vld [vmem:[%s625_s3 + $0x70] sm:$0xff] }
   0xb   :  { %357 = vmatpush3.bf16.msra.mxu0 %v402_v2  ;;  %394 = vmatpush3.bf16.msra.mxu1 %v402_v2  ;;  %v262_v2 = vld [vmem:[%s625_s3 + $0x60] sm:$0xff] }
   0xc   :  { %358 = vmatprep.subr.bf16.mxu0 %v403_v3  ;;  %387 = vmatprep.subr.bf16.mxu1 %v403_v3 }
   0xf   :  { %359 = vmatpush3.bf16.msra.mxu0 %v403_v3  ;;  %395 = vmatpush3.bf16.msra.mxu1 %v403_v3 }
  0x10   :  { %360 = vmatprep.subr.bf16.mxu0 %v404_v6  ;;  %388 = vmatprep.subr.bf16.mxu1 %v404_v6 }
  0x13   :  { %361 = vmatpush3.bf16.msra.mxu0 %v404_v6  ;;  %396 = vmatpush3.bf16.msra.mxu1 %v404_v6  ;;  %v257_v6 = vld [vmem:[%s625_s3 + $0x38] sm:$0xff] }
  0x14   :  { %362 = vmatprep.subr.bf16.mxu0 %v405_v7  ;;  %389 = vmatprep.subr.bf16.mxu1 %v405_v7 }
  0x17   :  { %363 = vmatpush3.bf16.msra.mxu0 %v405_v7  ;;  %397 = vmatpush3.bf16.msra.mxu1 %v405_v7 }
  0x18   :  { %364 = vmatprep.subr.bf16.mxu0 %v406_v8  ;;  %390 = vmatprep.subr.bf16.mxu1 %v406_v8 }
  0x1b   :  { %365 = vmatpush3.bf16.msra.mxu0 %v406_v8  ;;  %398 = vmatpush3.bf16.msra.mxu1 %v406_v8  ;;  %v265_v8 = vld [vmem:[%s625_s3 + $0x78] sm:$0xff] }
  0x1c   :  { %366 = vmatprep.subr.bf16.mxu0 %v407_v9  ;;  %391 = vmatprep.subr.bf16.mxu1 %v407_v9 }
  0x1f   :  { %367 = vmatpush3.bf16.msra.mxu0 %v407_v9  ;;  %399 = vmatpush3.bf16.msra.mxu1 %v407_v9 }
  0x22   :  { %369 = vmatmul.mubr.bf16.vlgmr.msra.gmra.mrb[0].mxu0 %v410_v10  ;;  %377 = vmatmul.mubr.bf16.vlgmr.msra.gmra.mrb[0].mxu1 %v411_v11 }
  0x23   :  { %372 = vmatprep.mubr.bf16.mxu0 %v412_v12  ;;  %380 = vmatprep.mubr.bf16.mxu1 %v413_v13 }
  0x2a   :  { %373 = vmatmul.mubr.bf16.gmra.mrb[4].mxu0 %v414_v14  ;;  %381 = vmatmul.mubr.bf16.gmra.mrb[4].mxu1 %v415_v15  ;;  %v255_v14 = vld [vmem:[%s625_s3 + $0x28] sm:$0xff] }
  0xf5   :  { %v370_v17 = vpop.f32.mrb[0].mxu0  ;;  %v378_v19 = vpop.f32.mrb[0].mxu1 }
  0xf6   :  { %v196_v21 = vadd.f32 %v370_v17, %v492_v16  ;;  %v228_v22 = vadd.f32 %v378_v19, %v492_v16  ;;  %v187_v23 = vpop.f32.mrb[1].mxu0  ;;  %v219_v25 = vpop.f32.mrb[1].mxu1  ;;  %v263_v17 = vld [vmem:[%s625_s3 + $0x68] sm:$0xff] }
  0xf7   :  { %v188_v27 = vadd.f32 %v492_v16, %v187_v23  ;;  %v220_v28 = vadd.f32 %v492_v16, %v219_v25  ;;  %v371_v29 = vpop.f32.mrb[2].mxu0  ;;  %v379_v31 = vpop.f32.mrb[2].mxu1 }
  0xf8   :  { %v268_v33 = vmul.f32 %v252_v18, %v196_v21  ;;  %v276_v34 = vmul.f32 %v260_v20, %v228_v22  ;;  %v199_v35 = vadd.f32 %v371_v29, %v492_v16  ;;  %v231_v36 = vadd.f32 %v379_v31, %v492_v16  ;;  %v190_v37 = vpop.f32.mrb[3].mxu0  ;;  %v222_v39 = vpop.f32.mrb[3].mxu1 }
  0xf9   :  { %v266_v41 = vmul.f32 %v250_v24, %v188_v27  ;;  %v274_v42 = vmul.f32 %v258_v26, %v220_v28  ;;  %v191_v43 = vadd.f32 %v492_v16, %v190_v37  ;;  %v223_v44 = vadd.f32 %v492_v16, %v222_v39 }
  0xfa   :  { %v284_v45 = vmax.f32 %v268_v33, 0.0  ;;  %v292_v46 = vmax.f32 %v276_v34, 0.0  ;;  %v269_v47 = vmul.f32 %v253_v30, %v199_v35  ;;  %v277_v48 = vmul.f32 %v261_v32, %v231_v36 }
  0xfb   :  { %v282_v49 = vmax.f32 %v266_v41, 0.0  ;;  %v290_v50 = vmax.f32 %v274_v42, 0.0  ;;  %v267_v51 = vmul.f32 %v251_v38, %v191_v43  ;;  %v275_v52 = vmul.f32 %v259_v40, %v223_v44 }
  0xfc   :  { %301 = vst.msk [vmem:[%s626_s4 + $0x10] sm:$0xff] %vm298_vm0, %v284_v45  ;;  %309 = vst.msk [vmem:[%s626_s4 + $0x50] sm:$0xff] %vm298_vm0, %v292_v46  ;;  %v285_v53 = vmax.f32 %v269_v47, 0.0  ;;  %v293_v54 = vmax.f32 %v277_v48, 0.0 }
  0xfd   :  { %299 = vst.msk [vmem:[%s626_s4] sm:$0xff] %vm298_vm0, %v282_v49  ;;  %307 = vst.msk [vmem:[%s626_s4 + $0x40] sm:$0xff] %vm298_vm0, %v290_v50  ;;  %v283_v55 = vmax.f32 %v267_v51, 0.0  ;;  %v291_v56 = vmax.f32 %v275_v52, 0.0  ;;  %v374_v57 = vpop.f32.mrb[4].mxu0  ;;  %v382_v59 = vpop.f32.mrb[4].mxu1 }
  0xfe   :  { %302 = vst.msk [vmem:[%s626_s4 + $0x18] sm:$0xff] %vm298_vm0, %v285_v53  ;;  %310 = vst.msk [vmem:[%s626_s4 + $0x58] sm:$0xff] %vm298_vm0, %v293_v54  ;;  %v212_v61 = vadd.f32 %v374_v57, %v492_v16  ;;  %v244_v62 = vadd.f32 %v382_v59, %v492_v16  ;;  %v203_v63 = vpop.f32.mrb[5].mxu0  ;;  %v235_v1 = vpop.f32.mrb[5].mxu1 }
  0xff   :  { %300 = vst.msk [vmem:[%s626_s4 + $0x8] sm:$0xff] %vm298_vm0, %v283_v55  ;;  %308 = vst.msk [vmem:[%s626_s4 + $0x48] sm:$0xff] %vm298_vm0, %v291_v56  ;;  %v204_v3 = vadd.f32 %v492_v16, %v203_v63  ;;  %v236_v4 = vadd.f32 %v492_v16, %v235_v1  ;;  %v375_v5 = vpop.f32.mrb[6].mxu0  ;;  %v383_v7 = vpop.f32.mrb[6].mxu1 }
 0x100   :  { %v272_v9 = vmul.f32 %v256_v58, %v212_v61  ;;  %v280_v10 = vmul.f32 %v264_v60, %v244_v62  ;;  %v215_v11 = vadd.f32 %v375_v5, %v492_v16  ;;  %v247_v12 = vadd.f32 %v383_v7, %v492_v16  ;;  %v206_v13 = vpop.f32.mrb[7].mxu0  ;;  %v238_v15 = vpop.f32.mrb[7].mxu1 }
 0x101   :  { %v270_v18 = vmul.f32 %v254_v0, %v204_v3  ;;  %v278_v19 = vmul.f32 %v262_v2, %v236_v4  ;;  %v207_v20 = vadd.f32 %v492_v16, %v206_v13  ;;  %v239_v21 = vadd.f32 %v492_v16, %v238_v15 }
 0x102   :  { %v288_v22 = vmax.f32 %v272_v9, 0.0  ;;  %v296_v23 = vmax.f32 %v280_v10, 0.0  ;;  %v273_v24 = vmul.f32 %v257_v6, %v215_v11  ;;  %v281_v25 = vmul.f32 %v265_v8, %v247_v12 }
 0x103   :  { %v286_v26 = vmax.f32 %v270_v18, 0.0  ;;  %v294_v27 = vmax.f32 %v278_v19, 0.0  ;;  %v271_v28 = vmul.f32 %v255_v14, %v207_v20  ;;  %v279_v29 = vmul.f32 %v263_v17, %v239_v21 }
 0x104   :  { %305 = vst.msk [vmem:[%s626_s4 + $0x30] sm:$0xff] %vm298_vm0, %v288_v22  ;;  %313 = vst.msk [vmem:[%s626_s4 + $0x70] sm:$0xff] %vm298_vm0, %v296_v23  ;;  %v289_v30 = vmax.f32 %v273_v24, 0.0  ;;  %v297_v16 = vmax.f32 %v281_v25, 0.0 }
 0x105   :  { %303 = vst.msk [vmem:[%s626_s4 + $0x20] sm:$0xff] %vm298_vm0, %v286_v26  ;;  %311 = vst.msk [vmem:[%s626_s4 + $0x60] sm:$0xff] %vm298_vm0, %v294_v27  ;;  %v287_v31 = vmax.f32 %v271_v28, 0.0  ;;  %v295_v32 = vmax.f32 %v279_v29, 0.0 }
 0x106   :  { %306 = vst.msk [vmem:[%s626_s4 + $0x38] sm:$0xff] %vm298_vm0, %v289_v30  ;;  %314 = vst.msk [vmem:[%s626_s4 + $0x78] sm:$0xff] %vm298_vm0, %v297_v16 }
 0x107   :  { %304 = vst.msk [vmem:[%s626_s4 + $0x28] sm:$0xff] %vm298_vm0, %v287_v31  ;;  %312 = vst.msk [vmem:[%s626_s4 + $0x68] sm:$0xff] %vm298_vm0, %v295_v32 }

// kernel: deconv_ssd_forward.38
= control target key start
LH: loop header
LB: loop body
LE: loop exit
PB: predicated region body
PF: predicated region fallthrough
CT: control target
= control target key end

     0   :  { %vm343_vm0 = vcmask 162816   ;;  %s718_s1 = inlined_call_operand.vmem [shape: bf16[256,20], index: 1, kind: input, shape index: {}]   ;;  %s719_s0 = inlined_call_operand.vmem [shape: bf16[128,256], index: 0, kind: input, shape index: {}]   ;;  %s720_s2 = inlined_call_operand.vmem [shape: f32[1,20], index: 2, kind: input, shape index: {}]   ;;  %s721_s3 = inlined_call_operand.vmem [shape: f32[128,20], index: 3, kind: output, shape index: {}]  }
   0x1   :  { %v477_v0 = vld [vmem:[%s718_s1 + $0x40] sm:$0xff]   ;;  %v479_v2 = vld [vmem:[%s718_s1 + $0x48] sm:$0xff]   ;;  %v481_v4 = vld [vmem:[%s718_s1 + $0x50] sm:$0xff]  }
   0x2   :  { %v478_v1 = vld [vmem:[%s718_s1] sm:$0xff]   ;;  %397 = vmatprep.subr.bf16.mxu0 %v477_v0  ;;  %461 = vmatprep.subr.bf16.mxu1 %v477_v0  ;;  %v480_v3 = vld [vmem:[%s718_s1 + $0x8] sm:$0xff]   ;;  %v482_v5 = vld [vmem:[%s718_s1 + $0x10] sm:$0xff]  }
   0x3   :  { %398 = vmatpush3.bf16.msra.mxu0 %v478_v1  ;;  %469 = vmatpush3.bf16.msra.mxu1 %v478_v1  ;;  %v483_v6 = vld [vmem:[%s718_s1 + $0x58] sm:$0xff]   ;;  %v485_v8 = vld [vmem:[%s718_s1 + $0x60] sm:$0xff]   ;;  %v487_v10 = vld [vmem:[%s718_s1 + $0x68] sm:$0xff]  }
   0x4   :  { %399 = vmatprep.subr.bf16.mxu0 %v479_v2  ;;  %462 = vmatprep.subr.bf16.mxu1 %v479_v2  ;;  %v484_v7 = vld [vmem:[%s718_s1 + $0x18] sm:$0xff]   ;;  %v486_v9 = vld [vmem:[%s718_s1 + $0x20] sm:$0xff]   ;;  %v488_v13 = vld [vmem:[%s718_s1 + $0x28] sm:$0xff]  }
   0x5   :  { %v495_v11 = vld [vmem:[%s719_s0 + $0x4] ss:$8 sps:$4 sm:$0xff]   ;;  %v489_v14 = vld [vmem:[%s718_s1 + $0x70] sm:$0xff]   ;;  %v491_v16 = vld [vmem:[%s718_s1 + $0x78] sm:$0xff]  }
   0x6   :  { %v498_v12 = vld [vmem:[%s719_s0 + $0x44] ss:$8 sps:$4 sm:$0xff]   ;;  %278 = vmatprep.mubr.bf16.mxu0 %v495_v11  ;;  %v490_v15 = vld [vmem:[%s718_s1 + $0x30] sm:$0xff]   ;;  %v492_v17 = vld [vmem:[%s718_s1 + $0x38] sm:$0xff]  }
   0x7   :  { %400 = vmatpush3.bf16.msra.mxu0 %v480_v3  ;;  %470 = vmatpush3.bf16.msra.mxu1 %v480_v3  ;;  %v493_v18 = vld [vmem:[%s719_s0] ss:$8 sps:$4 sm:$0xff]   ;;  %v499_v20 = vld [vmem:[%s719_s0 + $0x14] ss:$8 sps:$4 sm:$0xff]   ;;  %v503_v22 = vld [vmem:[%s719_s0 + $0x10] ss:$8 sps:$4 sm:$0xff]  }
   0x8   :  { %401 = vmatprep.subr.bf16.mxu0 %v481_v4  ;;  %463 = vmatprep.subr.bf16.mxu1 %v481_v4  ;;  %v496_v19 = vld [vmem:[%s719_s0 + $0x40] ss:$8 sps:$4 sm:$0xff]   ;;  %v501_v21 = vld [vmem:[%s719_s0 + $0x54] ss:$8 sps:$4 sm:$0xff]   ;;  %v504_v23 = vld [vmem:[%s719_s0 + $0x50] ss:$8 sps:$4 sm:$0xff]  }
   0x9   :  { %310 = vmatprep.mubr.bf16.mxu1 %v498_v12  ;;  %v505_v24 = vld [vmem:[%s719_s0 + $0x24] ss:$8 sps:$4 sm:$0xff]   ;;  %v509_v26 = vld [vmem:[%s719_s0 + $0x20] ss:$8 sps:$4 sm:$0xff]   ;;  %v511_v28 = vld [vmem:[%s719_s0 + $0x34] ss:$8 sps:$4 sm:$0xff]  }
   0xa   :  { %v507_v25 = vld [vmem:[%s719_s0 + $0x64] ss:$8 sps:$4 sm:$0xff]   ;;  %v510_v27 = vld [vmem:[%s719_s0 + $0x60] ss:$8 sps:$4 sm:$0xff]   ;;  %v513_v29 = vld [vmem:[%s719_s0 + $0x74] ss:$8 sps:$4 sm:$0xff]  }
   0xb   :  { %402 = vmatpush3.bf16.msra.mxu0 %v482_v5  ;;  %471 = vmatpush3.bf16.msra.mxu1 %v482_v5  ;;  %v515_v30 = vld [vmem:[%s719_s0 + $0x30] ss:$8 sps:$4 sm:$0xff]   ;;  %v636_v34 = vld [vmem:[%s720_s2] ss:$0 sm:$0xff] }
   0xc   :  { %403 = vmatprep.subr.bf16.mxu0 %v483_v6  ;;  %464 = vmatprep.subr.bf16.mxu1 %v483_v6  ;;  %v516_v31 = vld [vmem:[%s719_s0 + $0x70] ss:$8 sps:$4 sm:$0xff]  }
   0xf   :  { %404 = vmatpush3.bf16.msra.mxu0 %v484_v7  ;;  %472 = vmatpush3.bf16.msra.mxu1 %v484_v7 }
  0x10   :  { %405 = vmatprep.subr.bf16.mxu0 %v485_v8  ;;  %465 = vmatprep.subr.bf16.mxu1 %v485_v8 }
  0x13   :  { %406 = vmatpush3.bf16.msra.mxu0 %v486_v9  ;;  %473 = vmatpush3.bf16.msra.mxu1 %v486_v9 }
  0x14   :  { %407 = vmatprep.subr.bf16.mxu0 %v487_v10  ;;  %466 = vmatprep.subr.bf16.mxu1 %v487_v10 }
  0x17   :  { %408 = vmatpush3.bf16.msra.mxu0 %v488_v13  ;;  %474 = vmatpush3.bf16.msra.mxu1 %v488_v13 }
  0x18   :  { %409 = vmatprep.subr.bf16.mxu0 %v489_v14  ;;  %467 = vmatprep.subr.bf16.mxu1 %v489_v14 }
  0x1b   :  { %410 = vmatpush3.bf16.msra.mxu0 %v490_v15  ;;  %475 = vmatpush3.bf16.msra.mxu1 %v490_v15 }
  0x1c   :  { %411 = vmatprep.subr.bf16.mxu0 %v491_v16  ;;  %468 = vmatprep.subr.bf16.mxu1 %v491_v16 }
  0x1f   :  { %412 = vmatpush3.bf16.msra.mxu0 %v492_v17  ;;  %476 = vmatpush3.bf16.msra.mxu1 %v492_v17 }
  0x22   :  { %279 = vmatmul.mubr.bf16.vlgmr.msra.gmra.mrb[0].mxu0 %v493_v18  ;;  %311 = vmatmul.mubr.bf16.vlgmr.msra.gmra.mrb[0].mxu1 %v496_v19 }
  0x23   :  { %286 = vmatprep.mubr.bf16.mxu0 %v499_v20  ;;  %318 = vmatprep.mubr.bf16.mxu1 %v501_v21 }
  0x2a   :  { %287 = vmatmul.mubr.bf16.gmra.mrb[4].mxu0 %v503_v22  ;;  %319 = vmatmul.mubr.bf16.gmra.mrb[4].mxu1 %v504_v23 }
  0x2b   :  { %294 = vmatprep.mubr.bf16.mxu0 %v505_v24  ;;  %326 = vmatprep.mubr.bf16.mxu1 %v507_v25 }
  0x32   :  { %295 = vmatmul.mubr.bf16.gmra.mrb[8].mxu0 %v509_v26  ;;  %327 = vmatmul.mubr.bf16.gmra.mrb[8].mxu1 %v510_v27 }
  0x33   :  { %302 = vmatprep.mubr.bf16.mxu0 %v511_v28  ;;  %334 = vmatprep.mubr.bf16.mxu1 %v513_v29 }
  0x3a   :  { %303 = vmatmul.mubr.bf16.gmra.mrb[12].mxu0 %v515_v30  ;;  %335 = vmatmul.mubr.bf16.gmra.mrb[12].mxu1 %v516_v31 }
  0xf5   :  { %v413_v32 = vpop.f32.mrb[0].mxu0  ;;  %v437_v33 = vpop.f32.mrb[0].mxu1 }
  0xf6   :  { %v414_v35 = vpop.f32.mrb[1].mxu0  ;;  %v438_v36 = vpop.f32.mrb[1].mxu1 }
  0xf7   :  { %v415_v37 = vadd.f32 %v414_v35, %v413_v32  ;;  %v439_v38 = vadd.f32 %v438_v36, %v437_v33  ;;  %v416_v39 = vpop.f32.mrb[2].mxu0  ;;  %v440_v40 = vpop.f32.mrb[2].mxu1 }
  0xf8   :  { %v417_v41 = vpop.f32.mrb[3].mxu0  ;;  %v441_v42 = vpop.f32.mrb[3].mxu1 }
  0xf9   :  { %v281_v43 = vadd.f32 %v415_v37, %v636_v34  ;;  %v313_v44 = vadd.f32 %v439_v38, %v636_v34  ;;  %v418_v45 = vadd.f32 %v417_v41, %v416_v39  ;;  %v442_v46 = vadd.f32 %v441_v42, %v440_v40 }
  0xfb   :  { %344 = vst.msk [vmem:[%s721_s3] sm:$0xff] %vm343_vm0, %v281_v43  ;;  %352 = vst.msk [vmem:[%s721_s3 + $0x40] sm:$0xff] %vm343_vm0, %v313_v44  ;;  %v284_v47 = vadd.f32 %v418_v45, %v636_v34  ;;  %v316_v48 = vadd.f32 %v442_v46, %v636_v34 }
  0xfd   :  { %345 = vst.msk [vmem:[%s721_s3 + $0x8] sm:$0xff] %vm343_vm0, %v284_v47  ;;  %353 = vst.msk [vmem:[%s721_s3 + $0x48] sm:$0xff] %vm343_vm0, %v316_v48  ;;  %v419_v49 = vpop.f32.mrb[4].mxu0  ;;  %v443_v50 = vpop.f32.mrb[4].mxu1 }
  0xfe   :  { %v420_v51 = vpop.f32.mrb[5].mxu0  ;;  %v444_v52 = vpop.f32.mrb[5].mxu1 }
  0xff   :  { %v421_v53 = vadd.f32 %v420_v51, %v419_v49  ;;  %v445_v54 = vadd.f32 %v444_v52, %v443_v50  ;;  %v422_v55 = vpop.f32.mrb[6].mxu0  ;;  %v446_v56 = vpop.f32.mrb[6].mxu1 }
 0x100   :  { %v423_v57 = vpop.f32.mrb[7].mxu0  ;;  %v447_v58 = vpop.f32.mrb[7].mxu1 }
 0x101   :  { %v289_v59 = vadd.f32 %v421_v53, %v636_v34  ;;  %v321_v60 = vadd.f32 %v445_v54, %v636_v34  ;;  %v424_v61 = vadd.f32 %v423_v57, %v422_v55  ;;  %v448_v62 = vadd.f32 %v447_v58, %v446_v56 }
 0x103   :  { %346 = vst.msk [vmem:[%s721_s3 + $0x10] sm:$0xff] %vm343_vm0, %v289_v59  ;;  %354 = vst.msk [vmem:[%s721_s3 + $0x50] sm:$0xff] %vm343_vm0, %v321_v60  ;;  %v292_v63 = vadd.f32 %v424_v61, %v636_v34  ;;  %v324_v0 = vadd.f32 %v448_v62, %v636_v34 }
 0x105   :  { %347 = vst.msk [vmem:[%s721_s3 + $0x18] sm:$0xff] %vm343_vm0, %v292_v63  ;;  %355 = vst.msk [vmem:[%s721_s3 + $0x58] sm:$0xff] %vm343_vm0, %v324_v0  ;;  %v425_v1 = vpop.f32.mrb[8].mxu0  ;;  %v449_v2 = vpop.f32.mrb[8].mxu1 }
 0x106   :  { %v426_v3 = vpop.f32.mrb[9].mxu0  ;;  %v450_v4 = vpop.f32.mrb[9].mxu1 }
 0x107   :  { %v427_v5 = vadd.f32 %v426_v3, %v425_v1  ;;  %v451_v6 = vadd.f32 %v450_v4, %v449_v2  ;;  %v428_v7 = vpop.f32.mrb[10].mxu0  ;;  %v452_v8 = vpop.f32.mrb[10].mxu1 }
 0x108   :  { %v429_v9 = vpop.f32.mrb[11].mxu0  ;;  %v453_v10 = vpop.f32.mrb[11].mxu1 }
 0x109   :  { %v297_v11 = vadd.f32 %v427_v5, %v636_v34  ;;  %v329_v12 = vadd.f32 %v451_v6, %v636_v34  ;;  %v430_v13 = vadd.f32 %v429_v9, %v428_v7  ;;  %v454_v14 = vadd.f32 %v453_v10, %v452_v8 }
 0x10b   :  { %348 = vst.msk [vmem:[%s721_s3 + $0x20] sm:$0xff] %vm343_vm0, %v297_v11  ;;  %356 = vst.msk [vmem:[%s721_s3 + $0x60] sm:$0xff] %vm343_vm0, %v329_v12  ;;  %v300_v15 = vadd.f32 %v430_v13, %v636_v34  ;;  %v332_v16 = vadd.f32 %v454_v14, %v636_v34 }
 0x10d   :  { %349 = vst.msk [vmem:[%s721_s3 + $0x28] sm:$0xff] %vm343_vm0, %v300_v15  ;;  %357 = vst.msk [vmem:[%s721_s3 + $0x68] sm:$0xff] %vm343_vm0, %v332_v16  ;;  %v431_v17 = vpop.f32.mrb[12].mxu0  ;;  %v455_v18 = vpop.f32.mrb[12].mxu1 }
 0x10e   :  { %v432_v19 = vpop.f32.mrb[13].mxu0  ;;  %v456_v20 = vpop.f32.mrb[13].mxu1 }
 0x10f   :  { %v433_v21 = vadd.f32 %v432_v19, %v431_v17  ;;  %v457_v22 = vadd.f32 %v456_v20, %v455_v18  ;;  %v434_v23 = vpop.f32.mrb[14].mxu0  ;;  %v458_v24 = vpop.f32.mrb[14].mxu1 }
 0x110   :  { %v435_v25 = vpop.f32.mrb[15].mxu0  ;;  %v459_v26 = vpop.f32.mrb[15].mxu1 }
 0x111   :  { %v305_v27 = vadd.f32 %v433_v21, %v636_v34  ;;  %v337_v28 = vadd.f32 %v457_v22, %v636_v34  ;;  %v436_v29 = vadd.f32 %v435_v25, %v434_v23  ;;  %v460_v30 = vadd.f32 %v459_v26, %v458_v24 }
 0x113   :  { %350 = vst.msk [vmem:[%s721_s3 + $0x30] sm:$0xff] %vm343_vm0, %v305_v27  ;;  %358 = vst.msk [vmem:[%s721_s3 + $0x70] sm:$0xff] %vm343_vm0, %v337_v28  ;;  %v308_v31 = vadd.f32 %v436_v29, %v636_v34  ;;  %v340_v32 = vadd.f32 %v460_v30, %v636_v34 }
 0x115   :  { %351 = vst.msk [vmem:[%s721_s3 + $0x38] sm:$0xff] %vm343_vm0, %v308_v31  ;;  %359 = vst.msk [vmem:[%s721_s3 + $0x78] sm:$0xff] %vm343_vm0, %v340_v32 }

// kernel: deconv_ssd_forward.41
= control target key start
LH: loop header
LB: loop body
LE: loop exit
PB: predicated region body
PF: predicated region fallthrough
CT: control target
= control target key end

     0   :  { %v77_v11 = vlaneseq  ;;  %v373_v21 = vmov 1966171168   ;;  %vm275_vm0 = vcmask 162816   ;;  %s472_s0 = inlined_call_operand.vmem [shape: bf16[2,256], index: 0, kind: input, shape index: {}]   ;;  %s473_s1 = inlined_call_operand.vmem [shape: bf16[256,20], index: 1, kind: input, shape index: {}]   ;;  %s474_s2 = inlined_call_operand.vmem [shape: f32[1,20], index: 2, kind: input, shape index: {}]   ;;  %s475_s3 = inlined_call_operand.vmem [shape: f32[2,20], index: 3, kind: output, shape index: {}]  }
   0x1   :  { %v357_v0 = vld [vmem:[%s473_s1 + $0x40] sm:$0xff]   ;;  %v359_v2 = vld [vmem:[%s473_s1 + $0x48] sm:$0xff]   ;;  %v361_v4 = vld [vmem:[%s473_s1 + $0x50] sm:$0xff]   ;;  %v75_v22 = vunpack.c.l.s4 %v373_v21 }
   0x2   :  { %v358_v1 = vld [vmem:[%s473_s1] sm:$0xff]   ;;  %334 = vmatprep.subr.bf16.mxu0 %v357_v0  ;;  %v360_v3 = vld [vmem:[%s473_s1 + $0x8] sm:$0xff]   ;;  %v362_v5 = vld [vmem:[%s473_s1 + $0x10] sm:$0xff]   ;;  %v78_v23 = vshrl.u32 %v77_v11, 7 }
   0x3   :  { %335 = vmatpush3.bf16.msra.mxu0 %v358_v1  ;;  %v363_v6 = vld [vmem:[%s473_s1 + $0x58] sm:$0xff]   ;;  %v365_v8 = vld [vmem:[%s473_s1 + $0x60] sm:$0xff]   ;;  %v367_v10 = vld [vmem:[%s473_s1 + $0x68] sm:$0xff]   ;;  %v76_v29 = vunpack.c.0.s8 %v75_v22 }
   0x4   :  { %336 = vmatprep.subr.bf16.mxu0 %v359_v2  ;;  %v364_v7 = vld [vmem:[%s473_s1 + $0x18] sm:$0xff]   ;;  %v366_v9 = vld [vmem:[%s473_s1 + $0x20] sm:$0xff]   ;;  %v19_v16 = vld [vmem:[%s472_s0 + $0x8] sm:$0x3] }
   0x5   :  { %v15_v12 = vld [vmem:[%s472_s0] sm:$0x3]  ;;  %v16_v13 = vld [vmem:[%s472_s0 + $0x2] sm:$0x3]  ;;  %v17_v14 = vld [vmem:[%s472_s0 + $0x4] sm:$0x3]  ;;  %v79_v31 = vsub.s32 %v76_v29, %v78_v23 }
   0x6   :  { %v18_v15 = vld [vmem:[%s472_s0 + $0x6] sm:$0x3]  ;;  %v20_v17 = vld [vmem:[%s472_s0 + $0xa] sm:$0x3]  ;;  %v21_v18 = vld [vmem:[%s472_s0 + $0xc] sm:$0x3]  ;;  %v70_v25 = vcombine.low %v15_v12, %v16_v13 }
   0x7   :  { %337 = vmatpush3.bf16.msra.mxu0 %v360_v3  ;;  %v22_v19 = vld [vmem:[%s472_s0 + $0xe] sm:$0x3]  ;;  %v369_v24 = vld [vmem:[%s473_s1 + $0x70] sm:$0xff]   ;;  %v71_v26 = vcombine.low %v17_v14, %v18_v15  ;;  %v72_v27 = vcombine.low %v19_v16, %v20_v17  ;;  %v371_v32 = vld [vmem:[%s473_s1 + $0x78] sm:$0xff]  }
   0x8   :  { %338 = vmatprep.subr.bf16.mxu0 %v361_v4  ;;  %v368_v20 = vld [vmem:[%s473_s1 + $0x28] sm:$0xff]   ;;  %v73_v28 = vcombine.low %v21_v18, %v22_v19  ;;  %v370_v30 = vld [vmem:[%s473_s1 + $0x30] sm:$0xff]   ;;  %v80_v33 = vrot.slane %v70_v25, %v79_v31  ;;  %v372_v37 = vld [vmem:[%s473_s1 + $0x38] sm:$0xff]  }
   0x9   :  { %v87_v34 = vrot.slane %v71_v26, %v79_v31  ;;  %v94_v35 = vrot.slane %v72_v27, %v79_v31  ;;  %v317_v49 = vld [vmem:[%s474_s2] ss:$0 sm:$0xff] }
   0xa   :  { %v101_v36 = vrot.slane %v73_v28, %v79_v31 }
   0xb   :  { %339 = vmatpush3.bf16.msra.mxu0 %v362_v5  ;;  %v103_v38 = vcombine.high %v80_v33, %v87_v34  ;;  %v102_v40 = vcombine.low %v80_v33, %v87_v34 }
   0xc   :  { %340 = vmatprep.subr.bf16.mxu0 %v363_v6  ;;  %v105_v39 = vcombine.high %v94_v35, %v101_v36  ;;  %v104_v41 = vcombine.low %v94_v35, %v101_v36 }
   0xd   :  { %v119_v42 = vrot.slane %v103_v38, %v79_v31  ;;  %v112_v44 = vrot.slane %v102_v40, %v79_v31 }
   0xe   :  { %v133_v43 = vrot.slane %v105_v39, %v79_v31  ;;  %v126_v45 = vrot.slane %v104_v41, %v79_v31 }
   0xf   :  { %341 = vmatpush3.bf16.msra.mxu0 %v364_v7 }
  0x10   :  { %342 = vmatprep.subr.bf16.mxu0 %v365_v8  ;;  %v135_v46 = vcombine.low %v119_v42, %v133_v43  ;;  %v134_v47 = vcombine.low %v112_v44, %v126_v45 }
  0x12   :  { %266 = vmatprep.mubr.bf16.mxu0 %v135_v46 }
  0x13   :  { %343 = vmatpush3.bf16.msra.mxu0 %v366_v9 }
  0x14   :  { %344 = vmatprep.subr.bf16.mxu0 %v367_v10 }
  0x17   :  { %345 = vmatpush3.bf16.msra.mxu0 %v368_v20 }
  0x18   :  { %346 = vmatprep.subr.bf16.mxu0 %v369_v24 }
  0x1b   :  { %347 = vmatpush3.bf16.msra.mxu0 %v370_v30 }
  0x1c   :  { %348 = vmatprep.subr.bf16.mxu0 %v371_v32 }
  0x1f   :  { %349 = vmatpush3.bf16.msra.mxu0 %v372_v37 }
  0x22   :  { %267 = vmatmul.mubr.bf16.vlgmr.msra.gmra.mrb[0].mxu0 %v134_v47 }
  0xf5   :  { %v350_v48 = vpop.f32.mrb[0].mxu0 }
  0xf6   :  { %v351_v50 = vpop.f32.mrb[1].mxu0 }
  0xf7   :  { %v352_v51 = vadd.f32 %v351_v50, %v350_v48  ;;  %v353_v52 = vpop.f32.mrb[2].mxu0 }
  0xf8   :  { %v354_v53 = vpop.f32.mrb[3].mxu0 }
  0xf9   :  { %v269_v54 = vadd.f32 %v352_v51, %v317_v49 }
  0xfb   :  { %276 = vst.msk [vmem:[#allocation2] sm:$0xff] %vm275_vm0, %v269_v54 }
 0x102   :  { %v295_v55 = vld [vmem:[#allocation2] sm:$0x3] }
 0x103   :  { %296 = vst [vmem:[%s475_s3] sm:$0x3] %v295_v55 }

</bundles_post_ra>
